<compile_context>
chip_gen: v6e
topology: v6e:2x2x1
jax: 0.10.0
libtpu: 0.0.40
codegen_flags: <defaults>
</compile_context>

<pallas_src>
import functools

import jax
import jax.numpy as jnp
import numpy as np
from jax import lax
from jax.experimental import pallas as pl
from jax.experimental.pallas import tpu as pltpu

_CH = (16, 32, 64)          # conv output channels
_FEAT = _CH[-1]             # flattened feature size (conv3 spatial output is 1x1)
_MAX_TB = 8                 # batch rows processed per grid step


# ------------------------------ kernel helpers --------------------------------

def _conv(x, rs_ref, wr_ref, b_ref):
    """3x3 / stride-2 / pad-1 conv on a batch-stacked resident tile.

    x      : (TB*h, w*c_in) value, rows ordered (b, h), cols ordered (w, c_in).
    rs_ref : (3, TB*(h//2), TB*h) row selectors (one per kh tap, 0 for padding).
    wr_ref : (3, w*c_in, (w//2)*c_out) packed weight slabs.
    b_ref  : (1, (w//2)*c_out) bias row.
    """
    acc = None
    for kh in range(3):
        rows = jnp.dot(rs_ref[kh], x, preferred_element_type=jnp.float32)
        part = jnp.dot(rows, wr_ref[kh], preferred_element_type=jnp.float32)
        acc = part if acc is None else acc + part
    return acc + b_ref[...]


def _conv1(x, rs_ref, wr_ref, b_ref):
    """First conv, consuming the flat NCHW input (rows ordered (b, ci, h)).

    x      : (TB*Cin*H, W)
    rs_ref : (3, Cin, TB*(H//2), TB*Cin*H) per-(tap, channel) row selectors.
    wr_ref : (3, Cin, W, (W//2)*16) packed weight slabs.
    """
    c_in = rs_ref.shape[1]
    acc = None
    for kh in range(3):
        for ci in range(c_in):
            rows = jnp.dot(rs_ref[kh, ci], x, preferred_element_type=jnp.float32)
            part = jnp.dot(rows, wr_ref[kh, ci],
                           preferred_element_type=jnp.float32)
            acc = part if acc is None else acc + part
    return acc + b_ref[...]


def _pool(y, rp_ref, cs_ref):
    """2x2 max-pool: row-pair max via selectors, column-pair max via selectors."""
    r0 = jnp.dot(rp_ref[0], y, preferred_element_type=jnp.float32)
    r1 = jnp.dot(rp_ref[1], y, preferred_element_type=jnp.float32)
    rmax = jnp.maximum(r0, r1)
    c0 = jnp.dot(rmax, cs_ref[0], preferred_element_type=jnp.float32)
    c1 = jnp.dot(rmax, cs_ref[1], preferred_element_type=jnp.float32)
    return jnp.maximum(c0, c1)


def _encoder_kernel(x_ref, rs1_ref, wr1_ref, b1_ref, rp1_ref, cs1_ref,
                    rs2_ref, wr2_ref, b2_ref, rp2_ref, cs2_ref,
                    rs3_ref, wr3_ref, b3_ref, o_ref, *, normalize):
    x = x_ref[...]                                  # (TB*Cin*32, 32)
    y = _conv1(x, rs1_ref, wr1_ref, b1_ref)         # (TB*16, 16*16)
    y = _pool(y, rp1_ref, cs1_ref)                  # (TB*8,   8*16)
    y = _conv(y, rs2_ref, wr2_ref, b2_ref)          # (TB*4,   4*32)
    y = _pool(y, rp2_ref, cs2_ref)                  # (TB*2,   2*32)
    y = _conv(y, rs3_ref, wr3_ref, b3_ref)          # (TB,     64)

    # TODO(synk): nn.Dropout(0.2) is identity at inference; training-mode
    # dropout (pltpu.prng_random_bits Bernoulli mask + 1/0.8 rescale) is not
    # implemented here.

    if normalize:
        feat = y.shape[-1]
        mu = jnp.sum(y, axis=-1, keepdims=True) * (1.0 / feat)
        d = y - mu
        var = jnp.sum(d * d, axis=-1, keepdims=True) * (1.0 / (feat - 1))
        y = d * lax.rsqrt(var)                      # unbiased std (torch.std)
    o_ref[...] = y


# ------------------------ host-side constant builders --------------------------

def _np_conv_row_sel(tb, h_in):
    """(3, tb*(h_in//2), tb*h_in): tap kh selects input row 2*o + kh - 1 within
    each batch block; out-of-range taps (zero padding) give all-zero rows."""
    oh = h_in // 2
    sel = np.zeros((3, tb * oh, tb * h_in), np.float32)
    for kh in range(3):
        for bb in range(tb):
            for o in range(oh):
                r = 2 * o + kh - 1
                if 0 <= r < h_in:
                    sel[kh, bb * oh + o, bb * h_in + r] = 1.0
    return sel


def _np_conv1_row_sel(tb, c_in, h):
    """(3, c_in, tb*(h//2), tb*c_in*h): gathers channel ci's row 2*o + kh - 1
    from the flat (b, ci, h)-ordered NCHW rows."""
    oh = h // 2
    sel = np.zeros((3, c_in, tb * oh, tb * c_in * h), np.float32)
    for kh in range(3):
        for ci in range(c_in):
            for bb in range(tb):
                for o in range(oh):
                    r = 2 * o + kh - 1
                    if 0 <= r < h:
                        sel[kh, ci, bb * oh + o, (bb * c_in + ci) * h + r] = 1.0
    return sel


def _np_pool_row_sel(tb, h_in):
    """(2, tb*(h_in//2), tb*h_in): even / odd row of each 2-row pair."""
    ph = h_in // 2
    sel = np.zeros((2, tb * ph, tb * h_in), np.float32)
    for dc in range(2):
        for bb in range(tb):
            for q in range(ph):
                sel[dc, bb * ph + q, bb * h_in + 2 * q + dc] = 1.0
    return sel


def _np_pool_col_sel(ow, c):
    """(2, ow*c, (ow//2)*c): even / odd column block of each 2-column pair
    (columns ordered (ow, c))."""
    pw = ow // 2
    sel = np.zeros((2, ow * c, pw * c), np.float32)
    for dc in range(2):
        for q in range(pw):
            for ch in range(c):
                sel[dc, (2 * q + dc) * c + ch, q * c + ch] = 1.0
    return sel


def _pack_conv_weights(w_torch, w_in, split_cin=False):
    """Fold the kw taps + stride-2/pad-1 column gather into the weight matrix.

    w_torch : (c_out, c_in, 3, 3) -- PyTorch Conv2d layout.
    Returns slabs so the conv becomes: out = sum_kh (rows @ slab[kh]) + bias,
    with output columns ordered (ow, c_out).  split_cin=True keeps a separate
    slab per input channel (conv1 consumes the raw NCHW rows channel-wise).
    """
    c_out, c_in, _, _ = w_torch.shape
    ow = w_in // 2
    sel = np.zeros((3, w_in, ow), np.float32)       # sel[kw, w, j] = [w == 2j+kw-1]
    for kw in range(3):
        for j in range(ow):
            col = 2 * j + kw - 1
            if 0 <= col < w_in:
                sel[kw, col, j] = 1.0
    wt = jnp.asarray(w_torch, jnp.float32)
    if split_cin:
        packed = jnp.einsum("xwj,ochx->hcwjo", jnp.asarray(sel), wt)
        return packed.reshape(3, c_in, w_in, ow * c_out)
    packed = jnp.einsum("xwj,ochx->hwcjo", jnp.asarray(sel), wt)
    return packed.reshape(3, w_in * c_in, ow * c_out)


# --------------------------------- forward -------------------------------------

def observation_encoder_forward(x_nchw, params, normalize=True):
    """Fused Pallas forward of ObservationEncoder (inference)."""
    b, c_in, h, w = x_nchw.shape
    # Geometry of the original module: 32x32 -> 16 -> 8 -> 4 -> 2 -> 1x1x64.
    assert h == 32 and w == 32, "encoder geometry assumes 32x32 observations"
    c1, c2, c3 = _CH

    tb = min(b, _MAX_TB)
    b_pad = -(-b // tb) * tb

    x = x_nchw.astype(jnp.float32)
    if b_pad != b:
        x = jnp.pad(x, ((0, b_pad - b), (0, 0), (0, 0), (0, 0)))
    x_flat = x.reshape(b_pad * c_in * h, w)          # rows ordered (b, ci, h)

    # Constant selectors (numpy, trace-time) and packed weights (weight-side only).
    rs1 = jnp.asarray(_np_conv1_row_sel(tb, c_in, h))   # (3,Cin,TB*16,TB*Cin*32)
    rp1 = jnp.asarray(_np_pool_row_sel(tb, h // 2))     # (2,TB*8, TB*16)
    cs1 = jnp.asarray(_np_pool_col_sel(w // 2, c1))     # (2,256,128)
    rs2 = jnp.asarray(_np_conv_row_sel(tb, h // 4))     # (3,TB*4, TB*8)
    rp2 = jnp.asarray(_np_pool_row_sel(tb, h // 8))     # (2,TB*2, TB*4)
    cs2 = jnp.asarray(_np_pool_col_sel(w // 8, c2))     # (2,128, 64)
    rs3 = jnp.asarray(_np_conv_row_sel(tb, h // 16))    # (3,TB,   TB*2)

    wr1 = _pack_conv_weights(params["w1"], w, split_cin=True)   # (3,Cin,32,256)
    wr2 = _pack_conv_weights(params["w2"], w // 4)              # (3,128,128)
    wr3 = _pack_conv_weights(params["w3"], w // 16)             # (3, 64, 64)
    b1 = jnp.tile(params["b1"].astype(jnp.float32), w // 2)[None, :]   # (1,256)
    b2 = jnp.tile(params["b2"].astype(jnp.float32), w // 8)[None, :]   # (1,128)
    b3 = jnp.tile(params["b3"].astype(jnp.float32), w // 32)[None, :]  # (1, 64)

    kernel = functools.partial(_encoder_kernel, normalize=normalize)
    const = lambda a: pl.BlockSpec(a.shape, lambda i: (0,) * a.ndim)

    out = pl.pallas_call(
        kernel,
        out_shape=jax.ShapeDtypeStruct((b_pad, c3), jnp.float32),
        grid=(b_pad // tb,),
        in_specs=[
            pl.BlockSpec((tb * c_in * h, w), lambda i: (i, 0)),
            const(rs1), const(wr1), const(b1), const(rp1), const(cs1),
            const(rs2), const(wr2), const(b2), const(rp2), const(cs2),
            const(rs3), const(wr3), const(b3),
        ],
        out_specs=pl.BlockSpec((tb, c3), lambda i: (i, 0)),
        compiler_params=pltpu.CompilerParams(
            dimension_semantics=("parallel",)),
    )(x_flat, rs1, wr1, b1, rp1, cs1, rs2, wr2, b2, rp2, cs2, rs3, wr3, b3)
    return out[:b]


def init_params(key, in_channels):
    """Parameters in PyTorch Conv2d layout: weight (c_out, c_in, 3, 3), bias (c_out,)."""
    ks = jax.random.split(key, 6)
    c1, c2, c3 = _CH

    def conv_init(kw_, kb_, c_out, c_in):
        bound = 1.0 / np.sqrt(c_in * 9)
        wgt = jax.random.uniform(kw_, (c_out, c_in, 3, 3), jnp.float32, -bound, bound)
        bia = jax.random.uniform(kb_, (c_out,), jnp.float32, -bound, bound)
        return wgt, bia

    w1, b1 = conv_init(ks[0], ks[1], c1, in_channels)
    w2, b2 = conv_init(ks[2], ks[3], c2, c1)
    w3, b3 = conv_init(ks[4], ks[5], c3, c2)
    return {"w1": w1, "b1": b1, "w2": w2, "b2": b2, "w3": w3, "b3": b3}


# ------------------------- pure-JAX reference (XLA) ----------------------------

def _reference_forward(x_nchw, params, normalize=True):
    y = x_nchw.astype(jnp.float32)
    for i in (1, 2, 3):
        y = lax.conv_general_dilated(
            y, params[f"w{i}"].astype(jnp.float32),
            window_strides=(2, 2), padding=((1, 1), (1, 1)),
            dimension_numbers=("NCHW", "OIHW", "NCHW"),
            precision=lax.Precision.HIGHEST)
        y = y + params[f"b{i}"][None, :, None, None]
        if i < 3:
            y = lax.reduce_window(y, -jnp.inf, lax.max,
                                  (1, 1, 2, 2), (1, 1, 2, 2), "VALID")
    flat = y.reshape(y.shape[0], -1)
    if normalize:
        mu = jnp.mean(flat, axis=-1, keepdims=True)
        d = flat - mu
        var = jnp.sum(d * d, axis=-1, keepdims=True) / (flat.shape[-1] - 1)
        flat = d / jnp.sqrt(var)
    return flat


if __name__ == "__main__":
    key = jax.random.PRNGKey(0)
    k_in, k_par = jax.random.split(key)

    in_channels = 3
    batch, height, width = 2, 32, 32
    x = jax.random.normal(k_in, (batch, in_channels, height, width), jnp.float32)
    params = init_params(k_par, in_channels)

    fwd = jax.jit(functools.partial(observation_encoder_forward, normalize=True))
    out = jax.block_until_ready(fwd(x, params))

    assert out.shape == (batch, _FEAT), out.shape
    assert bool(jnp.all(jnp.isfinite(out)))

    # Cross-check against a plain-XLA reference.
    ref = _reference_forward(x, params, normalize=True)
    max_err = float(jnp.max(jnp.abs(out - ref)))
    assert max_err < 1e-1, f"mismatch vs reference: {max_err}"

    print("KERNEL_OK")
</pallas_src>

<mosaic_0001>
module attributes {stable_mosaic.version = 11 : i64} {
  func.func @_encoder_kernel(%arg0: i32, %arg1: memref<192x32xf32, #tpu.memory_space<vmem>>, %arg2: memref<3x3x32x192xf32, #tpu.memory_space<vmem>>, %arg3: memref<3x3x32x256xf32, #tpu.memory_space<vmem>>, %arg4: memref<1x256xf32, #tpu.memory_space<vmem>>, %arg5: memref<2x16x32xf32, #tpu.memory_space<vmem>>, %arg6: memref<2x256x128xf32, #tpu.memory_space<vmem>>, %arg7: memref<3x8x16xf32, #tpu.memory_space<vmem>>, %arg8: memref<3x128x128xf32, #tpu.memory_space<vmem>>, %arg9: memref<1x128xf32, #tpu.memory_space<vmem>>, %arg10: memref<2x4x8xf32, #tpu.memory_space<vmem>>, %arg11: memref<2x128x64xf32, #tpu.memory_space<vmem>>, %arg12: memref<3x2x4xf32, #tpu.memory_space<vmem>>, %arg13: memref<3x64x64xf32, #tpu.memory_space<vmem>>, %arg14: memref<1x64xf32, #tpu.memory_space<vmem>>, %arg15: memref<2x64xf32, #tpu.memory_space<vmem>>) attributes {dimension_semantics = [#tpu.dimension_semantics<parallel>], iteration_bounds = array<i64: 1>, scalar_prefetch = 0 : i64, scratch_operands = 0 : i64, tpu.core_type = #tpu.core_type<tc>, window_params = [{transform_indices = @transform_0, window_bounds = array<i64: 192, 32>}, {pipeline_mode = #tpu.pipeline_mode<synchronous>, transform_indices = @transform_1, window_bounds = array<i64: 3, 3, 32, 192>}, {pipeline_mode = #tpu.pipeline_mode<synchronous>, transform_indices = @transform_2, window_bounds = array<i64: 3, 3, 32, 256>}, {pipeline_mode = #tpu.pipeline_mode<synchronous>, transform_indices = @transform_3, window_bounds = array<i64: 1, 256>}, {pipeline_mode = #tpu.pipeline_mode<synchronous>, transform_indices = @transform_4, window_bounds = array<i64: 2, 16, 32>}, {pipeline_mode = #tpu.pipeline_mode<synchronous>, transform_indices = @transform_5, window_bounds = array<i64: 2, 256, 128>}, {pipeline_mode = #tpu.pipeline_mode<synchronous>, transform_indices = @transform_6, window_bounds = array<i64: 3, 8, 16>}, {pipeline_mode = #tpu.pipeline_mode<synchronous>, transform_indices = @transform_7, window_bounds = array<i64: 3, 128, 128>}, {pipeline_mode = #tpu.pipeline_mode<synchronous>, transform_indices = @transform_8, window_bounds = array<i64: 1, 128>}, {pipeline_mode = #tpu.pipeline_mode<synchronous>, transform_indices = @transform_9, window_bounds = array<i64: 2, 4, 8>}, {pipeline_mode = #tpu.pipeline_mode<synchronous>, transform_indices = @transform_10, window_bounds = array<i64: 2, 128, 64>}, {pipeline_mode = #tpu.pipeline_mode<synchronous>, transform_indices = @transform_11, window_bounds = array<i64: 3, 2, 4>}, {pipeline_mode = #tpu.pipeline_mode<synchronous>, transform_indices = @transform_12, window_bounds = array<i64: 3, 64, 64>}, {pipeline_mode = #tpu.pipeline_mode<synchronous>, transform_indices = @transform_13, window_bounds = array<i64: 1, 64>}, {transform_indices = @transform_14, window_bounds = array<i64: 2, 64>}]} {
    %c0 = arith.constant 0 : index
    %c0_0 = arith.constant 0 : index
    %0 = vector.load %arg1[%c0, %c0_0] : memref<192x32xf32, #tpu.memory_space<vmem>>, vector<192x32xf32>
    %c0_1 = arith.constant 0 : index
    %c0_2 = arith.constant 0 : index
    %c0_3 = arith.constant 0 : index
    %c0_4 = arith.constant 0 : index
    %1 = vector.load %arg2[%c0_1, %c0_2, %c0_3, %c0_4] : memref<3x3x32x192xf32, #tpu.memory_space<vmem>>, vector<1x1x32x192xf32>
    %2 = vector.shape_cast %1 : vector<1x1x32x192xf32> to vector<32x192xf32>
    %cst = arith.constant dense<0.000000e+00> : vector<32x32xf32>
    %3 = tpu.matmul %2, %0, %cst {dimension_numbers = #tpu.dot_dimension_numbers<[1], [0], [0], [1], [0, 0, 1, 1], [], []>} : vector<32x192xf32>, vector<192x32xf32>, vector<32x32xf32> -> vector<32x32xf32>
    %c0_5 = arith.constant 0 : index
    %c0_6 = arith.constant 0 : index
    %c0_7 = arith.constant 0 : index
    %c0_8 = arith.constant 0 : index
    %4 = vector.load %arg3[%c0_5, %c0_6, %c0_7, %c0_8] : memref<3x3x32x256xf32, #tpu.memory_space<vmem>>, vector<1x1x32x256xf32>
    %5 = vector.shape_cast %4 : vector<1x1x32x256xf32> to vector<32x256xf32>
    %cst_9 = arith.constant dense<0.000000e+00> : vector<32x256xf32>
    %6 = tpu.matmul %3, %5, %cst_9 {dimension_numbers = #tpu.dot_dimension_numbers<[1], [0], [0], [1], [0, 0, 1, 1], [], []>} : vector<32x32xf32>, vector<32x256xf32>, vector<32x256xf32> -> vector<32x256xf32>
    %c0_10 = arith.constant 0 : index
    %c1 = arith.constant 1 : index
    %c0_11 = arith.constant 0 : index
    %c0_12 = arith.constant 0 : index
    %7 = vector.load %arg2[%c0_10, %c1, %c0_11, %c0_12] : memref<3x3x32x192xf32, #tpu.memory_space<vmem>>, vector<1x1x32x192xf32>
    %8 = vector.shape_cast %7 : vector<1x1x32x192xf32> to vector<32x192xf32>
    %cst_13 = arith.constant dense<0.000000e+00> : vector<32x32xf32>
    %9 = tpu.matmul %8, %0, %cst_13 {dimension_numbers = #tpu.dot_dimension_numbers<[1], [0], [0], [1], [0, 0, 1, 1], [], []>} : vector<32x192xf32>, vector<192x32xf32>, vector<32x32xf32> -> vector<32x32xf32>
    %c0_14 = arith.constant 0 : index
    %c1_15 = arith.constant 1 : index
    %c0_16 = arith.constant 0 : index
    %c0_17 = arith.constant 0 : index
    %10 = vector.load %arg3[%c0_14, %c1_15, %c0_16, %c0_17] : memref<3x3x32x256xf32, #tpu.memory_space<vmem>>, vector<1x1x32x256xf32>
    %11 = vector.shape_cast %10 : vector<1x1x32x256xf32> to vector<32x256xf32>
    %cst_18 = arith.constant dense<0.000000e+00> : vector<32x256xf32>
    %12 = tpu.matmul %9, %11, %cst_18 {dimension_numbers = #tpu.dot_dimension_numbers<[1], [0], [0], [1], [0, 0, 1, 1], [], []>} : vector<32x32xf32>, vector<32x256xf32>, vector<32x256xf32> -> vector<32x256xf32>
    %13 = arith.addf %6, %12 : vector<32x256xf32>
    %c0_19 = arith.constant 0 : index
    %c2 = arith.constant 2 : index
    %c0_20 = arith.constant 0 : index
    %c0_21 = arith.constant 0 : index
    %14 = vector.load %arg2[%c0_19, %c2, %c0_20, %c0_21] : memref<3x3x32x192xf32, #tpu.memory_space<vmem>>, vector<1x1x32x192xf32>
    %15 = vector.shape_cast %14 : vector<1x1x32x192xf32> to vector<32x192xf32>
    %cst_22 = arith.constant dense<0.000000e+00> : vector<32x32xf32>
    %16 = tpu.matmul %15, %0, %cst_22 {dimension_numbers = #tpu.dot_dimension_numbers<[1], [0], [0], [1], [0, 0, 1, 1], [], []>} : vector<32x192xf32>, vector<192x32xf32>, vector<32x32xf32> -> vector<32x32xf32>
    %c0_23 = arith.constant 0 : index
    %c2_24 = arith.constant 2 : index
    %c0_25 = arith.constant 0 : index
    %c0_26 = arith.constant 0 : index
    %17 = vector.load %arg3[%c0_23, %c2_24, %c0_25, %c0_26] : memref<3x3x32x256xf32, #tpu.memory_space<vmem>>, vector<1x1x32x256xf32>
    %18 = vector.shape_cast %17 : vector<1x1x32x256xf32> to vector<32x256xf32>
    %cst_27 = arith.constant dense<0.000000e+00> : vector<32x256xf32>
    %19 = tpu.matmul %16, %18, %cst_27 {dimension_numbers = #tpu.dot_dimension_numbers<[1], [0], [0], [1], [0, 0, 1, 1], [], []>} : vector<32x32xf32>, vector<32x256xf32>, vector<32x256xf32> -> vector<32x256xf32>
    %20 = arith.addf %13, %19 : vector<32x256xf32>
    %c1_28 = arith.constant 1 : index
    %c0_29 = arith.constant 0 : index
    %c0_30 = arith.constant 0 : index
    %c0_31 = arith.constant 0 : index
    %21 = vector.load %arg2[%c1_28, %c0_29, %c0_30, %c0_31] : memref<3x3x32x192xf32, #tpu.memory_space<vmem>>, vector<1x1x32x192xf32>
    %22 = vector.shape_cast %21 : vector<1x1x32x192xf32> to vector<32x192xf32>
    %cst_32 = arith.constant dense<0.000000e+00> : vector<32x32xf32>
    %23 = tpu.matmul %22, %0, %cst_32 {dimension_numbers = #tpu.dot_dimension_numbers<[1], [0], [0], [1], [0, 0, 1, 1], [], []>} : vector<32x192xf32>, vector<192x32xf32>, vector<32x32xf32> -> vector<32x32xf32>
    %c1_33 = arith.constant 1 : index
    %c0_34 = arith.constant 0 : index
    %c0_35 = arith.constant 0 : index
    %c0_36 = arith.constant 0 : index
    %24 = vector.load %arg3[%c1_33, %c0_34, %c0_35, %c0_36] : memref<3x3x32x256xf32, #tpu.memory_space<vmem>>, vector<1x1x32x256xf32>
    %25 = vector.shape_cast %24 : vector<1x1x32x256xf32> to vector<32x256xf32>
    %cst_37 = arith.constant dense<0.000000e+00> : vector<32x256xf32>
    %26 = tpu.matmul %23, %25, %cst_37 {dimension_numbers = #tpu.dot_dimension_numbers<[1], [0], [0], [1], [0, 0, 1, 1], [], []>} : vector<32x32xf32>, vector<32x256xf32>, vector<32x256xf32> -> vector<32x256xf32>
    %27 = arith.addf %20, %26 : vector<32x256xf32>
    %c1_38 = arith.constant 1 : index
    %c1_39 = arith.constant 1 : index
    %c0_40 = arith.constant 0 : index
    %c0_41 = arith.constant 0 : index
    %28 = vector.load %arg2[%c1_38, %c1_39, %c0_40, %c0_41] : memref<3x3x32x192xf32, #tpu.memory_space<vmem>>, vector<1x1x32x192xf32>
    %29 = vector.shape_cast %28 : vector<1x1x32x192xf32> to vector<32x192xf32>
    %cst_42 = arith.constant dense<0.000000e+00> : vector<32x32xf32>
    %30 = tpu.matmul %29, %0, %cst_42 {dimension_numbers = #tpu.dot_dimension_numbers<[1], [0], [0], [1], [0, 0, 1, 1], [], []>} : vector<32x192xf32>, vector<192x32xf32>, vector<32x32xf32> -> vector<32x32xf32>
    %c1_43 = arith.constant 1 : index
    %c1_44 = arith.constant 1 : index
    %c0_45 = arith.constant 0 : index
    %c0_46 = arith.constant 0 : index
    %31 = vector.load %arg3[%c1_43, %c1_44, %c0_45, %c0_46] : memref<3x3x32x256xf32, #tpu.memory_space<vmem>>, vector<1x1x32x256xf32>
    %32 = vector.shape_cast %31 : vector<1x1x32x256xf32> to vector<32x256xf32>
    %cst_47 = arith.constant dense<0.000000e+00> : vector<32x256xf32>
    %33 = tpu.matmul %30, %32, %cst_47 {dimension_numbers = #tpu.dot_dimension_numbers<[1], [0], [0], [1], [0, 0, 1, 1], [], []>} : vector<32x32xf32>, vector<32x256xf32>, vector<32x256xf32> -> vector<32x256xf32>
    %34 = arith.addf %27, %33 : vector<32x256xf32>
    %c1_48 = arith.constant 1 : index
    %c2_49 = arith.constant 2 : index
    %c0_50 = arith.constant 0 : index
    %c0_51 = arith.constant 0 : index
    %35 = vector.load %arg2[%c1_48, %c2_49, %c0_50, %c0_51] : memref<3x3x32x192xf32, #tpu.memory_space<vmem>>, vector<1x1x32x192xf32>
    %36 = vector.shape_cast %35 : vector<1x1x32x192xf32> to vector<32x192xf32>
    %cst_52 = arith.constant dense<0.000000e+00> : vector<32x32xf32>
    %37 = tpu.matmul %36, %0, %cst_52 {dimension_numbers = #tpu.dot_dimension_numbers<[1], [0], [0], [1], [0, 0, 1, 1], [], []>} : vector<32x192xf32>, vector<192x32xf32>, vector<32x32xf32> -> vector<32x32xf32>
    %c1_53 = arith.constant 1 : index
    %c2_54 = arith.constant 2 : index
    %c0_55 = arith.constant 0 : index
    %c0_56 = arith.constant 0 : index
    %38 = vector.load %arg3[%c1_53, %c2_54, %c0_55, %c0_56] : memref<3x3x32x256xf32, #tpu.memory_space<vmem>>, vector<1x1x32x256xf32>
    %39 = vector.shape_cast %38 : vector<1x1x32x256xf32> to vector<32x256xf32>
    %cst_57 = arith.constant dense<0.000000e+00> : vector<32x256xf32>
    %40 = tpu.matmul %37, %39, %cst_57 {dimension_numbers = #tpu.dot_dimension_numbers<[1], [0], [0], [1], [0, 0, 1, 1], [], []>} : vector<32x32xf32>, vector<32x256xf32>, vector<32x256xf32> -> vector<32x256xf32>
    %41 = arith.addf %34, %40 : vector<32x256xf32>
    %c2_58 = arith.constant 2 : index
    %c0_59 = arith.constant 0 : index
    %c0_60 = arith.constant 0 : index
    %c0_61 = arith.constant 0 : index
    %42 = vector.load %arg2[%c2_58, %c0_59, %c0_60, %c0_61] : memref<3x3x32x192xf32, #tpu.memory_space<vmem>>, vector<1x1x32x192xf32>
    %43 = vector.shape_cast %42 : vector<1x1x32x192xf32> to vector<32x192xf32>
    %cst_62 = arith.constant dense<0.000000e+00> : vector<32x32xf32>
    %44 = tpu.matmul %43, %0, %cst_62 {dimension_numbers = #tpu.dot_dimension_numbers<[1], [0], [0], [1], [0, 0, 1, 1], [], []>} : vector<32x192xf32>, vector<192x32xf32>, vector<32x32xf32> -> vector<32x32xf32>
    %c2_63 = arith.constant 2 : index
    %c0_64 = arith.constant 0 : index
    %c0_65 = arith.constant 0 : index
    %c0_66 = arith.constant 0 : index
    %45 = vector.load %arg3[%c2_63, %c0_64, %c0_65, %c0_66] : memref<3x3x32x256xf32, #tpu.memory_space<vmem>>, vector<1x1x32x256xf32>
    %46 = vector.shape_cast %45 : vector<1x1x32x256xf32> to vector<32x256xf32>
    %cst_67 = arith.constant dense<0.000000e+00> : vector<32x256xf32>
    %47 = tpu.matmul %44, %46, %cst_67 {dimension_numbers = #tpu.dot_dimension_numbers<[1], [0], [0], [1], [0, 0, 1, 1], [], []>} : vector<32x32xf32>, vector<32x256xf32>, vector<32x256xf32> -> vector<32x256xf32>
    %48 = arith.addf %41, %47 : vector<32x256xf32>
    %c2_68 = arith.constant 2 : index
    %c1_69 = arith.constant 1 : index
    %c0_70 = arith.constant 0 : index
    %c0_71 = arith.constant 0 : index
    %49 = vector.load %arg2[%c2_68, %c1_69, %c0_70, %c0_71] : memref<3x3x32x192xf32, #tpu.memory_space<vmem>>, vector<1x1x32x192xf32>
    %50 = vector.shape_cast %49 : vector<1x1x32x192xf32> to vector<32x192xf32>
    %cst_72 = arith.constant dense<0.000000e+00> : vector<32x32xf32>
    %51 = tpu.matmul %50, %0, %cst_72 {dimension_numbers = #tpu.dot_dimension_numbers<[1], [0], [0], [1], [0, 0, 1, 1], [], []>} : vector<32x192xf32>, vector<192x32xf32>, vector<32x32xf32> -> vector<32x32xf32>
    %c2_73 = arith.constant 2 : index
    %c1_74 = arith.constant 1 : index
    %c0_75 = arith.constant 0 : index
    %c0_76 = arith.constant 0 : index
    %52 = vector.load %arg3[%c2_73, %c1_74, %c0_75, %c0_76] : memref<3x3x32x256xf32, #tpu.memory_space<vmem>>, vector<1x1x32x256xf32>
    %53 = vector.shape_cast %52 : vector<1x1x32x256xf32> to vector<32x256xf32>
    %cst_77 = arith.constant dense<0.000000e+00> : vector<32x256xf32>
    %54 = tpu.matmul %51, %53, %cst_77 {dimension_numbers = #tpu.dot_dimension_numbers<[1], [0], [0], [1], [0, 0, 1, 1], [], []>} : vector<32x32xf32>, vector<32x256xf32>, vector<32x256xf32> -> vector<32x256xf32>
    %55 = arith.addf %48, %54 : vector<32x256xf32>
    %c2_78 = arith.constant 2 : index
    %c2_79 = arith.constant 2 : index
    %c0_80 = arith.constant 0 : index
    %c0_81 = arith.constant 0 : index
    %56 = vector.load %arg2[%c2_78, %c2_79, %c0_80, %c0_81] : memref<3x3x32x192xf32, #tpu.memory_space<vmem>>, vector<1x1x32x192xf32>
    %57 = vector.shape_cast %56 : vector<1x1x32x192xf32> to vector<32x192xf32>
    %cst_82 = arith.constant dense<0.000000e+00> : vector<32x32xf32>
    %58 = tpu.matmul %57, %0, %cst_82 {dimension_numbers = #tpu.dot_dimension_numbers<[1], [0], [0], [1], [0, 0, 1, 1], [], []>} : vector<32x192xf32>, vector<192x32xf32>, vector<32x32xf32> -> vector<32x32xf32>
    %c2_83 = arith.constant 2 : index
    %c2_84 = arith.constant 2 : index
    %c0_85 = arith.constant 0 : index
    %c0_86 = arith.constant 0 : index
    %59 = vector.load %arg3[%c2_83, %c2_84, %c0_85, %c0_86] : memref<3x3x32x256xf32, #tpu.memory_space<vmem>>, vector<1x1x32x256xf32>
    %60 = vector.shape_cast %59 : vector<1x1x32x256xf32> to vector<32x256xf32>
    %cst_87 = arith.constant dense<0.000000e+00> : vector<32x256xf32>
    %61 = tpu.matmul %58, %60, %cst_87 {dimension_numbers = #tpu.dot_dimension_numbers<[1], [0], [0], [1], [0, 0, 1, 1], [], []>} : vector<32x32xf32>, vector<32x256xf32>, vector<32x256xf32> -> vector<32x256xf32>
    %62 = arith.addf %55, %61 : vector<32x256xf32>
    %c0_88 = arith.constant 0 : index
    %c0_89 = arith.constant 0 : index
    %63 = vector.load %arg4[%c0_88, %c0_89] : memref<1x256xf32, #tpu.memory_space<vmem>>, vector<1x256xf32>
    %64 = vector.broadcast %63 : vector<1x256xf32> to vector<32x256xf32>
    %65 = arith.addf %62, %64 : vector<32x256xf32>
    %c0_90 = arith.constant 0 : index
    %c0_91 = arith.constant 0 : index
    %c0_92 = arith.constant 0 : index
    %66 = vector.load %arg5[%c0_90, %c0_91, %c0_92] : memref<2x16x32xf32, #tpu.memory_space<vmem>>, vector<1x16x32xf32>
    %67 = vector.shape_cast %66 : vector<1x16x32xf32> to vector<16x32xf32>
    %cst_93 = arith.constant dense<0.000000e+00> : vector<16x256xf32>
    %68 = tpu.matmul %67, %65, %cst_93 {dimension_numbers = #tpu.dot_dimension_numbers<[1], [0], [0], [1], [0, 0, 1, 1], [], []>} : vector<16x32xf32>, vector<32x256xf32>, vector<16x256xf32> -> vector<16x256xf32>
    %c1_94 = arith.constant 1 : index
    %c0_95 = arith.constant 0 : index
    %c0_96 = arith.constant 0 : index
    %69 = vector.load %arg5[%c1_94, %c0_95, %c0_96] : memref<2x16x32xf32, #tpu.memory_space<vmem>>, vector<1x16x32xf32>
    %70 = vector.shape_cast %69 : vector<1x16x32xf32> to vector<16x32xf32>
    %cst_97 = arith.constant dense<0.000000e+00> : vector<16x256xf32>
    %71 = tpu.matmul %70, %65, %cst_97 {dimension_numbers = #tpu.dot_dimension_numbers<[1], [0], [0], [1], [0, 0, 1, 1], [], []>} : vector<16x32xf32>, vector<32x256xf32>, vector<16x256xf32> -> vector<16x256xf32>
    %72 = arith.maximumf %68, %71 : vector<16x256xf32>
    %c0_98 = arith.constant 0 : index
    %c0_99 = arith.constant 0 : index
    %c0_100 = arith.constant 0 : index
    %73 = vector.load %arg6[%c0_98, %c0_99, %c0_100] : memref<2x256x128xf32, #tpu.memory_space<vmem>>, vector<1x256x128xf32>
    %74 = vector.shape_cast %73 : vector<1x256x128xf32> to vector<256x128xf32>
    %cst_101 = arith.constant dense<0.000000e+00> : vector<16x128xf32>
    %75 = tpu.matmul %72, %74, %cst_101 {dimension_numbers = #tpu.dot_dimension_numbers<[1], [0], [0], [1], [0, 0, 1, 1], [], []>} : vector<16x256xf32>, vector<256x128xf32>, vector<16x128xf32> -> vector<16x128xf32>
    %c1_102 = arith.constant 1 : index
    %c0_103 = arith.constant 0 : index
    %c0_104 = arith.constant 0 : index
    %76 = vector.load %arg6[%c1_102, %c0_103, %c0_104] : memref<2x256x128xf32, #tpu.memory_space<vmem>>, vector<1x256x128xf32>
    %77 = vector.shape_cast %76 : vector<1x256x128xf32> to vector<256x128xf32>
    %cst_105 = arith.constant dense<0.000000e+00> : vector<16x128xf32>
    %78 = tpu.matmul %72, %77, %cst_105 {dimension_numbers = #tpu.dot_dimension_numbers<[1], [0], [0], [1], [0, 0, 1, 1], [], []>} : vector<16x256xf32>, vector<256x128xf32>, vector<16x128xf32> -> vector<16x128xf32>
    %79 = arith.maximumf %75, %78 : vector<16x128xf32>
    %c0_106 = arith.constant 0 : index
    %c0_107 = arith.constant 0 : index
    %c0_108 = arith.constant 0 : index
    %80 = vector.load %arg7[%c0_106, %c0_107, %c0_108] : memref<3x8x16xf32, #tpu.memory_space<vmem>>, vector<1x8x16xf32>
    %81 = vector.shape_cast %80 : vector<1x8x16xf32> to vector<8x16xf32>
    %cst_109 = arith.constant dense<0.000000e+00> : vector<8x128xf32>
    %82 = tpu.matmul %81, %79, %cst_109 {dimension_numbers = #tpu.dot_dimension_numbers<[1], [0], [0], [1], [0, 0, 1, 1], [], []>} : vector<8x16xf32>, vector<16x128xf32>, vector<8x128xf32> -> vector<8x128xf32>
    %c0_110 = arith.constant 0 : index
    %c0_111 = arith.constant 0 : index
    %c0_112 = arith.constant 0 : index
    %83 = vector.load %arg8[%c0_110, %c0_111, %c0_112] : memref<3x128x128xf32, #tpu.memory_space<vmem>>, vector<1x128x128xf32>
    %84 = vector.shape_cast %83 : vector<1x128x128xf32> to vector<128x128xf32>
    %cst_113 = arith.constant dense<0.000000e+00> : vector<8x128xf32>
    %85 = tpu.matmul %82, %84, %cst_113 {dimension_numbers = #tpu.dot_dimension_numbers<[1], [0], [0], [1], [0, 0, 1, 1], [], []>} : vector<8x128xf32>, vector<128x128xf32>, vector<8x128xf32> -> vector<8x128xf32>
    %c1_114 = arith.constant 1 : index
    %c0_115 = arith.constant 0 : index
    %c0_116 = arith.constant 0 : index
    %86 = vector.load %arg7[%c1_114, %c0_115, %c0_116] : memref<3x8x16xf32, #tpu.memory_space<vmem>>, vector<1x8x16xf32>
    %87 = vector.shape_cast %86 : vector<1x8x16xf32> to vector<8x16xf32>
    %cst_117 = arith.constant dense<0.000000e+00> : vector<8x128xf32>
    %88 = tpu.matmul %87, %79, %cst_117 {dimension_numbers = #tpu.dot_dimension_numbers<[1], [0], [0], [1], [0, 0, 1, 1], [], []>} : vector<8x16xf32>, vector<16x128xf32>, vector<8x128xf32> -> vector<8x128xf32>
    %c1_118 = arith.constant 1 : index
    %c0_119 = arith.constant 0 : index
    %c0_120 = arith.constant 0 : index
    %89 = vector.load %arg8[%c1_118, %c0_119, %c0_120] : memref<3x128x128xf32, #tpu.memory_space<vmem>>, vector<1x128x128xf32>
    %90 = vector.shape_cast %89 : vector<1x128x128xf32> to vector<128x128xf32>
    %cst_121 = arith.constant dense<0.000000e+00> : vector<8x128xf32>
    %91 = tpu.matmul %88, %90, %cst_121 {dimension_numbers = #tpu.dot_dimension_numbers<[1], [0], [0], [1], [0, 0, 1, 1], [], []>} : vector<8x128xf32>, vector<128x128xf32>, vector<8x128xf32> -> vector<8x128xf32>
    %92 = arith.addf %85, %91 : vector<8x128xf32>
    %c2_122 = arith.constant 2 : index
    %c0_123 = arith.constant 0 : index
    %c0_124 = arith.constant 0 : index
    %93 = vector.load %arg7[%c2_122, %c0_123, %c0_124] : memref<3x8x16xf32, #tpu.memory_space<vmem>>, vector<1x8x16xf32>
    %94 = vector.shape_cast %93 : vector<1x8x16xf32> to vector<8x16xf32>
    %cst_125 = arith.constant dense<0.000000e+00> : vector<8x128xf32>
    %95 = tpu.matmul %94, %79, %cst_125 {dimension_numbers = #tpu.dot_dimension_numbers<[1], [0], [0], [1], [0, 0, 1, 1], [], []>} : vector<8x16xf32>, vector<16x128xf32>, vector<8x128xf32> -> vector<8x128xf32>
    %c2_126 = arith.constant 2 : index
    %c0_127 = arith.constant 0 : index
    %c0_128 = arith.constant 0 : index
    %96 = vector.load %arg8[%c2_126, %c0_127, %c0_128] : memref<3x128x128xf32, #tpu.memory_space<vmem>>, vector<1x128x128xf32>
    %97 = vector.shape_cast %96 : vector<1x128x128xf32> to vector<128x128xf32>
    %cst_129 = arith.constant dense<0.000000e+00> : vector<8x128xf32>
    %98 = tpu.matmul %95, %97, %cst_129 {dimension_numbers = #tpu.dot_dimension_numbers<[1], [0], [0], [1], [0, 0, 1, 1], [], []>} : vector<8x128xf32>, vector<128x128xf32>, vector<8x128xf32> -> vector<8x128xf32>
    %99 = arith.addf %92, %98 : vector<8x128xf32>
    %c0_130 = arith.constant 0 : index
    %c0_131 = arith.constant 0 : index
    %100 = vector.load %arg9[%c0_130, %c0_131] : memref<1x128xf32, #tpu.memory_space<vmem>>, vector<1x128xf32>
    %101 = vector.broadcast %100 : vector<1x128xf32> to vector<8x128xf32>
    %102 = arith.addf %99, %101 : vector<8x128xf32>
    %c0_132 = arith.constant 0 : index
    %c0_133 = arith.constant 0 : index
    %c0_134 = arith.constant 0 : index
    %103 = vector.load %arg10[%c0_132, %c0_133, %c0_134] : memref<2x4x8xf32, #tpu.memory_space<vmem>>, vector<1x4x8xf32>
    %104 = vector.shape_cast %103 : vector<1x4x8xf32> to vector<4x8xf32>
    %cst_135 = arith.constant dense<0.000000e+00> : vector<4x128xf32>
    %105 = tpu.matmul %104, %102, %cst_135 {dimension_numbers = #tpu.dot_dimension_numbers<[1], [0], [0], [1], [0, 0, 1, 1], [], []>} : vector<4x8xf32>, vector<8x128xf32>, vector<4x128xf32> -> vector<4x128xf32>
    %c1_136 = arith.constant 1 : index
    %c0_137 = arith.constant 0 : index
    %c0_138 = arith.constant 0 : index
    %106 = vector.load %arg10[%c1_136, %c0_137, %c0_138] : memref<2x4x8xf32, #tpu.memory_space<vmem>>, vector<1x4x8xf32>
    %107 = vector.shape_cast %106 : vector<1x4x8xf32> to vector<4x8xf32>
    %cst_139 = arith.constant dense<0.000000e+00> : vector<4x128xf32>
    %108 = tpu.matmul %107, %102, %cst_139 {dimension_numbers = #tpu.dot_dimension_numbers<[1], [0], [0], [1], [0, 0, 1, 1], [], []>} : vector<4x8xf32>, vector<8x128xf32>, vector<4x128xf32> -> vector<4x128xf32>
    %109 = arith.maximumf %105, %108 : vector<4x128xf32>
    %c0_140 = arith.constant 0 : index
    %c0_141 = arith.constant 0 : index
    %c0_142 = arith.constant 0 : index
    %110 = vector.load %arg11[%c0_140, %c0_141, %c0_142] : memref<2x128x64xf32, #tpu.memory_space<vmem>>, vector<1x128x64xf32>
    %111 = vector.shape_cast %110 : vector<1x128x64xf32> to vector<128x64xf32>
    %cst_143 = arith.constant dense<0.000000e+00> : vector<4x64xf32>
    %112 = tpu.matmul %109, %111, %cst_143 {dimension_numbers = #tpu.dot_dimension_numbers<[1], [0], [0], [1], [0, 0, 1, 1], [], []>} : vector<4x128xf32>, vector<128x64xf32>, vector<4x64xf32> -> vector<4x64xf32>
    %c1_144 = arith.constant 1 : index
    %c0_145 = arith.constant 0 : index
    %c0_146 = arith.constant 0 : index
    %113 = vector.load %arg11[%c1_144, %c0_145, %c0_146] : memref<2x128x64xf32, #tpu.memory_space<vmem>>, vector<1x128x64xf32>
    %114 = vector.shape_cast %113 : vector<1x128x64xf32> to vector<128x64xf32>
    %cst_147 = arith.constant dense<0.000000e+00> : vector<4x64xf32>
    %115 = tpu.matmul %109, %114, %cst_147 {dimension_numbers = #tpu.dot_dimension_numbers<[1], [0], [0], [1], [0, 0, 1, 1], [], []>} : vector<4x128xf32>, vector<128x64xf32>, vector<4x64xf32> -> vector<4x64xf32>
    %116 = arith.maximumf %112, %115 : vector<4x64xf32>
    %c0_148 = arith.constant 0 : index
    %c0_149 = arith.constant 0 : index
    %c0_150 = arith.constant 0 : index
    %117 = vector.load %arg12[%c0_148, %c0_149, %c0_150] : memref<3x2x4xf32, #tpu.memory_space<vmem>>, vector<1x2x4xf32>
    %118 = vector.shape_cast %117 : vector<1x2x4xf32> to vector<2x4xf32>
    %cst_151 = arith.constant dense<0.000000e+00> : vector<2x64xf32>
    %119 = tpu.matmul %118, %116, %cst_151 {dimension_numbers = #tpu.dot_dimension_numbers<[1], [0], [0], [1], [0, 0, 1, 1], [], []>} : vector<2x4xf32>, vector<4x64xf32>, vector<2x64xf32> -> vector<2x64xf32>
    %c0_152 = arith.constant 0 : index
    %c0_153 = arith.constant 0 : index
    %c0_154 = arith.constant 0 : index
    %120 = vector.load %arg13[%c0_152, %c0_153, %c0_154] : memref<3x64x64xf32, #tpu.memory_space<vmem>>, vector<1x64x64xf32>
    %121 = vector.shape_cast %120 : vector<1x64x64xf32> to vector<64x64xf32>
    %cst_155 = arith.constant dense<0.000000e+00> : vector<2x64xf32>
    %122 = tpu.matmul %119, %121, %cst_155 {dimension_numbers = #tpu.dot_dimension_numbers<[1], [0], [0], [1], [0, 0, 1, 1], [], []>} : vector<2x64xf32>, vector<64x64xf32>, vector<2x64xf32> -> vector<2x64xf32>
    %c1_156 = arith.constant 1 : index
    %c0_157 = arith.constant 0 : index
    %c0_158 = arith.constant 0 : index
    %123 = vector.load %arg12[%c1_156, %c0_157, %c0_158] : memref<3x2x4xf32, #tpu.memory_space<vmem>>, vector<1x2x4xf32>
    %124 = vector.shape_cast %123 : vector<1x2x4xf32> to vector<2x4xf32>
    %cst_159 = arith.constant dense<0.000000e+00> : vector<2x64xf32>
    %125 = tpu.matmul %124, %116, %cst_159 {dimension_numbers = #tpu.dot_dimension_numbers<[1], [0], [0], [1], [0, 0, 1, 1], [], []>} : vector<2x4xf32>, vector<4x64xf32>, vector<2x64xf32> -> vector<2x64xf32>
    %c1_160 = arith.constant 1 : index
    %c0_161 = arith.constant 0 : index
    %c0_162 = arith.constant 0 : index
    %126 = vector.load %arg13[%c1_160, %c0_161, %c0_162] : memref<3x64x64xf32, #tpu.memory_space<vmem>>, vector<1x64x64xf32>
    %127 = vector.shape_cast %126 : vector<1x64x64xf32> to vector<64x64xf32>
    %cst_163 = arith.constant dense<0.000000e+00> : vector<2x64xf32>
    %128 = tpu.matmul %125, %127, %cst_163 {dimension_numbers = #tpu.dot_dimension_numbers<[1], [0], [0], [1], [0, 0, 1, 1], [], []>} : vector<2x64xf32>, vector<64x64xf32>, vector<2x64xf32> -> vector<2x64xf32>
    %129 = arith.addf %122, %128 : vector<2x64xf32>
    %c2_164 = arith.constant 2 : index
    %c0_165 = arith.constant 0 : index
    %c0_166 = arith.constant 0 : index
    %130 = vector.load %arg12[%c2_164, %c0_165, %c0_166] : memref<3x2x4xf32, #tpu.memory_space<vmem>>, vector<1x2x4xf32>
    %131 = vector.shape_cast %130 : vector<1x2x4xf32> to vector<2x4xf32>
    %cst_167 = arith.constant dense<0.000000e+00> : vector<2x64xf32>
    %132 = tpu.matmul %131, %116, %cst_167 {dimension_numbers = #tpu.dot_dimension_numbers<[1], [0], [0], [1], [0, 0, 1, 1], [], []>} : vector<2x4xf32>, vector<4x64xf32>, vector<2x64xf32> -> vector<2x64xf32>
    %c2_168 = arith.constant 2 : index
    %c0_169 = arith.constant 0 : index
    %c0_170 = arith.constant 0 : index
    %133 = vector.load %arg13[%c2_168, %c0_169, %c0_170] : memref<3x64x64xf32, #tpu.memory_space<vmem>>, vector<1x64x64xf32>
    %134 = vector.shape_cast %133 : vector<1x64x64xf32> to vector<64x64xf32>
    %cst_171 = arith.constant dense<0.000000e+00> : vector<2x64xf32>
    %135 = tpu.matmul %132, %134, %cst_171 {dimension_numbers = #tpu.dot_dimension_numbers<[1], [0], [0], [1], [0, 0, 1, 1], [], []>} : vector<2x64xf32>, vector<64x64xf32>, vector<2x64xf32> -> vector<2x64xf32>
    %136 = arith.addf %129, %135 : vector<2x64xf32>
    %c0_172 = arith.constant 0 : index
    %c0_173 = arith.constant 0 : index
    %137 = vector.load %arg14[%c0_172, %c0_173] : memref<1x64xf32, #tpu.memory_space<vmem>>, vector<1x64xf32>
    %138 = vector.broadcast %137 : vector<1x64xf32> to vector<2x64xf32>
    %139 = arith.addf %136, %138 : vector<2x64xf32>
    %cst_174 = arith.constant dense<0.000000e+00> : vector<2xf32>
    %140 = vector.multi_reduction <add>, %139, %cst_174 [1] : vector<2x64xf32> to vector<2xf32>
    %141 = vector.shape_cast %140 : vector<2xf32> to vector<2x1xf32>
    %cst_175 = arith.constant 1.562500e-02 : f32
    %142 = vector.broadcast %cst_175 : f32 to vector<2x1xf32>
    %143 = arith.mulf %141, %142 : vector<2x1xf32>
    %144 = vector.broadcast %143 : vector<2x1xf32> to vector<2x64xf32>
    %145 = arith.subf %139, %144 : vector<2x64xf32>
    %146 = arith.mulf %145, %145 : vector<2x64xf32>
    %cst_176 = arith.constant dense<0.000000e+00> : vector<2xf32>
    %147 = vector.multi_reduction <add>, %146, %cst_176 [1] : vector<2x64xf32> to vector<2xf32>
    %148 = vector.shape_cast %147 : vector<2xf32> to vector<2x1xf32>
    %cst_177 = arith.constant 0.0158730168 : f32
    %149 = vector.broadcast %cst_177 : f32 to vector<2x1xf32>
    %150 = arith.mulf %148, %149 : vector<2x1xf32>
    %151 = math.rsqrt %150 : vector<2x1xf32>
    %152 = vector.broadcast %151 : vector<2x1xf32> to vector<2x64xf32>
    %153 = arith.mulf %145, %152 : vector<2x64xf32>
    %c0_178 = arith.constant 0 : index
    %c0_179 = arith.constant 0 : index
    %154 = vector.load %arg15[%c0_178, %c0_179] : memref<2x64xf32, #tpu.memory_space<vmem>>, vector<2x64xf32>
    tpu.vector_store %arg15[%c0_178, %c0_179], %153 {strides = array<i32>} : memref<2x64xf32, #tpu.memory_space<vmem>>, vector<2x64xf32>,
    return
  }
  func.func @transform_0(%arg0: i32) -> (i32, i32) {
    %c0_i32 = arith.constant 0 : i32
    %c0_i32_0 = arith.constant 0 : i32
    return %arg0, %c0_i32 : i32, i32
  }
  func.func @transform_1(%arg0: i32) -> (i32, i32, i32, i32) {
    %c0_i32 = arith.constant 0 : i32
    %c0_i32_0 = arith.constant 0 : i32
    %c0_i32_1 = arith.constant 0 : i32
    %c0_i32_2 = arith.constant 0 : i32
    %c0_i32_3 = arith.constant 0 : i32
    return %c0_i32, %c0_i32_0, %c0_i32_1, %c0_i32_2 : i32, i32, i32, i32
  }
  func.func @transform_2(%arg0: i32) -> (i32, i32, i32, i32) {
    %c0_i32 = arith.constant 0 : i32
    %c0_i32_0 = arith.constant 0 : i32
    %c0_i32_1 = arith.constant 0 : i32
    %c0_i32_2 = arith.constant 0 : i32
    %c0_i32_3 = arith.constant 0 : i32
    return %c0_i32, %c0_i32_0, %c0_i32_1, %c0_i32_2 : i32, i32, i32, i32
  }
  func.func @transform_3(%arg0: i32) -> (i32, i32) {
    %c0_i32 = arith.constant 0 : i32
    %c0_i32_0 = arith.constant 0 : i32
    %c0_i32_1 = arith.constant 0 : i32
    return %c0_i32, %c0_i32_0 : i32, i32
  }
  func.func @transform_4(%arg0: i32) -> (i32, i32, i32) {
    %c0_i32 = arith.constant 0 : i32
    %c0_i32_0 = arith.constant 0 : i32
    %c0_i32_1 = arith.constant 0 : i32
    %c0_i32_2 = arith.constant 0 : i32
    return %c0_i32, %c0_i32_0, %c0_i32_1 : i32, i32, i32
  }
  func.func @transform_5(%arg0: i32) -> (i32, i32, i32) {
    %c0_i32 = arith.constant 0 : i32
    %c0_i32_0 = arith.constant 0 : i32
    %c0_i32_1 = arith.constant 0 : i32
    %c0_i32_2 = arith.constant 0 : i32
    return %c0_i32, %c0_i32_0, %c0_i32_1 : i32, i32, i32
  }
  func.func @transform_6(%arg0: i32) -> (i32, i32, i32) {
    %c0_i32 = arith.constant 0 : i32
    %c0_i32_0 = arith.constant 0 : i32
    %c0_i32_1 = arith.constant 0 : i32
    %c0_i32_2 = arith.constant 0 : i32
    return %c0_i32, %c0_i32_0, %c0_i32_1 : i32, i32, i32
  }
  func.func @transform_7(%arg0: i32) -> (i32, i32, i32) {
    %c0_i32 = arith.constant 0 : i32
    %c0_i32_0 = arith.constant 0 : i32
    %c0_i32_1 = arith.constant 0 : i32
    %c0_i32_2 = arith.constant 0 : i32
    return %c0_i32, %c0_i32_0, %c0_i32_1 : i32, i32, i32
  }
  func.func @transform_8(%arg0: i32) -> (i32, i32) {
    %c0_i32 = arith.constant 0 : i32
    %c0_i32_0 = arith.constant 0 : i32
    %c0_i32_1 = arith.constant 0 : i32
    return %c0_i32, %c0_i32_0 : i32, i32
  }
  func.func @transform_9(%arg0: i32) -> (i32, i32, i32) {
    %c0_i32 = arith.constant 0 : i32
    %c0_i32_0 = arith.constant 0 : i32
    %c0_i32_1 = arith.constant 0 : i32
    %c0_i32_2 = arith.constant 0 : i32
    return %c0_i32, %c0_i32_0, %c0_i32_1 : i32, i32, i32
  }
  func.func @transform_10(%arg0: i32) -> (i32, i32, i32) {
    %c0_i32 = arith.constant 0 : i32
    %c0_i32_0 = arith.constant 0 : i32
    %c0_i32_1 = arith.constant 0 : i32
    %c0_i32_2 = arith.constant 0 : i32
    return %c0_i32, %c0_i32_0, %c0_i32_1 : i32, i32, i32
  }
  func.func @transform_11(%arg0: i32) -> (i32, i32, i32) {
    %c0_i32 = arith.constant 0 : i32
    %c0_i32_0 = arith.constant 0 : i32
    %c0_i32_1 = arith.constant 0 : i32
    %c0_i32_2 = arith.constant 0 : i32
    return %c0_i32, %c0_i32_0, %c0_i32_1 : i32, i32, i32
  }
  func.func @transform_12(%arg0: i32) -> (i32, i32, i32) {
    %c0_i32 = arith.constant 0 : i32
    %c0_i32_0 = arith.constant 0 : i32
    %c0_i32_1 = arith.constant 0 : i32
    %c0_i32_2 = arith.constant 0 : i32
    return %c0_i32, %c0_i32_0, %c0_i32_1 : i32, i32, i32
  }
  func.func @transform_13(%arg0: i32) -> (i32, i32) {
    %c0_i32 = arith.constant 0 : i32
    %c0_i32_0 = arith.constant 0 : i32
    %c0_i32_1 = arith.constant 0 : i32
    return %c0_i32, %c0_i32_0 : i32, i32
  }
  func.func @transform_14(%arg0: i32) -> (i32, i32) {
    %c0_i32 = arith.constant 0 : i32
    %c0_i32_0 = arith.constant 0 : i32
    return %arg0, %c0_i32 : i32, i32
  }
}

</mosaic_0001>

<bundles_post_ra>
// kernel: tile.14
= control target key start
LH: loop header
LB: loop body
LE: loop exit
PB: predicated region body
PF: predicated region fallthrough
CT: control target
= control target key end

     0   :  { %s28_s0 = inlined_call_operand.vmem [shape: f32[16], index: 0, kind: input, shape index: {}]   ;;  %s29_s1 = inlined_call_operand.vmem [shape: f32[16,16], index: 1, kind: output, shape index: {}]  }
   0x1   :  { %v4_v0 = vld [vmem:[%s28_s0] ss:$0 sm:$0xff] }
   0x2   :  { %5 = vst [vmem:[%s29_s1] sm:$0xff] %v4_v0  ;;  %8 = vst [vmem:[%s29_s1 + $0x8] sm:$0xff] %v4_v0 }

// kernel: tile.19
= control target key start
LH: loop header
LB: loop body
LE: loop exit
PB: predicated region body
PF: predicated region fallthrough
CT: control target
= control target key end

     0   :  { %s22_s0 = inlined_call_operand.vmem [shape: f32[32], index: 0, kind: input, shape index: {}]   ;;  %s23_s1 = inlined_call_operand.vmem [shape: f32[4,32], index: 1, kind: output, shape index: {}]  }
   0x1   :  { %v4_v0 = vld [vmem:[%s22_s0] ss:$0 sm:$0xff] }
   0x2   :  { %5 = vst [vmem:[%s23_s1] sm:$0xf] %v4_v0 }

// kernel: tile.15
= control target key start
LH: loop header
LB: loop body
LE: loop exit
PB: predicated region body
PF: predicated region fallthrough
CT: control target
= control target key end

     0   :  { %s7_s6 = smov 3  ;;  %s21_s9 = smov 3  ;;  %vm4_vm0 = vcmask 130048   ;;  %vm11_vm1 = vcmask 1048448   ;;  %vm18_vm2 = vcmask 917248   ;;  %vm25_vm3 = vcmask 786048   ;;  %s131_s0 = inlined_call_operand.vmem [shape: f32[16,16], index: 0, kind: input, shape index: {}]   ;;  %s132_s1 = inlined_call_operand.vmem [shape: f32[1,256], index: 1, kind: output, shape index: {}]  }
   0x1   :  { %v69_v0 = vld [vmem:[%s131_s0 + $0x7] ss:$8 sm:%s7_s6]   ;;  %s84_s10 = smov 112   ;;  %v71_v1 = vld [vmem:[%s131_s0 + $0x5] ss:$8 sm:%s21_s9]   ;;  %s14_s13 = smov 3 }
   0x2   :  { %9 = vrot.lane.b32.xlu0 %v69_v0, %s84_s10  ;;  %s85_s14 = smov 80   ;;  %v70_v2 = vld [vmem:[%s131_s0 + $0x6] ss:$8 sm:%s14_s13]   ;;  %s28_s17 = smov 3  ;;  %vm32_vm4 = vcmask 654848   ;;  %vm39_vm5 = vcmask 523648  }
   0x3   :  { %23 = vrot.lane.b32.xlu1 %v71_v1, %s85_s14  ;;  %v72_v3 = vld [vmem:[%s131_s0 + $0x4] ss:$8 sm:%s28_s17]   ;;  %s35_s20 = smov 3  ;;  %s42_s21 = smov 3  ;;  %vm46_vm6 = vcmask 392448   ;;  %vm53_vm7 = vcmask 261248  }
   0x4   :  { %s86_s22 = smov 96   ;;  %s87_s23 = smov 64   ;;  %v73_v4 = vld [vmem:[%s131_s0 + $0x3] ss:$8 sm:%s35_s20]   ;;  %v74_v5 = vld [vmem:[%s131_s0 + $0x2] ss:$8 sm:%s42_s21]  }
   0x5   :  { %s2_s26 = smov 3  ;;  %s49_s29 = smov 3 }
   0x6   :  { %16 = vrot.lane.b32.xlu0 %v70_v2, %s86_s22  ;;  %v3_v6 = vld [vmem:[%s131_s0] ss:$8 sm:%s2_s26]   ;;  %s88_s3 = smov 48   ;;  %s89_s4 = smov 32  }
   0x7   :  { %30 = vrot.lane.b32.xlu1 %v72_v3, %s87_s23  ;;  %5 = vst.msk [vmem:[#allocation0] ss:$8 sm:$0x3] %vm4_vm0, %v3_v6   ;;  %v75_v7 = vld [vmem:[%s131_s0 + $0x1] ss:$8 sm:%s49_s29]   ;;  %s90_s0 = smov 16  }
   0xa   :  { %37 = vrot.lane.b32.xlu0 %v73_v4, %s88_s3 }
   0xb   :  { %44 = vrot.lane.b32.xlu1 %v74_v5, %s89_s4 }
   0xe   :  { %51 = vrot.lane.b32.xlu0 %v75_v7, %s90_s0 }
  0x74   :  { %v10_v8 = vpop.permute.xlu0 %9  }
  0x75   :  { %12 = vst.msk [vmem:[#allocation0] ss:$8 sm:$0x3] %vm11_vm1, %v10_v8   ;;  %v24_v9 = vpop.permute.xlu1 %23  }
  0x78   :  { %v17_v10 = vpop.permute.xlu0 %16  }
  0x79   :  { %19 = vst.msk [vmem:[#allocation0] ss:$8 sm:$0x3] %vm18_vm2, %v17_v10   ;;  %v31_v11 = vpop.permute.xlu1 %30  }
  0x7a   :  { %26 = vst.msk [vmem:[#allocation0] ss:$8 sm:$0x3] %vm25_vm3, %v24_v9  }
  0x7b   :  { %33 = vst.msk [vmem:[#allocation0] ss:$8 sm:$0x3] %vm32_vm4, %v31_v11  }
  0x7c   :  { %v38_v12 = vpop.permute.xlu0 %37  }
  0x7d   :  { %40 = vst.msk [vmem:[#allocation0] ss:$8 sm:$0x3] %vm39_vm5, %v38_v12   ;;  %v45_v13 = vpop.permute.xlu1 %44  }
  0x7e   :  { %47 = vst.msk [vmem:[#allocation0] ss:$8 sm:$0x3] %vm46_vm6, %v45_v13  }
  0x80   :  { %v52_v14 = vpop.permute.xlu0 %51  }
  0x81   :  { %54 = vst.msk [vmem:[#allocation0] ss:$8 sm:$0x3] %vm53_vm7, %v52_v14  }
  0x88   :  { %v59_v15 = vld [vmem:[#allocation0] sm:$0x1]  ;;  %v64_v16 = vld [vmem:[#allocation0 + $0x8] sm:$0x1] }
  0x89   :  { %62 = vst [vmem:[%s132_s1] sm:$0x1] %v59_v15  ;;  %76 = vst [vmem:[%s132_s1 + $0x1] sm:$0x1] %v64_v16 }

// kernel: tile.20
= control target key start
LH: loop header
LB: loop body
LE: loop exit
PB: predicated region body
PF: predicated region fallthrough
CT: control target
= control target key end

     0   :  { %vm8_vm0 = vcmask 261120   ;;  %s40_s8 = smov 32   ;;  %s41_s9 = smov 64   ;;  %vm14_vm1 = vcmask 1048320   ;;  %vm20_vm2 = vcmask 785920   ;;  %vm26_vm3 = vcmask 523520   ;;  %s58_s0 = inlined_call_operand.vmem [shape: f32[4,32], index: 0, kind: input, shape index: {}]   ;;  %s59_s1 = inlined_call_operand.vmem [shape: f32[1,128], index: 1, kind: output, shape index: {}]  }
   0x1   :  { %v5_v0 = vld [vmem:[%s58_s0] sm:$0xf]  ;;  %s39_s0 = smov 96  }
   0x2   :  { %6 = vst [vmem:[#allocation1] sm:$0xf] %v5_v0 }
   0x9   :  { %v11_v1 = vld [vmem:[#allocation1 + $0x3] sm:$0x1]   ;;  %v23_v2 = vld [vmem:[#allocation1 + $0x1] sm:$0x1]   ;;  %v7_v3 = vld [vmem:[#allocation1] sm:$0x1]  }
   0xa   :  { %12 = vrot.lane.b32.xlu0 %v11_v1, %s39_s0  ;;  %24 = vrot.lane.b32.xlu1 %v23_v2, %s40_s8  ;;  %v17_v4 = vld [vmem:[#allocation1 + $0x2] sm:$0x1]   ;;  %9 = vst.msk [vmem:[#allocation0] sm:$0x1] %vm8_vm0, %v7_v3  }
   0xe   :  { %18 = vrot.lane.b32.xlu0 %v17_v4, %s41_s9 }
  0x7c   :  { %v13_v5 = vpop.permute.xlu0 %12   ;;  %v25_v6 = vpop.permute.xlu1 %24  }
  0x7d   :  { %15 = vst.msk [vmem:[#allocation0] sm:$0x1] %vm14_vm1, %v13_v5  }
  0x80   :  { %v19_v7 = vpop.permute.xlu0 %18  }
  0x81   :  { %21 = vst.msk [vmem:[#allocation0] sm:$0x1] %vm20_vm2, %v19_v7  }
  0x82   :  { %27 = vst.msk [vmem:[#allocation0] sm:$0x1] %vm26_vm3, %v25_v6  }
  0x89   :  { %v32_v8 = vld [vmem:[#allocation0] sm:$0x1] }
  0x8a   :  { %35 = vst [vmem:[%s59_s1] sm:$0x1] %v32_v8 }

// kernel: observation_encoder_forward.1
= control target key start
LH: loop header
LB: loop body
LE: loop exit
PB: predicated region body
PF: predicated region fallthrough
CT: control target
= control target key end

     0   :  { %v4673_v1 = vmov 0.0   ;;  %s6863_s0 = inlined_call_operand.vmem [shape: f32[192,32], index: 0, kind: input, shape index: {}]   ;;  %s6864_s1 = inlined_call_operand.vmem [shape: f32[3,3,32,192], index: 1, kind: input, shape index: {}]   ;;  %s6865_s2 = inlined_call_operand.vmem [shape: f32[3,3,32,256], index: 2, kind: input, shape index: {}]   ;;  %s6866_s3 = inlined_call_operand.vmem [shape: f32[1,256], index: 3, kind: input, shape index: {}]   ;;  %s6867_s4 = inlined_call_operand.vmem [shape: f32[2,16,32], index: 4, kind: input, shape index: {}]   ;;  %s6868_s5 = inlined_call_operand.vmem [shape: f32[2,256,128], index: 5, kind: input, shape index: {}]   ;;  %s6869_s6 = inlined_call_operand.vmem [shape: f32[3,8,16], index: 6, kind: input, shape index: {}]   ;;  %s6870_s7 = inlined_call_operand.vmem [shape: f32[3,128,128], index: 7, kind: input, shape index: {}]   ;;  %s6871_s8 = inlined_call_operand.vmem [shape: f32[1,128], index: 8, kind: input, shape index: {}]   ;;  %s6872_s9 = inlined_call_operand.vmem [shape: f32[2,4,8], index: 9, kind: input, shape index: {}]   ;;  %s6873_s10 = inlined_call_operand.vmem [shape: f32[2,128,64], index: 10, kind: input, shape index: {}]   ;;  %s6874_s11 = inlined_call_operand.vmem [shape: f32[3,2,4], index: 11, kind: input, shape index: {}]   ;;  %s6875_s12 = inlined_call_operand.vmem [shape: f32[3,64,64], index: 12, kind: input, shape index: {}]   ;;  %s6876_s13 = inlined_call_operand.vmem [shape: f32[1,64], index: 13, kind: input, shape index: {}]   ;;  %s6877_s14 = inlined_call_operand.hbm [shape: f32[2,64], index: 14, kind: output, shape index: {}]  }
   0x1   :  { %v4754_v0 = vld [vmem:[%s6863_s0 + $0x78] sm:$0xff]  ;;  %93 = vmatprep.subr.mxu0 %v4673_v1  ;;  %207 = vmatprep.subr.mxu1 %v4673_v1  ;;  %v4761_v2 = vld [vmem:[%s6863_s0 + $0x70] sm:$0xff]  ;;  %v4770_v3 = vld [vmem:[%s6863_s0 + $0x68] sm:$0xff] }
   0x2   :  { %94 = vmatpush1.msra.mxu0 %v4754_v0  ;;  %208 = vmatpush1.msra.mxu1 %v4754_v0  ;;  %v4779_v4 = vld [vmem:[%s6863_s0 + $0x60] sm:$0xff]  ;;  %v4788_v5 = vld [vmem:[%s6863_s0 + $0x58] sm:$0xff]  ;;  %v4797_v6 = vld [vmem:[%s6863_s0 + $0x50] sm:$0xff] }
   0x3   :  { %95 = vmatprep.subr.mxu0 %v4673_v1  ;;  %209 = vmatprep.subr.mxu1 %v4673_v1  ;;  %v4806_v7 = vld [vmem:[%s6863_s0 + $0x48] sm:$0xff]  ;;  %v4815_v8 = vld [vmem:[%s6863_s0 + $0x40] sm:$0xff]  ;;  %v4824_v9 = vld [vmem:[%s6863_s0 + $0x38] sm:$0xff] }
   0x4   :  { %96 = vmatpush1.msra.mxu0 %v4761_v2  ;;  %210 = vmatpush1.msra.mxu1 %v4761_v2  ;;  %v4833_v10 = vld [vmem:[%s6863_s0 + $0x30] sm:$0xff] }
   0x5   :  { %97 = vmatprep.subr.mxu0 %v4673_v1  ;;  %211 = vmatprep.subr.mxu1 %v4673_v1 }
   0x6   :  { %98 = vmatpush1.msra.mxu0 %v4770_v3  ;;  %212 = vmatpush1.msra.mxu1 %v4770_v3 }
   0x7   :  { %99 = vmatprep.subr.mxu0 %v4673_v1  ;;  %213 = vmatprep.subr.mxu1 %v4673_v1 }
   0x8   :  { %100 = vmatpush1.msra.mxu0 %v4779_v4  ;;  %214 = vmatpush1.msra.mxu1 %v4779_v4 }
   0x9   :  { %101 = vmatprep.subr.mxu0 %v4673_v1  ;;  %215 = vmatprep.subr.mxu1 %v4673_v1 }
   0xa   :  { %102 = vmatpush1.msra.mxu0 %v4788_v5  ;;  %216 = vmatpush1.msra.mxu1 %v4788_v5 }
   0xb   :  { %103 = vmatprep.subr.mxu0 %v4673_v1  ;;  %217 = vmatprep.subr.mxu1 %v4673_v1 }
   0xc   :  { %104 = vmatpush1.msra.mxu0 %v4797_v6  ;;  %218 = vmatpush1.msra.mxu1 %v4797_v6 }
   0xd   :  { %105 = vmatprep.subr.mxu0 %v4673_v1  ;;  %219 = vmatprep.subr.mxu1 %v4673_v1 }
   0xe   :  { %106 = vmatpush1.msra.mxu0 %v4806_v7  ;;  %220 = vmatpush1.msra.mxu1 %v4806_v7 }
   0xf   :  { %107 = vmatprep.subr.mxu0 %v4673_v1  ;;  %221 = vmatprep.subr.mxu1 %v4673_v1 }
  0x10   :  { %108 = vmatpush1.msra.mxu0 %v4815_v8  ;;  %222 = vmatpush1.msra.mxu1 %v4815_v8 }
  0x11   :  { %109 = vmatprep.subr.mxu0 %v4673_v1  ;;  %223 = vmatprep.subr.mxu1 %v4673_v1 }
  0x12   :  { %110 = vmatpush1.msra.mxu0 %v4824_v9  ;;  %224 = vmatpush1.msra.mxu1 %v4824_v9 }
  0x13   :  { %19 = vsyncpa [#allocation3], 0  ;;  %111 = vmatprep.subr.mxu0 %v4673_v1  ;;  %225 = vmatprep.subr.mxu1 %v4673_v1  ;;  %v4842_v11 = vld [vmem:[%s6863_s0 + $0x28] sm:$0xff]  ;;  %v4851_v12 = vld [vmem:[%s6863_s0 + $0x20] sm:$0xff]  ;;  %vm80_vm0 = vcmask 523264   ;;  %vm301_vm1 = vcmask 261120  }
  0x14   :  { %112 = vmatpush1.msra.mxu0 %v4833_v10  ;;  %226 = vmatpush1.msra.mxu1 %v4833_v10  ;;  %v4860_v13 = vld [vmem:[%s6863_s0 + $0x18] sm:$0xff]  ;;  %v4869_v14 = vld [vmem:[%s6863_s0 + $0x10] sm:$0xff]  ;;  %v4878_v15 = vld [vmem:[%s6863_s0 + $0x8] sm:$0xff]  ;;  %vm4674_vm2 = vmmov 0   ;;  %vm2485_vm3 = vcmask 130048   ;;  %vm2979_vm4 = vcmask 64512  }
  0x15   :  { %113 = vmatprep.subr.mxu0 %v4673_v1  ;;  %227 = vmatprep.subr.mxu1 %v4673_v1  ;;  %v4887_v16 = vld [vmem:[%s6863_s0] sm:$0xff]  ;;  %v4896_v17 = vld [vmem:[%s6863_s0 + $0xb8] sm:$0xff]  ;;  %v4905_v18 = vld [vmem:[%s6863_s0 + $0xb0] sm:$0xff]  ;;  %vm3308_vm5 = vcmask 1043456   ;;  %vm3304_vm6 = vcmask 31744   ;;  %vm3786_vm7 = vcmask 517120  }
  0x16   :  { %114 = vmatpush1.msra.mxu0 %v4842_v11  ;;  %228 = vmatpush1.msra.mxu1 %v4842_v11  ;;  %v4914_v19 = vld [vmem:[%s6863_s0 + $0xa8] sm:$0xff]  ;;  %v4923_v20 = vld [vmem:[%s6863_s0 + $0xa0] sm:$0xff]  ;;  %v4932_v21 = vld [vmem:[%s6863_s0 + $0x98] sm:$0xff] }
  0x17   :  { %115 = vmatprep.subr.mxu0 %v4673_v1  ;;  %229 = vmatprep.subr.mxu1 %v4673_v1  ;;  %v4941_v22 = vld [vmem:[%s6863_s0 + $0x90] sm:$0xff]  ;;  %v4950_v23 = vld [vmem:[%s6863_s0 + $0x88] sm:$0xff]  ;;  %v4959_v24 = vld [vmem:[%s6863_s0 + $0x80] sm:$0xff] }
  0x18   :  { %116 = vmatpush1.msra.mxu0 %v4851_v12  ;;  %230 = vmatpush1.msra.mxu1 %v4851_v12  ;;  %v73_v25 = vld [vmem:[%s6864_s1 + $0x8] sm:$0xff]  ;;  %v72_v27 = vld [vmem:[%s6864_s1] sm:$0xff]  ;;  %v75_v29 = vld [vmem:[%s6864_s1 + $0x18] sm:$0xff] }
  0x19   :  { %117 = vmatprep.subr.mxu0 %v4673_v1  ;;  %231 = vmatprep.subr.mxu1 %v4673_v1  ;;  %v3819_v26 = vld [vmem:[%s6864_s1 + $0x48] sm:$0xff]  ;;  %v3818_v28 = vld [vmem:[%s6864_s1 + $0x40] sm:$0xff]  ;;  %v3821_v30 = vld [vmem:[%s6864_s1 + $0x58] sm:$0xff] }
  0x1a   :  { %118 = vmatpush1.msra.mxu0 %v4860_v13  ;;  %232 = vmatpush1.msra.mxu1 %v4860_v13  ;;  %v3837_v31 = vld [vmem:[%s6865_s2 + $0x78] sm:$0xff]  ;;  %v3836_v33 = vld [vmem:[%s6865_s2 + $0x70] sm:$0xff]  ;;  %v77_v37 = vld [vmem:[%s6864_s1 + $0x28] sm:$0xff] }
  0x1b   :  { %119 = vmatprep.subr.mxu0 %v4673_v1  ;;  %233 = vmatprep.subr.mxu1 %v4673_v1  ;;  %v185_v32 = vld [vmem:[%s6865_s2 + $0x38] sm:$0xff]  ;;  %v184_v34 = vld [vmem:[%s6865_s2 + $0x30] sm:$0xff]  ;;  %v3823_v38 = vld [vmem:[%s6864_s1 + $0x68] sm:$0xff] }
  0x1c   :  { %120 = vmatpush1.msra.mxu0 %v4869_v14  ;;  %234 = vmatpush1.msra.mxu1 %v4869_v14  ;;  %v74_v35 = vld [vmem:[%s6864_s1 + $0x10] sm:$0xff]  ;;  %v3835_v39 = vld [vmem:[%s6865_s2 + $0x68] sm:$0xff]  ;;  %v3834_v41 = vld [vmem:[%s6865_s2 + $0x60] sm:$0xff] }
  0x1d   :  { %121 = vmatprep.subr.mxu0 %v4673_v1  ;;  %235 = vmatprep.subr.mxu1 %v4673_v1  ;;  %v3820_v36 = vld [vmem:[%s6864_s1 + $0x50] sm:$0xff]  ;;  %v183_v40 = vld [vmem:[%s6865_s2 + $0x28] sm:$0xff]  ;;  %v182_v42 = vld [vmem:[%s6865_s2 + $0x20] sm:$0xff] }
  0x1e   :  { %122 = vmatpush1.msra.mxu0 %v4878_v15  ;;  %236 = vmatpush1.msra.mxu1 %v4878_v15  ;;  %v76_v43 = vld [vmem:[%s6864_s1 + $0x20] sm:$0xff]  ;;  %v79_v45 = vld [vmem:[%s6864_s1 + $0x38] sm:$0xff]  ;;  %v3832_v49 = vld [vmem:[%s6865_s2 + $0x50] sm:$0xff] }
  0x1f   :  { %123 = vmatprep.subr.mxu0 %v4673_v1  ;;  %237 = vmatprep.subr.mxu1 %v4673_v1  ;;  %v3822_v44 = vld [vmem:[%s6864_s1 + $0x60] sm:$0xff]  ;;  %v3825_v46 = vld [vmem:[%s6864_s1 + $0x78] sm:$0xff]  ;;  %v180_v50 = vld [vmem:[%s6865_s2 + $0x10] sm:$0xff] }
  0x20   :  { %124 = vmatpush1.msra.mxu0 %v4887_v16  ;;  %238 = vmatpush1.msra.mxu1 %v4887_v16  ;;  %v3833_v47 = vld [vmem:[%s6865_s2 + $0x58] sm:$0xff]  ;;  %v78_v51 = vld [vmem:[%s6864_s1 + $0x30] sm:$0xff]  ;;  %v3831_v53 = vld [vmem:[%s6865_s2 + $0x48] sm:$0xff] }
  0x21   :  { %141 = vmatprep.subr.mxu0 %v4673_v1  ;;  %255 = vmatprep.subr.mxu1 %v4673_v1  ;;  %v181_v48 = vld [vmem:[%s6865_s2 + $0x18] sm:$0xff]  ;;  %v3824_v52 = vld [vmem:[%s6864_s1 + $0x70] sm:$0xff]  ;;  %v179_v54 = vld [vmem:[%s6865_s2 + $0x8] sm:$0xff] }
  0x22   :  { %142 = vmatpush2.msra.mxu0 %v4896_v17  ;;  %256 = vmatpush2.msra.mxu1 %v4896_v17  ;;  %v3830_v55 = vld [vmem:[%s6865_s2 + $0x40] sm:$0xff] }
  0x23   :  { %143 = vmatprep.subr.mxu0 %v4673_v1  ;;  %257 = vmatprep.subr.mxu1 %v4673_v1  ;;  %v178_v56 = vld [vmem:[%s6865_s2] sm:$0xff] }
  0x24   :  { %144 = vmatpush2.msra.mxu0 %v4905_v18  ;;  %258 = vmatpush2.msra.mxu1 %v4905_v18 }
  0x25   :  { %145 = vmatprep.subr.mxu0 %v4673_v1  ;;  %259 = vmatprep.subr.mxu1 %v4673_v1 }
  0x26   :  { %146 = vmatpush2.msra.mxu0 %v4914_v19  ;;  %260 = vmatpush2.msra.mxu1 %v4914_v19 }
  0x27   :  { %147 = vmatprep.subr.mxu0 %v4673_v1  ;;  %261 = vmatprep.subr.mxu1 %v4673_v1 }
  0x28   :  { %148 = vmatpush2.msra.mxu0 %v4923_v20  ;;  %262 = vmatpush2.msra.mxu1 %v4923_v20 }
  0x29   :  { %149 = vmatprep.subr.mxu0 %v4673_v1  ;;  %263 = vmatprep.subr.mxu1 %v4673_v1 }
  0x2a   :  { %150 = vmatpush2.msra.mxu0 %v4932_v21  ;;  %264 = vmatpush2.msra.mxu1 %v4932_v21 }
  0x2b   :  { %151 = vmatprep.subr.mxu0 %v4673_v1  ;;  %265 = vmatprep.subr.mxu1 %v4673_v1 }
  0x2c   :  { %152 = vmatpush2.msra.mxu0 %v4941_v22  ;;  %266 = vmatpush2.msra.mxu1 %v4941_v22 }
  0x2d   :  { %153 = vmatprep.subr.mxu0 %v4673_v1  ;;  %267 = vmatprep.subr.mxu1 %v4673_v1 }
  0x2e   :  { %154 = vmatpush2.msra.mxu0 %v4950_v23  ;;  %268 = vmatpush2.msra.mxu1 %v4950_v23 }
  0x2f   :  { %155 = vmatprep.subr.mxu0 %v4673_v1  ;;  %269 = vmatprep.subr.mxu1 %v4673_v1 }
  0x30   :  { %156 = vmatpush2.msra.mxu0 %v4959_v24  ;;  %3814 = vmatprep.mubr.msk.f32.mxu0 %vm80_vm0, %v73_v25 }
  0x31   :  { %270 = vmatpush2.msra.mxu1 %v4959_v24  ;;  %3826 = vmatprep.mubr.msk.f32.mxu1 %vm80_vm0, %v3819_v26 }
  0x32   :  { %158 = vmatmul.mubr.f32.vlgmr.msra.gmra.mxu0 %v72_v27  ;;  %272 = vmatmul.mubr.f32.vlgmr.msra.gmra.mxu1 %v3818_v28 }
  0x33   :  { %3815 = vmatprep.mubr.msk.f32.mxu0 %vm80_vm0, %v75_v29  ;;  %3827 = vmatprep.mubr.msk.f32.mxu1 %vm80_vm0, %v3821_v30 }
  0x34   :  { %338 = vmatprep.subr.mxu0 %v3837_v31  ;;  %439 = vmatprep.subr.mxu1 %v185_v32  ;;  %v3847_v32 = vld [vmem:[%s6864_s1 + $0x88] sm:$0xff] }
  0x35   :  { %339 = vmatpush1.msra.mxu0 %v3836_v33  ;;  %440 = vmatpush1.msra.mxu1 %v184_v34 }
  0x36   :  { %163 = vmatmul.mubr.f32.gmra.mxu0 %v74_v35  ;;  %277 = vmatmul.mubr.f32.gmra.mxu1 %v3820_v36  ;;  %v3846_v35 = vld [vmem:[%s6864_s1 + $0x80] sm:$0xff]  ;;  %v3849_v36 = vld [vmem:[%s6864_s1 + $0x98] sm:$0xff] }
  0x37   :  { %3816 = vmatprep.mubr.msk.f32.mxu0 %vm80_vm0, %v77_v37  ;;  %3828 = vmatprep.mubr.msk.f32.mxu1 %vm80_vm0, %v3823_v38  ;;  %v3848_v37 = vld [vmem:[%s6864_s1 + $0x90] sm:$0xff]  ;;  %v3851_v38 = vld [vmem:[%s6864_s1 + $0xa8] sm:$0xff] }
  0x38   :  { %340 = vmatprep.subr.mxu0 %v3835_v39  ;;  %441 = vmatprep.subr.mxu1 %v183_v40  ;;  %v3850_v39 = vld [vmem:[%s6864_s1 + $0xa0] sm:$0xff]  ;;  %v3853_v40 = vld [vmem:[%s6864_s1 + $0xb8] sm:$0xff] }
  0x39   :  { %341 = vmatpush1.msra.mxu0 %v3834_v41  ;;  %442 = vmatpush1.msra.mxu1 %v182_v42  ;;  %v3852_v41 = vld [vmem:[%s6864_s1 + $0xb0] sm:$0xff]  ;;  %v3865_v42 = vld [vmem:[%s6865_s2 + $0xb8] sm:$0xff] }
  0x3a   :  { %168 = vmatmul.mubr.f32.gmra.mxu0 %v76_v43  ;;  %282 = vmatmul.mubr.f32.gmra.mxu1 %v3822_v44  ;;  %v3864_v43 = vld [vmem:[%s6865_s2 + $0xb0] sm:$0xff]  ;;  %v3863_v44 = vld [vmem:[%s6865_s2 + $0xa8] sm:$0xff] }
  0x3b   :  { %3817 = vmatprep.mubr.msk.f32.mxu0 %vm80_vm0, %v79_v45  ;;  %3829 = vmatprep.mubr.msk.f32.mxu1 %vm80_vm0, %v3825_v46  ;;  %v3862_v45 = vld [vmem:[%s6865_s2 + $0xa0] sm:$0xff]  ;;  %v3861_v46 = vld [vmem:[%s6865_s2 + $0x98] sm:$0xff] }
  0x3c   :  { %342 = vmatprep.subr.mxu0 %v3833_v47  ;;  %443 = vmatprep.subr.mxu1 %v181_v48  ;;  %v3860_v47 = vld [vmem:[%s6865_s2 + $0x90] sm:$0xff]  ;;  %v3859_v48 = vld [vmem:[%s6865_s2 + $0x88] sm:$0xff] }
  0x3d   :  { %343 = vmatpush1.msra.mxu0 %v3832_v49  ;;  %444 = vmatpush1.msra.mxu1 %v180_v50  ;;  %v3858_v49 = vld [vmem:[%s6865_s2 + $0x80] sm:$0xff] }
  0x3e   :  { %173 = vmatmul.mubr.f32.gmra.mxu0 %v78_v51  ;;  %287 = vmatmul.mubr.f32.gmra.mxu1 %v3824_v52 }
  0x3f   :  { %344 = vmatprep.subr.mxu0 %v3831_v53  ;;  %445 = vmatprep.subr.mxu1 %v179_v54 }
  0x40   :  { %345 = vmatpush1.msra.mxu0 %v3830_v55  ;;  %378 = vmatprep.mubr.f32.mxu0 %v4673_v1 }
  0x41   :  { %479 = vmatprep.mubr.f32.mxu1 %v4673_v1  ;;  %525 = vmatprep.subr.mxu0 %v4673_v1 }
  0x42   :  { %446 = vmatpush1.msra.mxu1 %v178_v56 }
  0x43   :  { %655 = vmatprep.subr.mxu1 %v3865_v42  ;;  %v3870_v42 = vld [vmem:[%s6864_s1 + $0xc0] sm:$0xff] }
  0xf2   :  { %v159_v57 = vpop.f32.mrf.mxu0  ;;  %v273_v58 = vpop.f32.mrf.mxu1 }
  0xf3   :  { %3838 = vmatmul.mubr.msk.f32.vlgmr.msra.gmra.mxu0 %vm301_vm1, %v273_v58  ;;  %3842 = vmatmul.mubr.msk.f32.vlgmr.msra.gmra.mxu1 %vm301_vm1, %v159_v57 }
  0xf4   :  { %526 = vmatpush1.msra.mxu0 %v4754_v0  ;;  %v275_v59 = vpop.f32.mrf.mxu1  ;;  %v161_v60 = vpop.f32.mrf.mxu0  ;;  %384 = vmatprep.mubr.f32.mxu0 %v4673_v1 }
  0xf5   :  { %527 = vmatprep.subr.mxu0 %v4673_v1  ;;  %485 = vmatprep.mubr.f32.mxu1 %v4673_v1 }
  0xf6   :  { %528 = vmatpush1.msra.mxu0 %v4761_v2  ;;  %v164_v61 = vpop.f32.mrf.mxu0  ;;  %v278_v62 = vpop.f32.mrf.mxu1  ;;  %656 = vmatpush1.msra.mxu1 %v3864_v43  ;;  %v3873_v43 = vld [vmem:[%s6864_s1 + $0xd8] sm:$0xff] }
  0xf7   :  { %529 = vmatprep.subr.mxu0 %v4673_v1  ;;  %3839 = vmatmul.mubr.msk.f32.gmra.mxu0 %vm301_vm1, %v278_v62 }
  0xf8   :  { %530 = vmatpush1.msra.mxu0 %v4770_v3  ;;  %3843 = vmatmul.mubr.msk.f32.gmra.mxu1 %vm301_vm1, %v164_v61  ;;  %v166_v63 = vpop.f32.mrf.mxu0  ;;  %v280_v25 = vpop.f32.mrf.mxu1 }
  0xf9   :  { %531 = vmatprep.subr.mxu0 %v4673_v1  ;;  %390 = vmatprep.mubr.f32.mxu0 %v4673_v1 }
  0xfa   :  { %532 = vmatpush1.msra.mxu0 %v4779_v4  ;;  %v169_v26 = vpop.f32.mrf.mxu0  ;;  %v283_v27 = vpop.f32.mrf.mxu1  ;;  %491 = vmatprep.mubr.f32.mxu1 %v4673_v1 }
  0xfb   :  { %533 = vmatprep.subr.mxu0 %v4673_v1  ;;  %3840 = vmatmul.mubr.msk.f32.gmra.mxu0 %vm301_vm1, %v283_v27 }
  0xfc   :  { %534 = vmatpush1.msra.mxu0 %v4788_v5  ;;  %3844 = vmatmul.mubr.msk.f32.gmra.mxu1 %vm301_vm1, %v169_v26  ;;  %v171_v28 = vpop.f32.mrf.mxu0  ;;  %v285_v29 = vpop.f32.mrf.mxu1 }
  0xfd   :  { %535 = vmatprep.subr.mxu0 %v4673_v1  ;;  %396 = vmatprep.mubr.f32.mxu0 %v4673_v1 }
  0xfe   :  { %536 = vmatpush1.msra.mxu0 %v4797_v6  ;;  %v174_v30 = vpop.f32.mrf.mxu0  ;;  %v288_v31 = vpop.f32.mrf.mxu1  ;;  %497 = vmatprep.mubr.f32.mxu1 %v4673_v1 }
  0xff   :  { %537 = vmatprep.subr.mxu0 %v4673_v1  ;;  %3841 = vmatmul.mubr.msk.f32.gmra.mxu0 %vm301_vm1, %v288_v31 }
 0x100   :  { %538 = vmatpush1.msra.mxu0 %v4806_v7  ;;  %3845 = vmatmul.mubr.msk.f32.gmra.mxu1 %vm301_vm1, %v174_v30  ;;  %v290_v33 = vpop.f32.mrf.mxu1  ;;  %v176_v34 = vpop.f32.mrf.mxu0 }
 0x101   :  { %539 = vmatprep.subr.mxu0 %v4673_v1  ;;  %3854 = vmatprep.mubr.msk.f32.mxu0 %vm80_vm0, %v3847_v32 }
 0x102   :  { %540 = vmatpush1.msra.mxu0 %v4815_v8  ;;  %695 = vmatprep.mubr.f32.mxu1 %v4673_v1 }
 0x103   :  { %541 = vmatprep.subr.mxu0 %v4673_v1  ;;  %657 = vmatprep.subr.mxu1 %v3863_v44  ;;  %v3872_v44 = vld [vmem:[%s6864_s1 + $0xd0] sm:$0xff] }
 0x104   :  { %542 = vmatpush1.msra.mxu0 %v4824_v9  ;;  %658 = vmatpush1.msra.mxu1 %v3862_v45  ;;  %v3875_v45 = vld [vmem:[%s6864_s1 + $0xe8] sm:$0xff] }
 0x105   :  { %543 = vmatprep.subr.mxu0 %v4673_v1  ;;  %659 = vmatprep.subr.mxu1 %v3861_v46  ;;  %v3874_v46 = vld [vmem:[%s6864_s1 + $0xe0] sm:$0xff] }
 0x106   :  { %544 = vmatpush1.msra.mxu0 %v4833_v10  ;;  %660 = vmatpush1.msra.mxu1 %v3860_v47  ;;  %v3877_v47 = vld [vmem:[%s6864_s1 + $0xf8] sm:$0xff] }
 0x107   :  { %545 = vmatprep.subr.mxu0 %v4673_v1  ;;  %661 = vmatprep.subr.mxu1 %v3859_v48  ;;  %v3876_v48 = vld [vmem:[%s6864_s1 + $0xf0] sm:$0xff] }
 0x108   :  { %546 = vmatpush1.msra.mxu0 %v4842_v11  ;;  %662 = vmatpush1.msra.mxu1 %v3858_v49  ;;  %v3889_v49 = vld [vmem:[%s6865_s2 + $0xf8] sm:$0xff] }
 0x109   :  { %547 = vmatprep.subr.mxu0 %v4673_v1  ;;  %749 = vmatprep.subr.mxu1 %v4673_v1 }
 0x10a   :  { %548 = vmatpush1.msra.mxu0 %v4851_v12 }
 0x10b   :  { %549 = vmatprep.subr.mxu0 %v4673_v1 }
 0x10c   :  { %550 = vmatpush1.msra.mxu0 %v4860_v13 }
 0x10d   :  { %551 = vmatprep.subr.mxu0 %v4673_v1 }
 0x10e   :  { %552 = vmatpush1.msra.mxu0 %v4869_v14 }
 0x10f   :  { %553 = vmatprep.subr.mxu0 %v4673_v1 }
 0x110   :  { %554 = vmatpush1.msra.mxu0 %v4878_v15 }
 0x111   :  { %555 = vmatprep.subr.mxu0 %v4673_v1 }
 0x112   :  { %556 = vmatpush1.msra.mxu0 %v4887_v16 }
 0x113   :  { %573 = vmatprep.subr.mxu0 %v4673_v1 }
 0x114   :  { %574 = vmatpush2.msra.mxu0 %v4896_v17 }
 0x115   :  { %575 = vmatprep.subr.mxu0 %v4673_v1 }
 0x116   :  { %576 = vmatpush2.msra.mxu0 %v4905_v18 }
 0x117   :  { %577 = vmatprep.subr.mxu0 %v4673_v1 }
 0x118   :  { %578 = vmatpush2.msra.mxu0 %v4914_v19 }
 0x119   :  { %579 = vmatprep.subr.mxu0 %v4673_v1 }
 0x11a   :  { %580 = vmatpush2.msra.mxu0 %v4923_v20 }
 0x11b   :  { %581 = vmatprep.subr.mxu0 %v4673_v1 }
 0x11c   :  { %582 = vmatpush2.msra.mxu0 %v4932_v21 }
 0x11d   :  { %583 = vmatprep.subr.mxu0 %v4673_v1 }
 0x11e   :  { %584 = vmatpush2.msra.mxu0 %v4941_v22 }
 0x11f   :  { %585 = vmatprep.subr.mxu0 %v4673_v1 }
 0x120   :  { %586 = vmatpush2.msra.mxu0 %v4950_v23 }
 0x121   :  { %587 = vmatprep.subr.mxu0 %v4673_v1 }
 0x122   :  { %588 = vmatpush2.msra.mxu0 %v4959_v24 }
 0x123   :  { %590 = vmatmul.mubr.f32.vlgmr.msra.gmra.mxu0 %v3846_v35  ;;  %879 = vmatprep.subr.mxu0 %v3889_v49 }
 0x124   :  { %3855 = vmatprep.mubr.msk.f32.mxu0 %vm80_vm0, %v3849_v36 }
 0x127   :  { %595 = vmatmul.mubr.f32.gmra.mxu0 %v3848_v37 }
 0x128   :  { %3856 = vmatprep.mubr.msk.f32.mxu0 %vm80_vm0, %v3851_v38 }
 0x12b   :  { %600 = vmatmul.mubr.f32.gmra.mxu0 %v3850_v39  ;;  %v3871_v39 = vld [vmem:[%s6864_s1 + $0xc8] sm:$0xff] }
 0x12c   :  { %3857 = vmatprep.mubr.msk.f32.mxu0 %vm80_vm0, %v3853_v40 }
 0x12f   :  { %605 = vmatmul.mubr.f32.gmra.mxu0 %v3852_v41 }
 0x130   :  { %919 = vmatprep.mubr.f32.mxu0 %v4673_v1 }
 0x1b3   :  { %v380_v50 = vpop.f32.mrf.mxu0  ;;  %v481_v51 = vpop.f32.mrf.mxu1 }
 0x1b4   :  { %v5190_v52 = vadd.f32 %v481_v51, %v380_v50  ;;  %v3888_v50 = vld [vmem:[%s6865_s2 + $0xf0] sm:$0xff]  ;;  %v3887_v51 = vld [vmem:[%s6865_s2 + $0xe8] sm:$0xff] }
 0x1b5   :  { %v382_v53 = vpop.f32.mrf.mxu0  ;;  %v483_v54 = vpop.f32.mrf.mxu1  ;;  %880 = vmatpush1.msra.mxu0 %v3888_v50 }
 0x1b6   :  { %v5192_v55 = vadd.f32 %v483_v54, %v382_v53  ;;  %v3886_v53 = vld [vmem:[%s6865_s2 + $0xe0] sm:$0xff]  ;;  %v3885_v54 = vld [vmem:[%s6865_s2 + $0xd8] sm:$0xff]  ;;  %881 = vmatprep.subr.mxu0 %v3887_v51 }
 0x1b7   :  { %v386_v56 = vpop.f32.mrf.mxu0  ;;  %882 = vmatpush1.msra.mxu0 %v3886_v53 }
 0x1b8   :  { %v487_v57 = vpop.f32.mrf.mxu1  ;;  %883 = vmatprep.subr.mxu0 %v3885_v54 }
 0x1b9   :  { %v5194_v58 = vadd.f32 %v487_v57, %v386_v56  ;;  %v388_v59 = vpop.f32.mrf.mxu0  ;;  %v3884_v56 = vld [vmem:[%s6865_s2 + $0xd0] sm:$0xff]  ;;  %v3883_v57 = vld [vmem:[%s6865_s2 + $0xc8] sm:$0xff] }
 0x1ba   :  { %v489_v60 = vpop.f32.mrf.mxu1  ;;  %884 = vmatpush1.msra.mxu0 %v3884_v56 }
 0x1bb   :  { %v5196_v61 = vadd.f32 %v489_v60, %v388_v59  ;;  %v392_v62 = vpop.f32.mrf.mxu0  ;;  %v3882_v59 = vld [vmem:[%s6865_s2 + $0xc0] sm:$0xff]  ;;  %885 = vmatprep.subr.mxu0 %v3883_v57 }
 0x1bc   :  { %v493_v63 = vpop.f32.mrf.mxu1  ;;  %886 = vmatpush1.msra.mxu0 %v3882_v59 }
 0x1bd   :  { %v5198_v25 = vadd.f32 %v493_v63, %v392_v62  ;;  %v394_v26 = vpop.f32.mrf.mxu0  ;;  %973 = vmatprep.subr.mxu0 %v4673_v1 }
 0x1be   :  { %v495_v27 = vpop.f32.mrf.mxu1 }
 0x1bf   :  { %v5200_v28 = vadd.f32 %v495_v27, %v394_v26  ;;  %v398_v29 = vpop.f32.mrf.mxu0 }
 0x1c0   :  { %v499_v30 = vpop.f32.mrf.mxu1 }
 0x1c1   :  { %v5202_v31 = vadd.f32 %v499_v30, %v398_v29  ;;  %v5204_v32 = vpop.f32.mrf.mxu0 }
 0x1c2   :  { %v501_v60 = vpop.f32.mrf.mxu1 }
 0x1e3   :  { %v591_v33 = vpop.f32.mrf.mxu0 }
 0x1e4   :  { %3866 = vmatmul.mubr.msk.f32.vlgmr.msra.gmra.mxu1 %vm301_vm1, %v591_v33 }
 0x1e5   :  { %750 = vmatpush1.msra.mxu1 %v4754_v0  ;;  %v593_v34 = vpop.f32.mrf.mxu0  ;;  %701 = vmatprep.mubr.f32.mxu1 %v4673_v1 }
 0x1e6   :  { %751 = vmatprep.subr.mxu1 %v4673_v1 }
 0x1e7   :  { %752 = vmatpush1.msra.mxu1 %v4761_v2  ;;  %v596_v35 = vpop.f32.mrf.mxu0 }
 0x1e8   :  { %753 = vmatprep.subr.mxu1 %v4673_v1  ;;  %3867 = vmatmul.mubr.msk.f32.gmra.mxu1 %vm301_vm1, %v596_v35 }
 0x1e9   :  { %754 = vmatpush1.msra.mxu1 %v4770_v3  ;;  %v598_v36 = vpop.f32.mrf.mxu0  ;;  %707 = vmatprep.mubr.f32.mxu1 %v4673_v1 }
 0x1ea   :  { %755 = vmatprep.subr.mxu1 %v4673_v1 }
 0x1eb   :  { %756 = vmatpush1.msra.mxu1 %v4779_v4  ;;  %v601_v37 = vpop.f32.mrf.mxu0 }
 0x1ec   :  { %757 = vmatprep.subr.mxu1 %v4673_v1  ;;  %3868 = vmatmul.mubr.msk.f32.gmra.mxu1 %vm301_vm1, %v601_v37 }
 0x1ed   :  { %758 = vmatpush1.msra.mxu1 %v4788_v5  ;;  %v603_v38 = vpop.f32.mrf.mxu0  ;;  %713 = vmatprep.mubr.f32.mxu1 %v4673_v1 }
 0x1ee   :  { %759 = vmatprep.subr.mxu1 %v4673_v1 }
 0x1ef   :  { %760 = vmatpush1.msra.mxu1 %v4797_v6  ;;  %v606_v40 = vpop.f32.mrf.mxu0 }
 0x1f0   :  { %761 = vmatprep.subr.mxu1 %v4673_v1  ;;  %3869 = vmatmul.mubr.msk.f32.gmra.mxu1 %vm301_vm1, %v606_v40 }
 0x1f1   :  { %762 = vmatpush1.msra.mxu1 %v4806_v7  ;;  %v608_v41 = vpop.f32.mrf.mxu0  ;;  %3878 = vmatprep.mubr.msk.f32.mxu1 %vm80_vm0, %v3871_v39 }
 0x1f2   :  { %763 = vmatprep.subr.mxu1 %v4673_v1 }
 0x1f3   :  { %764 = vmatpush1.msra.mxu1 %v4815_v8 }
 0x1f4   :  { %765 = vmatprep.subr.mxu1 %v4673_v1 }
 0x1f5   :  { %766 = vmatpush1.msra.mxu1 %v4824_v9 }
 0x1f6   :  { %767 = vmatprep.subr.mxu1 %v4673_v1 }
 0x1f7   :  { %768 = vmatpush1.msra.mxu1 %v4833_v10 }
 0x1f8   :  { %769 = vmatprep.subr.mxu1 %v4673_v1 }
 0x1f9   :  { %770 = vmatpush1.msra.mxu1 %v4842_v11 }
 0x1fa   :  { %771 = vmatprep.subr.mxu1 %v4673_v1 }
 0x1fb   :  { %772 = vmatpush1.msra.mxu1 %v4851_v12 }
 0x1fc   :  { %773 = vmatprep.subr.mxu1 %v4673_v1 }
 0x1fd   :  { %774 = vmatpush1.msra.mxu1 %v4860_v13 }
 0x1fe   :  { %775 = vmatprep.subr.mxu1 %v4673_v1 }
 0x1ff   :  { %776 = vmatpush1.msra.mxu1 %v4869_v14 }
 0x200   :  { %777 = vmatprep.subr.mxu1 %v4673_v1 }
 0x201   :  { %778 = vmatpush1.msra.mxu1 %v4878_v15 }
 0x202   :  { %779 = vmatprep.subr.mxu1 %v4673_v1 }
 0x203   :  { %780 = vmatpush1.msra.mxu1 %v4887_v16 }
 0x204   :  { %797 = vmatprep.subr.mxu1 %v4673_v1 }
 0x205   :  { %798 = vmatpush2.msra.mxu1 %v4896_v17 }
 0x206   :  { %799 = vmatprep.subr.mxu1 %v4673_v1 }
 0x207   :  { %800 = vmatpush2.msra.mxu1 %v4905_v18 }
 0x208   :  { %801 = vmatprep.subr.mxu1 %v4673_v1 }
 0x209   :  { %802 = vmatpush2.msra.mxu1 %v4914_v19 }
 0x20a   :  { %803 = vmatprep.subr.mxu1 %v4673_v1 }
 0x20b   :  { %804 = vmatpush2.msra.mxu1 %v4923_v20 }
 0x20c   :  { %805 = vmatprep.subr.mxu1 %v4673_v1 }
 0x20d   :  { %806 = vmatpush2.msra.mxu1 %v4932_v21 }
 0x20e   :  { %807 = vmatprep.subr.mxu1 %v4673_v1 }
 0x20f   :  { %808 = vmatpush2.msra.mxu1 %v4941_v22 }
 0x210   :  { %809 = vmatprep.subr.mxu1 %v4673_v1 }
 0x211   :  { %810 = vmatpush2.msra.mxu1 %v4950_v23 }
 0x212   :  { %811 = vmatprep.subr.mxu1 %v4673_v1 }
 0x213   :  { %812 = vmatpush2.msra.mxu1 %v4959_v24 }
 0x214   :  { %814 = vmatmul.mubr.f32.vlgmr.msra.gmra.mxu1 %v3870_v42 }
 0x215   :  { %3879 = vmatprep.mubr.msk.f32.mxu1 %vm80_vm0, %v3873_v43 }
 0x218   :  { %819 = vmatmul.mubr.f32.gmra.mxu1 %v3872_v44 }
 0x219   :  { %3880 = vmatprep.mubr.msk.f32.mxu1 %vm80_vm0, %v3875_v45 }
 0x21c   :  { %824 = vmatmul.mubr.f32.gmra.mxu1 %v3874_v46 }
 0x21d   :  { %3881 = vmatprep.mubr.msk.f32.mxu1 %vm80_vm0, %v3877_v47 }
 0x220   :  { %829 = vmatmul.mubr.f32.gmra.mxu1 %v3876_v48 }
 0x221   :  { %1143 = vmatprep.mubr.f32.mxu1 %v4673_v1 }
 0x2a4   :  { %v697_v62 = vpop.f32.mrf.mxu1 }
 0x2a5   :  { %v5315_v63 = vadd.f32 %v697_v62, %v5190_v52  ;;  %v5474_v62 = vld [vmem:[%s6863_s0 + $0x78] sm:$0xff] }
 0x2a6   :  { %v699_v26 = vpop.f32.mrf.mxu1 }
 0x2a7   :  { %v5318_v27 = vadd.f32 %v699_v26, %v5192_v55  ;;  %v502_v55 = vadd.f32 %v501_v60, %v5204_v32  ;;  %v5482_v26 = vld [vmem:[%s6863_s0 + $0x70] sm:$0xff] }
 0x2a8   :  { %v703_v29 = vpop.f32.mrf.mxu1 }
 0x2a9   :  { %v5321_v30 = vadd.f32 %v703_v29, %v5194_v58  ;;  %v5490_v29 = vld [vmem:[%s6863_s0 + $0x68] sm:$0xff] }
 0x2aa   :  { %v705_v33 = vpop.f32.mrf.mxu1 }
 0x2ab   :  { %v5324_v34 = vadd.f32 %v705_v33, %v5196_v61  ;;  %v5498_v33 = vld [vmem:[%s6863_s0 + $0x60] sm:$0xff] }
 0x2ac   :  { %v709_v35 = vpop.f32.mrf.mxu1 }
 0x2ad   :  { %v5327_v36 = vadd.f32 %v709_v35, %v5198_v25  ;;  %v5506_v35 = vld [vmem:[%s6863_s0 + $0x58] sm:$0xff] }
 0x2ae   :  { %v711_v37 = vpop.f32.mrf.mxu1 }
 0x2af   :  { %v5330_v52 = vadd.f32 %v711_v37, %v5200_v28  ;;  %v3919_v37 = vld [vmem:[%s6864_s1 + $0x148] sm:$0xff] }
 0x2b0   :  { %v715_v38 = vpop.f32.mrf.mxu1 }
 0x2b1   :  { %v5334_v39 = vadd.f32 %v715_v38, %v5202_v31 }
 0x2b2   :  { %v717_v58 = vpop.f32.mrf.mxu1 }
 0x2b3   :  { %v5336_v40 = vadd.f32 %v717_v58, %v502_v55  ;;  %v5525_v55 = vld [vmem:[%s6863_s0 + $0x48] sm:$0xff]  ;;  %v5533_v58 = vld [vmem:[%s6863_s0 + $0x40] sm:$0xff] }
 0x2d4   :  { %v815_v41 = vpop.f32.mrf.mxu1 }
 0x2d5   :  { %3890 = vmatmul.mubr.msk.f32.vlgmr.msra.gmra.mxu0 %vm301_vm1, %v815_v41  ;;  %v5547_v41 = vld [vmem:[%s6863_s0 + $0x30] sm:$0xff] }
 0x2d6   :  { %974 = vmatpush1.msra.mxu0 %v4754_v0  ;;  %v817_v61 = vpop.f32.mrf.mxu1  ;;  %925 = vmatprep.mubr.f32.mxu0 %v4673_v1 }
 0x2d7   :  { %975 = vmatprep.subr.mxu0 %v4673_v1  ;;  %v5554_v61 = vld [vmem:[%s6863_s0 + $0x28] sm:$0xff] }
 0x2d8   :  { %976 = vmatpush1.msra.mxu0 %v4761_v2  ;;  %v820_v25 = vpop.f32.mrf.mxu1 }
 0x2d9   :  { %977 = vmatprep.subr.mxu0 %v4673_v1  ;;  %3891 = vmatmul.mubr.msk.f32.gmra.mxu0 %vm301_vm1, %v820_v25  ;;  %v5561_v25 = vld [vmem:[%s6863_s0 + $0x20] sm:$0xff] }
 0x2da   :  { %978 = vmatpush1.msra.mxu0 %v4770_v3  ;;  %v822_v28 = vpop.f32.mrf.mxu1  ;;  %931 = vmatprep.mubr.f32.mxu0 %v4673_v1  ;;  %v3895_v3 = vld [vmem:[%s6864_s1 + $0x108] sm:$0xff] }
 0x2db   :  { %979 = vmatprep.subr.mxu0 %v4673_v1  ;;  %v5568_v28 = vld [vmem:[%s6863_s0 + $0x18] sm:$0xff] }
 0x2dc   :  { %980 = vmatpush1.msra.mxu0 %v4779_v4  ;;  %v825_v0 = vpop.f32.mrf.mxu1 }
 0x2dd   :  { %981 = vmatprep.subr.mxu0 %v4673_v1  ;;  %3892 = vmatmul.mubr.msk.f32.gmra.mxu0 %vm301_vm1, %v825_v0  ;;  %v5575_v0 = vld [vmem:[%s6863_s0 + $0x10] sm:$0xff] }
 0x2de   :  { %982 = vmatpush1.msra.mxu0 %v4788_v5  ;;  %v827_v2 = vpop.f32.mrf.mxu1  ;;  %937 = vmatprep.mubr.f32.mxu0 %v4673_v1  ;;  %v3894_v5 = vld [vmem:[%s6864_s1 + $0x100] sm:$0xff] }
 0x2df   :  { %983 = vmatprep.subr.mxu0 %v4673_v1  ;;  %v5582_v2 = vld [vmem:[%s6863_s0 + $0x8] sm:$0xff] }
 0x2e0   :  { %984 = vmatpush1.msra.mxu0 %v4797_v6  ;;  %v830_v31 = vpop.f32.mrf.mxu1  ;;  %v3897_v6 = vld [vmem:[%s6864_s1 + $0x118] sm:$0xff] }
 0x2e1   :  { %985 = vmatprep.subr.mxu0 %v4673_v1  ;;  %3893 = vmatmul.mubr.msk.f32.gmra.mxu0 %vm301_vm1, %v830_v31  ;;  %v5596_v31 = vld [vmem:[%s6863_s0 + $0xb8] sm:$0xff] }
 0x2e2   :  { %986 = vmatpush1.msra.mxu0 %v4806_v7  ;;  %v832_v4 = vpop.f32.mrf.mxu1  ;;  %3902 = vmatprep.mubr.msk.f32.mxu0 %vm80_vm0, %v3895_v3  ;;  %v3896_v7 = vld [vmem:[%s6864_s1 + $0x110] sm:$0xff]  ;;  %v5589_v3 = vld [vmem:[%s6863_s0] sm:$0xff] }
 0x2e3   :  { %987 = vmatprep.subr.mxu0 %v4673_v1  ;;  %v5603_v4 = vld [vmem:[%s6863_s0 + $0xb0] sm:$0xff] }
 0x2e4   :  { %988 = vmatpush1.msra.mxu0 %v4815_v8  ;;  %v3899_v8 = vld [vmem:[%s6864_s1 + $0x128] sm:$0xff] }
 0x2e5   :  { %989 = vmatprep.subr.mxu0 %v4673_v1 }
 0x2e6   :  { %990 = vmatpush1.msra.mxu0 %v4824_v9  ;;  %v3898_v9 = vld [vmem:[%s6864_s1 + $0x120] sm:$0xff] }
 0x2e7   :  { %991 = vmatprep.subr.mxu0 %v4673_v1 }
 0x2e8   :  { %992 = vmatpush1.msra.mxu0 %v4833_v10  ;;  %v3901_v10 = vld [vmem:[%s6864_s1 + $0x138] sm:$0xff] }
 0x2e9   :  { %993 = vmatprep.subr.mxu0 %v4673_v1 }
 0x2ea   :  { %994 = vmatpush1.msra.mxu0 %v4842_v11  ;;  %v3900_v11 = vld [vmem:[%s6864_s1 + $0x130] sm:$0xff] }
 0x2eb   :  { %995 = vmatprep.subr.mxu0 %v4673_v1 }
 0x2ec   :  { %996 = vmatpush1.msra.mxu0 %v4851_v12  ;;  %v3913_v12 = vld [vmem:[%s6865_s2 + $0x138] sm:$0xff] }
 0x2ed   :  { %997 = vmatprep.subr.mxu0 %v4673_v1  ;;  %1103 = vmatprep.subr.mxu1 %v3913_v12  ;;  %v3933_v12 = vld [vmem:[%s6865_s2 + $0x158] sm:$0xff] }
 0x2ee   :  { %998 = vmatpush1.msra.mxu0 %v4860_v13  ;;  %v3912_v13 = vld [vmem:[%s6865_s2 + $0x130] sm:$0xff] }
 0x2ef   :  { %999 = vmatprep.subr.mxu0 %v4673_v1  ;;  %1104 = vmatpush1.msra.mxu1 %v3912_v13  ;;  %v3932_v13 = vld [vmem:[%s6865_s2 + $0x150] sm:$0xff] }
 0x2f0   :  { %1000 = vmatpush1.msra.mxu0 %v4869_v14  ;;  %v3911_v14 = vld [vmem:[%s6865_s2 + $0x128] sm:$0xff] }
 0x2f1   :  { %1001 = vmatprep.subr.mxu0 %v4673_v1  ;;  %1105 = vmatprep.subr.mxu1 %v3911_v14  ;;  %v3931_v14 = vld [vmem:[%s6865_s2 + $0x148] sm:$0xff] }
 0x2f2   :  { %1002 = vmatpush1.msra.mxu0 %v4878_v15  ;;  %v3910_v15 = vld [vmem:[%s6865_s2 + $0x120] sm:$0xff] }
 0x2f3   :  { %1003 = vmatprep.subr.mxu0 %v4673_v1  ;;  %1106 = vmatpush1.msra.mxu1 %v3910_v15  ;;  %v3930_v15 = vld [vmem:[%s6865_s2 + $0x140] sm:$0xff] }
 0x2f4   :  { %1004 = vmatpush1.msra.mxu0 %v4887_v16  ;;  %v3909_v16 = vld [vmem:[%s6865_s2 + $0x118] sm:$0xff] }
 0x2f5   :  { %1021 = vmatprep.subr.mxu0 %v4673_v1  ;;  %1107 = vmatprep.subr.mxu1 %v3909_v16 }
 0x2f6   :  { %1022 = vmatpush2.msra.mxu0 %v4896_v17  ;;  %v3908_v17 = vld [vmem:[%s6865_s2 + $0x110] sm:$0xff] }
 0x2f7   :  { %1023 = vmatprep.subr.mxu0 %v4673_v1  ;;  %1108 = vmatpush1.msra.mxu1 %v3908_v17 }
 0x2f8   :  { %1024 = vmatpush2.msra.mxu0 %v4905_v18  ;;  %v3907_v18 = vld [vmem:[%s6865_s2 + $0x108] sm:$0xff] }
 0x2f9   :  { %1025 = vmatprep.subr.mxu0 %v4673_v1  ;;  %1109 = vmatprep.subr.mxu1 %v3907_v18 }
 0x2fa   :  { %1026 = vmatpush2.msra.mxu0 %v4914_v19  ;;  %v3906_v19 = vld [vmem:[%s6865_s2 + $0x100] sm:$0xff] }
 0x2fb   :  { %1027 = vmatprep.subr.mxu0 %v4673_v1  ;;  %1110 = vmatpush1.msra.mxu1 %v3906_v19 }
 0x2fc   :  { %1028 = vmatpush2.msra.mxu0 %v4923_v20  ;;  %1197 = vmatprep.subr.mxu1 %v4673_v1 }
 0x2fd   :  { %1029 = vmatprep.subr.mxu0 %v4673_v1 }
 0x2fe   :  { %1030 = vmatpush2.msra.mxu0 %v4932_v21 }
 0x2ff   :  { %1031 = vmatprep.subr.mxu0 %v4673_v1 }
 0x300   :  { %1032 = vmatpush2.msra.mxu0 %v4941_v22 }
 0x301   :  { %1033 = vmatprep.subr.mxu0 %v4673_v1 }
 0x302   :  { %1034 = vmatpush2.msra.mxu0 %v4950_v23 }
 0x303   :  { %1035 = vmatprep.subr.mxu0 %v4673_v1 }
 0x304   :  { %1036 = vmatpush2.msra.mxu0 %v4959_v24 }
 0x305   :  { %1038 = vmatmul.mubr.f32.vlgmr.msra.gmra.mxu0 %v3894_v5  ;;  %v5610_v5 = vld [vmem:[%s6863_s0 + $0xa8] sm:$0xff] }
 0x306   :  { %3903 = vmatprep.mubr.msk.f32.mxu0 %vm80_vm0, %v3897_v6  ;;  %v3918_v6 = vld [vmem:[%s6864_s1 + $0x140] sm:$0xff] }
 0x309   :  { %1043 = vmatmul.mubr.f32.gmra.mxu0 %v3896_v7  ;;  %v3924_v7 = vld [vmem:[%s6864_s1 + $0x170] sm:$0xff] }
 0x30a   :  { %3904 = vmatprep.mubr.msk.f32.mxu0 %vm80_vm0, %v3899_v8  ;;  %v3937_v8 = vld [vmem:[%s6865_s2 + $0x178] sm:$0xff] }
 0x30b   :  { %1327 = vmatprep.subr.mxu0 %v3937_v8  ;;  %v3948_v8 = vld [vmem:[%s6864_s1 + $0x1b0] sm:$0xff] }
 0x30d   :  { %1048 = vmatmul.mubr.f32.gmra.mxu0 %v3898_v9  ;;  %v3936_v9 = vld [vmem:[%s6865_s2 + $0x170] sm:$0xff] }
 0x30e   :  { %3905 = vmatprep.mubr.msk.f32.mxu0 %vm80_vm0, %v3901_v10  ;;  %v3935_v10 = vld [vmem:[%s6865_s2 + $0x168] sm:$0xff]  ;;  %1328 = vmatpush1.msra.mxu0 %v3936_v9  ;;  %v3961_v9 = vld [vmem:[%s6865_s2 + $0x1b8] sm:$0xff] }
 0x30f   :  { %1329 = vmatprep.subr.mxu0 %v3935_v10  ;;  %v3960_v10 = vld [vmem:[%s6865_s2 + $0x1b0] sm:$0xff] }
 0x311   :  { %1053 = vmatmul.mubr.f32.gmra.mxu0 %v3900_v11  ;;  %v3934_v11 = vld [vmem:[%s6865_s2 + $0x160] sm:$0xff] }
 0x312   :  { %1367 = vmatprep.mubr.f32.mxu0 %v4673_v1  ;;  %1330 = vmatpush1.msra.mxu0 %v3934_v11  ;;  %v3959_v11 = vld [vmem:[%s6865_s2 + $0x1a8] sm:$0xff] }
 0x313   :  { %1331 = vmatprep.subr.mxu0 %v3933_v12  ;;  %v3958_v12 = vld [vmem:[%s6865_s2 + $0x1a0] sm:$0xff] }
 0x314   :  { %1332 = vmatpush1.msra.mxu0 %v3932_v13  ;;  %v3957_v13 = vld [vmem:[%s6865_s2 + $0x198] sm:$0xff] }
 0x315   :  { %1333 = vmatprep.subr.mxu0 %v3931_v14  ;;  %v3956_v14 = vld [vmem:[%s6865_s2 + $0x190] sm:$0xff] }
 0x316   :  { %1334 = vmatpush1.msra.mxu0 %v3930_v15  ;;  %v3955_v15 = vld [vmem:[%s6865_s2 + $0x188] sm:$0xff] }
 0x317   :  { %1421 = vmatprep.subr.mxu0 %v4673_v1 }
 0x395   :  { %v921_v32 = vpop.f32.mrf.mxu0 }
 0x396   :  { %v5447_v42 = vadd.f32 %v921_v32, %v5315_v63 }
 0x397   :  { %v923_v43 = vpop.f32.mrf.mxu0 }
 0x398   :  { %v5450_v44 = vadd.f32 %v923_v43, %v5318_v27 }
 0x399   :  { %v927_v45 = vpop.f32.mrf.mxu0 }
 0x39a   :  { %v5453_v46 = vadd.f32 %v927_v45, %v5321_v30 }
 0x39b   :  { %v929_v47 = vpop.f32.mrf.mxu0 }
 0x39c   :  { %v5456_v48 = vadd.f32 %v929_v47, %v5324_v34 }
 0x39d   :  { %v933_v49 = vpop.f32.mrf.mxu0 }
 0x39e   :  { %v5459_v50 = vadd.f32 %v933_v49, %v5327_v36 }
 0x39f   :  { %v935_v51 = vpop.f32.mrf.mxu0 }
 0x3a0   :  { %v5462_v53 = vadd.f32 %v935_v51, %v5330_v52  ;;  %v5517_v52 = vld [vmem:[%s6863_s0 + $0x50] sm:$0xff] }
 0x3a1   :  { %v939_v54 = vpop.f32.mrf.mxu0 }
 0x3a2   :  { %v5465_v56 = vadd.f32 %v939_v54, %v5334_v39 }
 0x3a3   :  { %v941_v57 = vpop.f32.mrf.mxu0 }
 0x3a4   :  { %v5468_v59 = vadd.f32 %v941_v57, %v5336_v40  ;;  %v5540_v40 = vld [vmem:[%s6863_s0 + $0x38] sm:$0xff] }
 0x3c5   :  { %v1039_v60 = vpop.f32.mrf.mxu0 }
 0x3c6   :  { %3914 = vmatmul.mubr.msk.f32.vlgmr.msra.gmra.mxu1 %vm301_vm1, %v1039_v60 }
 0x3c7   :  { %1198 = vmatpush1.msra.mxu1 %v5474_v62  ;;  %v1041_v63 = vpop.f32.mrf.mxu0  ;;  %1149 = vmatprep.mubr.f32.mxu1 %v4673_v1 }
 0x3c8   :  { %1199 = vmatprep.subr.mxu1 %v4673_v1 }
 0x3c9   :  { %1200 = vmatpush1.msra.mxu1 %v5482_v26  ;;  %v1044_v27 = vpop.f32.mrf.mxu0 }
 0x3ca   :  { %1201 = vmatprep.subr.mxu1 %v4673_v1  ;;  %3915 = vmatmul.mubr.msk.f32.gmra.mxu1 %vm301_vm1, %v1044_v27  ;;  %v3943_v27 = vld [vmem:[%s6864_s1 + $0x188] sm:$0xff] }
 0x3cb   :  { %1202 = vmatpush1.msra.mxu1 %v5490_v29  ;;  %v1046_v30 = vpop.f32.mrf.mxu0  ;;  %1155 = vmatprep.mubr.f32.mxu1 %v4673_v1 }
 0x3cc   :  { %1203 = vmatprep.subr.mxu1 %v4673_v1 }
 0x3cd   :  { %1204 = vmatpush1.msra.mxu1 %v5498_v33  ;;  %v1049_v34 = vpop.f32.mrf.mxu0 }
 0x3ce   :  { %1205 = vmatprep.subr.mxu1 %v4673_v1  ;;  %3916 = vmatmul.mubr.msk.f32.gmra.mxu1 %vm301_vm1, %v1049_v34 }
 0x3cf   :  { %1206 = vmatpush1.msra.mxu1 %v5506_v35  ;;  %v1051_v36 = vpop.f32.mrf.mxu0  ;;  %1161 = vmatprep.mubr.f32.mxu1 %v4673_v1 }
 0x3d0   :  { %1207 = vmatprep.subr.mxu1 %v4673_v1  ;;  %v5749_v36 = vld [vmem:[%s6863_s0 + $0xa0] sm:$0xff] }
 0x3d1   :  { %1208 = vmatpush1.msra.mxu1 %v5517_v52  ;;  %v1054_v38 = vpop.f32.mrf.mxu0 }
 0x3d2   :  { %1209 = vmatprep.subr.mxu1 %v4673_v1  ;;  %3917 = vmatmul.mubr.msk.f32.gmra.mxu1 %vm301_vm1, %v1054_v38  ;;  %v5763_v38 = vld [vmem:[%s6863_s0 + $0x90] sm:$0xff] }
 0x3d3   :  { %1210 = vmatpush1.msra.mxu1 %v5525_v55  ;;  %v1056_v39 = vpop.f32.mrf.mxu0  ;;  %3926 = vmatprep.mubr.msk.f32.mxu1 %vm80_vm0, %v3919_v37  ;;  %v5756_v37 = vld [vmem:[%s6863_s0 + $0x98] sm:$0xff] }
 0x3d4   :  { %1211 = vmatprep.subr.mxu1 %v4673_v1  ;;  %v5770_v39 = vld [vmem:[%s6863_s0 + $0x88] sm:$0xff] }
 0x3d5   :  { %1212 = vmatpush1.msra.mxu1 %v5533_v58 }
 0x3d6   :  { %1213 = vmatprep.subr.mxu1 %v4673_v1 }
 0x3d7   :  { %1214 = vmatpush1.msra.mxu1 %v5540_v40 }
 0x3d8   :  { %1215 = vmatprep.subr.mxu1 %v4673_v1 }
 0x3d9   :  { %1216 = vmatpush1.msra.mxu1 %v5547_v41 }
 0x3da   :  { %1217 = vmatprep.subr.mxu1 %v4673_v1 }
 0x3db   :  { %1218 = vmatpush1.msra.mxu1 %v5554_v61 }
 0x3dc   :  { %1219 = vmatprep.subr.mxu1 %v4673_v1 }
 0x3dd   :  { %1220 = vmatpush1.msra.mxu1 %v5561_v25 }
 0x3de   :  { %1221 = vmatprep.subr.mxu1 %v4673_v1 }
 0x3df   :  { %1222 = vmatpush1.msra.mxu1 %v5568_v28 }
 0x3e0   :  { %1223 = vmatprep.subr.mxu1 %v4673_v1 }
 0x3e1   :  { %1224 = vmatpush1.msra.mxu1 %v5575_v0 }
 0x3e2   :  { %1225 = vmatprep.subr.mxu1 %v4673_v1 }
 0x3e3   :  { %1226 = vmatpush1.msra.mxu1 %v5582_v2 }
 0x3e4   :  { %1227 = vmatprep.subr.mxu1 %v4673_v1 }
 0x3e5   :  { %1228 = vmatpush1.msra.mxu1 %v5589_v3 }
 0x3e6   :  { %1245 = vmatprep.subr.mxu1 %v4673_v1 }
 0x3e7   :  { %1246 = vmatpush2.msra.mxu1 %v5596_v31 }
 0x3e8   :  { %1247 = vmatprep.subr.mxu1 %v4673_v1 }
 0x3e9   :  { %1248 = vmatpush2.msra.mxu1 %v5603_v4 }
 0x3ea   :  { %1249 = vmatprep.subr.mxu1 %v4673_v1 }
 0x3eb   :  { %1250 = vmatpush2.msra.mxu1 %v5610_v5 }
 0x3ec   :  { %1251 = vmatprep.subr.mxu1 %v4673_v1 }
 0x3ed   :  { %1252 = vmatpush2.msra.mxu1 %v4923_v20  ;;  %v3921_v20 = vld [vmem:[%s6864_s1 + $0x158] sm:$0xff] }
 0x3ee   :  { %1253 = vmatprep.subr.mxu1 %v4673_v1 }
 0x3ef   :  { %1254 = vmatpush2.msra.mxu1 %v4932_v21  ;;  %v3920_v21 = vld [vmem:[%s6864_s1 + $0x150] sm:$0xff] }
 0x3f0   :  { %1255 = vmatprep.subr.mxu1 %v4673_v1 }
 0x3f1   :  { %1256 = vmatpush2.msra.mxu1 %v4941_v22  ;;  %v3923_v22 = vld [vmem:[%s6864_s1 + $0x168] sm:$0xff] }
 0x3f2   :  { %1257 = vmatprep.subr.mxu1 %v4673_v1 }
 0x3f3   :  { %1258 = vmatpush2.msra.mxu1 %v4950_v23  ;;  %v3922_v23 = vld [vmem:[%s6864_s1 + $0x160] sm:$0xff] }
 0x3f4   :  { %1259 = vmatprep.subr.mxu1 %v4673_v1 }
 0x3f5   :  { %1260 = vmatpush2.msra.mxu1 %v4959_v24  ;;  %v3925_v24 = vld [vmem:[%s6864_s1 + $0x178] sm:$0xff] }
 0x3f6   :  { %1262 = vmatmul.mubr.f32.vlgmr.msra.gmra.mxu1 %v3918_v6  ;;  %v3942_v6 = vld [vmem:[%s6864_s1 + $0x180] sm:$0xff]  ;;  %1551 = vmatprep.subr.mxu1 %v3961_v9  ;;  %v3972_v9 = vld [vmem:[%s6864_s1 + $0x1f0] sm:$0xff] }
 0x3f7   :  { %3927 = vmatprep.mubr.msk.f32.mxu1 %vm80_vm0, %v3921_v20  ;;  %v3945_v20 = vld [vmem:[%s6864_s1 + $0x198] sm:$0xff]  ;;  %1552 = vmatpush1.msra.mxu1 %v3960_v10 }
 0x3f8   :  { %1553 = vmatprep.subr.mxu1 %v3959_v11  ;;  %v3985_v10 = vld [vmem:[%s6865_s2 + $0x1f8] sm:$0xff]  ;;  %v3984_v11 = vld [vmem:[%s6865_s2 + $0x1f0] sm:$0xff] }
 0x3f9   :  { %1554 = vmatpush1.msra.mxu1 %v3958_v12  ;;  %v3983_v12 = vld [vmem:[%s6865_s2 + $0x1e8] sm:$0xff] }
 0x3fa   :  { %1267 = vmatmul.mubr.f32.gmra.mxu1 %v3920_v21  ;;  %v5783_v21 = vld [vmem:[%s6863_s0 + $0x80] sm:$0xff]  ;;  %1555 = vmatprep.subr.mxu1 %v3957_v13 }
 0x3fb   :  { %3928 = vmatprep.mubr.msk.f32.mxu1 %vm80_vm0, %v3923_v22  ;;  %v3944_v22 = vld [vmem:[%s6864_s1 + $0x190] sm:$0xff]  ;;  %1556 = vmatpush1.msra.mxu1 %v3956_v14  ;;  %v3982_v13 = vld [vmem:[%s6865_s2 + $0x1e0] sm:$0xff]  ;;  %v3981_v14 = vld [vmem:[%s6865_s2 + $0x1d8] sm:$0xff] }
 0x3fc   :  { %1557 = vmatprep.subr.mxu1 %v3955_v15  ;;  %v3980_v15 = vld [vmem:[%s6865_s2 + $0x1d0] sm:$0xff] }
 0x3fe   :  { %1272 = vmatmul.mubr.f32.gmra.mxu1 %v3922_v23  ;;  %v3947_v23 = vld [vmem:[%s6864_s1 + $0x1a8] sm:$0xff] }
 0x3ff   :  { %3929 = vmatprep.mubr.msk.f32.mxu1 %vm80_vm0, %v3925_v24  ;;  %v3946_v24 = vld [vmem:[%s6864_s1 + $0x1a0] sm:$0xff] }
 0x402   :  { %1277 = vmatmul.mubr.f32.gmra.mxu1 %v3924_v7  ;;  %v3949_v7 = vld [vmem:[%s6864_s1 + $0x1b8] sm:$0xff] }
 0x403   :  { %1591 = vmatprep.mubr.f32.mxu1 %v4673_v1 }
 0x486   :  { %v1145_v16 = vpop.f32.mrf.mxu1 }
 0x487   :  { %v5674_v17 = vadd.f32 %v1145_v16, %v5447_v42  ;;  %v3954_v16 = vld [vmem:[%s6865_s2 + $0x180] sm:$0xff] }
 0x488   :  { %v1147_v18 = vpop.f32.mrf.mxu1  ;;  %1558 = vmatpush1.msra.mxu1 %v3954_v16  ;;  %v3979_v16 = vld [vmem:[%s6865_s2 + $0x1c8] sm:$0xff] }
 0x489   :  { %v5677_v19 = vadd.f32 %v1147_v18, %v5450_v44  ;;  %1645 = vmatprep.subr.mxu1 %v4673_v1 }
 0x48a   :  { %v1151_v32 = vpop.f32.mrf.mxu1 }
 0x48b   :  { %v5680_v43 = vadd.f32 %v1151_v32, %v5453_v46 }
 0x48c   :  { %v1153_v45 = vpop.f32.mrf.mxu1 }
 0x48d   :  { %v5683_v47 = vadd.f32 %v1153_v45, %v5456_v48 }
 0x48e   :  { %v1157_v49 = vpop.f32.mrf.mxu1 }
 0x48f   :  { %v5686_v51 = vadd.f32 %v1157_v49, %v5459_v50 }
 0x490   :  { %v1159_v54 = vpop.f32.mrf.mxu1 }
 0x491   :  { %v5689_v42 = vadd.f32 %v1159_v54, %v5462_v53 }
 0x492   :  { %v1163_v57 = vpop.f32.mrf.mxu1 }
 0x493   :  { %v5692_v44 = vadd.f32 %v1163_v57, %v5465_v56 }
 0x494   :  { %v1165_v60 = vpop.f32.mrf.mxu1 }
 0x495   :  { %v5695_v46 = vadd.f32 %v1165_v60, %v5468_v59 }
 0x4b6   :  { %v1263_v63 = vpop.f32.mrf.mxu1 }
 0x4b7   :  { %3938 = vmatmul.mubr.msk.f32.vlgmr.msra.gmra.mxu0 %vm301_vm1, %v1263_v63 }
 0x4b8   :  { %1422 = vmatpush1.msra.mxu0 %v5474_v62  ;;  %v1265_v48 = vpop.f32.mrf.mxu1  ;;  %1373 = vmatprep.mubr.f32.mxu0 %v4673_v1 }
 0x4b9   :  { %1423 = vmatprep.subr.mxu0 %v4673_v1 }
 0x4ba   :  { %1424 = vmatpush1.msra.mxu0 %v5482_v26  ;;  %v1268_v50 = vpop.f32.mrf.mxu1 }
 0x4bb   :  { %1425 = vmatprep.subr.mxu0 %v4673_v1  ;;  %3939 = vmatmul.mubr.msk.f32.gmra.mxu0 %vm301_vm1, %v1268_v50 }
 0x4bc   :  { %1426 = vmatpush1.msra.mxu0 %v5490_v29  ;;  %v1270_v53 = vpop.f32.mrf.mxu1  ;;  %1379 = vmatprep.mubr.f32.mxu0 %v4673_v1 }
 0x4bd   :  { %1427 = vmatprep.subr.mxu0 %v4673_v1 }
 0x4be   :  { %1428 = vmatpush1.msra.mxu0 %v5498_v33  ;;  %v1273_v56 = vpop.f32.mrf.mxu1 }
 0x4bf   :  { %1429 = vmatprep.subr.mxu0 %v4673_v1  ;;  %3940 = vmatmul.mubr.msk.f32.gmra.mxu0 %vm301_vm1, %v1273_v56 }
 0x4c0   :  { %1430 = vmatpush1.msra.mxu0 %v5506_v35  ;;  %v1275_v59 = vpop.f32.mrf.mxu1  ;;  %1385 = vmatprep.mubr.f32.mxu0 %v4673_v1 }
 0x4c1   :  { %1431 = vmatprep.subr.mxu0 %v4673_v1 }
 0x4c2   :  { %1432 = vmatpush1.msra.mxu0 %v5517_v52  ;;  %v1278_v30 = vpop.f32.mrf.mxu1 }
 0x4c3   :  { %1433 = vmatprep.subr.mxu0 %v4673_v1  ;;  %3941 = vmatmul.mubr.msk.f32.gmra.mxu0 %vm301_vm1, %v1278_v30  ;;  %v3967_v30 = vld [vmem:[%s6864_s1 + $0x1c8] sm:$0xff] }
 0x4c4   :  { %1434 = vmatpush1.msra.mxu0 %v5525_v55  ;;  %v1280_v34 = vpop.f32.mrf.mxu1  ;;  %3950 = vmatprep.mubr.msk.f32.mxu0 %vm80_vm0, %v3943_v27 }
 0x4c5   :  { %1435 = vmatprep.subr.mxu0 %v4673_v1 }
 0x4c6   :  { %1436 = vmatpush1.msra.mxu0 %v5533_v58 }
 0x4c7   :  { %1437 = vmatprep.subr.mxu0 %v4673_v1 }
 0x4c8   :  { %1438 = vmatpush1.msra.mxu0 %v5540_v40 }
 0x4c9   :  { %1439 = vmatprep.subr.mxu0 %v4673_v1 }
 0x4ca   :  { %1440 = vmatpush1.msra.mxu0 %v5547_v41 }
 0x4cb   :  { %1441 = vmatprep.subr.mxu0 %v4673_v1 }
 0x4cc   :  { %1442 = vmatpush1.msra.mxu0 %v5554_v61 }
 0x4cd   :  { %1443 = vmatprep.subr.mxu0 %v4673_v1 }
 0x4ce   :  { %1444 = vmatpush1.msra.mxu0 %v5561_v25 }
 0x4cf   :  { %1445 = vmatprep.subr.mxu0 %v4673_v1 }
 0x4d0   :  { %1446 = vmatpush1.msra.mxu0 %v5568_v28 }
 0x4d1   :  { %1447 = vmatprep.subr.mxu0 %v4673_v1 }
 0x4d2   :  { %1448 = vmatpush1.msra.mxu0 %v5575_v0 }
 0x4d3   :  { %1449 = vmatprep.subr.mxu0 %v4673_v1 }
 0x4d4   :  { %1450 = vmatpush1.msra.mxu0 %v5582_v2 }
 0x4d5   :  { %1451 = vmatprep.subr.mxu0 %v4673_v1 }
 0x4d6   :  { %1452 = vmatpush1.msra.mxu0 %v5589_v3 }
 0x4d7   :  { %1469 = vmatprep.subr.mxu0 %v4673_v1 }
 0x4d8   :  { %1470 = vmatpush2.msra.mxu0 %v5596_v31 }
 0x4d9   :  { %1471 = vmatprep.subr.mxu0 %v4673_v1 }
 0x4da   :  { %1472 = vmatpush2.msra.mxu0 %v5603_v4 }
 0x4db   :  { %1473 = vmatprep.subr.mxu0 %v4673_v1 }
 0x4dc   :  { %1474 = vmatpush2.msra.mxu0 %v5610_v5 }
 0x4dd   :  { %1475 = vmatprep.subr.mxu0 %v4673_v1 }
 0x4de   :  { %1476 = vmatpush2.msra.mxu0 %v5749_v36 }
 0x4df   :  { %1477 = vmatprep.subr.mxu0 %v4673_v1 }
 0x4e0   :  { %1478 = vmatpush2.msra.mxu0 %v5756_v37 }
 0x4e1   :  { %1479 = vmatprep.subr.mxu0 %v4673_v1 }
 0x4e2   :  { %1480 = vmatpush2.msra.mxu0 %v5763_v38 }
 0x4e3   :  { %1481 = vmatprep.subr.mxu0 %v4673_v1 }
 0x4e4   :  { %1482 = vmatpush2.msra.mxu0 %v5770_v39 }
 0x4e5   :  { %1483 = vmatprep.subr.mxu0 %v4673_v1 }
 0x4e6   :  { %1484 = vmatpush2.msra.mxu0 %v5783_v21 }
 0x4e7   :  { %1486 = vmatmul.mubr.f32.vlgmr.msra.gmra.mxu0 %v3942_v6  ;;  %1775 = vmatprep.subr.mxu0 %v3985_v10 }
 0x4e8   :  { %3951 = vmatprep.mubr.msk.f32.mxu0 %vm80_vm0, %v3945_v20  ;;  %v3966_v20 = vld [vmem:[%s6864_s1 + $0x1c0] sm:$0xff]  ;;  %1776 = vmatpush1.msra.mxu0 %v3984_v11 }
 0x4e9   :  { %1777 = vmatprep.subr.mxu0 %v3983_v12 }
 0x4ea   :  { %1778 = vmatpush1.msra.mxu0 %v3982_v13 }
 0x4eb   :  { %1491 = vmatmul.mubr.f32.gmra.mxu0 %v3944_v22  ;;  %v3969_v22 = vld [vmem:[%s6864_s1 + $0x1d8] sm:$0xff]  ;;  %1779 = vmatprep.subr.mxu0 %v3981_v14 }
 0x4ec   :  { %3952 = vmatprep.mubr.msk.f32.mxu0 %vm80_vm0, %v3947_v23  ;;  %v3968_v23 = vld [vmem:[%s6864_s1 + $0x1d0] sm:$0xff]  ;;  %1780 = vmatpush1.msra.mxu0 %v3980_v15 }
 0x4ed   :  { %1781 = vmatprep.subr.mxu0 %v3979_v16 }
 0x4ef   :  { %1496 = vmatmul.mubr.f32.gmra.mxu0 %v3946_v24  ;;  %v3971_v24 = vld [vmem:[%s6864_s1 + $0x1e8] sm:$0xff] }
 0x4f0   :  { %3953 = vmatprep.mubr.msk.f32.mxu0 %vm80_vm0, %v3949_v7  ;;  %v3970_v7 = vld [vmem:[%s6864_s1 + $0x1e0] sm:$0xff] }
 0x4f3   :  { %1501 = vmatmul.mubr.f32.gmra.mxu0 %v3948_v8  ;;  %v3973_v8 = vld [vmem:[%s6864_s1 + $0x1f8] sm:$0xff] }
 0x4f4   :  { %1815 = vmatprep.mubr.f32.mxu0 %v4673_v1 }
 0x577   :  { %v1369_v18 = vpop.f32.mrf.mxu0 }
 0x578   :  { %v5831_v32 = vadd.f32 %v1369_v18, %v5674_v17  ;;  %v3978_v18 = vld [vmem:[%s6865_s2 + $0x1c0] sm:$0xff] }
 0x579   :  { %v1371_v45 = vpop.f32.mrf.mxu0  ;;  %1782 = vmatpush1.msra.mxu0 %v3978_v18 }
 0x57a   :  { %v5834_v49 = vadd.f32 %v1371_v45, %v5677_v19  ;;  %1869 = vmatprep.subr.mxu0 %v4673_v1 }
 0x57b   :  { %v1375_v54 = vpop.f32.mrf.mxu0 }
 0x57c   :  { %v5837_v57 = vadd.f32 %v1375_v54, %v5680_v43 }
 0x57d   :  { %v1377_v60 = vpop.f32.mrf.mxu0 }
 0x57e   :  { %v5840_v63 = vadd.f32 %v1377_v60, %v5683_v47 }
 0x57f   :  { %v1381_v48 = vpop.f32.mrf.mxu0 }
 0x580   :  { %v5843_v50 = vadd.f32 %v1381_v48, %v5686_v51 }
 0x581   :  { %v1383_v53 = vpop.f32.mrf.mxu0 }
 0x582   :  { %v5846_v17 = vadd.f32 %v1383_v53, %v5689_v42 }
 0x583   :  { %v1387_v56 = vpop.f32.mrf.mxu0 }
 0x584   :  { %v5849_v19 = vadd.f32 %v1387_v56, %v5692_v44 }
 0x585   :  { %v1389_v59 = vpop.f32.mrf.mxu0 }
 0x586   :  { %v5852_v43 = vadd.f32 %v1389_v59, %v5695_v46 }
 0x5a7   :  { %v1487_v27 = vpop.f32.mrf.mxu0 }
 0x5a8   :  { %3962 = vmatmul.mubr.msk.f32.vlgmr.msra.gmra.mxu1 %vm301_vm1, %v1487_v27 }
 0x5a9   :  { %1646 = vmatpush1.msra.mxu1 %v5474_v62  ;;  %v1489_v47 = vpop.f32.mrf.mxu0  ;;  %1597 = vmatprep.mubr.f32.mxu1 %v4673_v1 }
 0x5aa   :  { %1647 = vmatprep.subr.mxu1 %v4673_v1 }
 0x5ab   :  { %1648 = vmatpush1.msra.mxu1 %v5482_v26  ;;  %v1492_v51 = vpop.f32.mrf.mxu0 }
 0x5ac   :  { %1649 = vmatprep.subr.mxu1 %v4673_v1  ;;  %3963 = vmatmul.mubr.msk.f32.gmra.mxu1 %vm301_vm1, %v1492_v51 }
 0x5ad   :  { %1650 = vmatpush1.msra.mxu1 %v5490_v29  ;;  %v1494_v42 = vpop.f32.mrf.mxu0  ;;  %1603 = vmatprep.mubr.f32.mxu1 %v4673_v1 }
 0x5ae   :  { %1651 = vmatprep.subr.mxu1 %v4673_v1 }
 0x5af   :  { %1652 = vmatpush1.msra.mxu1 %v5498_v33  ;;  %v1497_v44 = vpop.f32.mrf.mxu0 }
 0x5b0   :  { %1653 = vmatprep.subr.mxu1 %v4673_v1  ;;  %3964 = vmatmul.mubr.msk.f32.gmra.mxu1 %vm301_vm1, %v1497_v44 }
 0x5b1   :  { %1654 = vmatpush1.msra.mxu1 %v5506_v35  ;;  %v1499_v46 = vpop.f32.mrf.mxu0  ;;  %1609 = vmatprep.mubr.f32.mxu1 %v4673_v1 }
 0x5b2   :  { %1655 = vmatprep.subr.mxu1 %v4673_v1 }
 0x5b3   :  { %1656 = vmatpush1.msra.mxu1 %v5517_v52  ;;  %v1502_v34 = vpop.f32.mrf.mxu0 }
 0x5b4   :  { %1657 = vmatprep.subr.mxu1 %v4673_v1  ;;  %3965 = vmatmul.mubr.msk.f32.gmra.mxu1 %vm301_vm1, %v1502_v34 }
 0x5b5   :  { %1658 = vmatpush1.msra.mxu1 %v5525_v55  ;;  %v1504_v6 = vpop.f32.mrf.mxu0  ;;  %3974 = vmatprep.mubr.msk.f32.mxu1 %vm80_vm0, %v3967_v30 }
 0x5b6   :  { %1659 = vmatprep.subr.mxu1 %v4673_v1 }
 0x5b7   :  { %1660 = vmatpush1.msra.mxu1 %v5533_v58 }
 0x5b8   :  { %1661 = vmatprep.subr.mxu1 %v4673_v1 }
 0x5b9   :  { %1662 = vmatpush1.msra.mxu1 %v5540_v40 }
 0x5ba   :  { %1663 = vmatprep.subr.mxu1 %v4673_v1 }
 0x5bb   :  { %1664 = vmatpush1.msra.mxu1 %v5547_v41 }
 0x5bc   :  { %1665 = vmatprep.subr.mxu1 %v4673_v1 }
 0x5bd   :  { %1666 = vmatpush1.msra.mxu1 %v5554_v61 }
 0x5be   :  { %1667 = vmatprep.subr.mxu1 %v4673_v1 }
 0x5bf   :  { %1668 = vmatpush1.msra.mxu1 %v5561_v25 }
 0x5c0   :  { %1669 = vmatprep.subr.mxu1 %v4673_v1 }
 0x5c1   :  { %1670 = vmatpush1.msra.mxu1 %v5568_v28 }
 0x5c2   :  { %1671 = vmatprep.subr.mxu1 %v4673_v1 }
 0x5c3   :  { %1672 = vmatpush1.msra.mxu1 %v5575_v0 }
 0x5c4   :  { %1673 = vmatprep.subr.mxu1 %v4673_v1 }
 0x5c5   :  { %1674 = vmatpush1.msra.mxu1 %v5582_v2 }
 0x5c6   :  { %1675 = vmatprep.subr.mxu1 %v4673_v1 }
 0x5c7   :  { %1676 = vmatpush1.msra.mxu1 %v5589_v3 }
 0x5c8   :  { %1693 = vmatprep.subr.mxu1 %v4673_v1 }
 0x5c9   :  { %1694 = vmatpush2.msra.mxu1 %v5596_v31 }
 0x5ca   :  { %1695 = vmatprep.subr.mxu1 %v4673_v1 }
 0x5cb   :  { %1696 = vmatpush2.msra.mxu1 %v5603_v4 }
 0x5cc   :  { %1697 = vmatprep.subr.mxu1 %v4673_v1 }
 0x5cd   :  { %1698 = vmatpush2.msra.mxu1 %v5610_v5 }
 0x5ce   :  { %1699 = vmatprep.subr.mxu1 %v4673_v1 }
 0x5cf   :  { %1700 = vmatpush2.msra.mxu1 %v5749_v36 }
 0x5d0   :  { %1701 = vmatprep.subr.mxu1 %v4673_v1 }
 0x5d1   :  { %1702 = vmatpush2.msra.mxu1 %v5756_v37 }
 0x5d2   :  { %1703 = vmatprep.subr.mxu1 %v4673_v1 }
 0x5d3   :  { %1704 = vmatpush2.msra.mxu1 %v5763_v38 }
 0x5d4   :  { %1705 = vmatprep.subr.mxu1 %v4673_v1 }
 0x5d5   :  { %1706 = vmatpush2.msra.mxu1 %v5770_v39 }
 0x5d6   :  { %1707 = vmatprep.subr.mxu1 %v4673_v1 }
 0x5d7   :  { %1708 = vmatpush2.msra.mxu1 %v5783_v21 }
 0x5d8   :  { %1710 = vmatmul.mubr.f32.vlgmr.msra.gmra.mxu1 %v3966_v20 }
 0x5d9   :  { %3975 = vmatprep.mubr.msk.f32.mxu1 %vm80_vm0, %v3969_v22 }
 0x5dc   :  { %1715 = vmatmul.mubr.f32.gmra.mxu1 %v3968_v23 }
 0x5dd   :  { %3976 = vmatprep.mubr.msk.f32.mxu1 %vm80_vm0, %v3971_v24 }
 0x5e0   :  { %1720 = vmatmul.mubr.f32.gmra.mxu1 %v3970_v7 }
 0x5e1   :  { %3977 = vmatprep.mubr.msk.f32.mxu1 %vm80_vm0, %v3973_v8 }
 0x5e4   :  { %1725 = vmatmul.mubr.f32.gmra.mxu1 %v3972_v9 }
 0x5e5   :  { %2039 = vmatprep.mubr.f32.mxu1 %v4673_v1 }
 0x668   :  { %v1593_v45 = vpop.f32.mrf.mxu1 }
 0x669   :  { %v5963_v54 = vadd.f32 %v1593_v45, %v5831_v32 }
 0x66a   :  { %v1595_v60 = vpop.f32.mrf.mxu1 }
 0x66b   :  { %v5966_v48 = vadd.f32 %v1595_v60, %v5834_v49  ;;  %v4035_v60 = vld [vmem:[%s6868_s5 + $0x178] sm:$0xff] }
 0x66c   :  { %v1599_v53 = vpop.f32.mrf.mxu1 }
 0x66d   :  { %v5969_v56 = vadd.f32 %v1599_v53, %v5837_v57  ;;  %v4034_v53 = vld [vmem:[%s6868_s5 + $0x170] sm:$0xff] }
 0x66e   :  { %v1601_v59 = vpop.f32.mrf.mxu1 }
 0x66f   :  { %v5972_v27 = vadd.f32 %v1601_v59, %v5840_v63  ;;  %v4033_v59 = vld [vmem:[%s6868_s5 + $0x168] sm:$0xff] }
 0x670   :  { %v1605_v47 = vpop.f32.mrf.mxu1 }
 0x671   :  { %v5975_v51 = vadd.f32 %v1605_v47, %v5843_v50  ;;  %v4032_v47 = vld [vmem:[%s6868_s5 + $0x160] sm:$0xff] }
 0x672   :  { %v1607_v42 = vpop.f32.mrf.mxu1 }
 0x673   :  { %v5978_v32 = vadd.f32 %v1607_v42, %v5846_v17  ;;  %v4031_v42 = vld [vmem:[%s6868_s5 + $0x158] sm:$0xff] }
 0x674   :  { %v1611_v44 = vpop.f32.mrf.mxu1 }
 0x675   :  { %v5981_v49 = vadd.f32 %v1611_v44, %v5849_v19  ;;  %v4030_v44 = vld [vmem:[%s6868_s5 + $0x150] sm:$0xff] }
 0x676   :  { %v1613_v46 = vpop.f32.mrf.mxu1 }
 0x677   :  { %v5984_v57 = vadd.f32 %v1613_v46, %v5852_v43  ;;  %v4029_v46 = vld [vmem:[%s6868_s5 + $0x148] sm:$0xff] }
 0x698   :  { %v1711_v30 = vpop.f32.mrf.mxu1 }
 0x699   :  { %3986 = vmatmul.mubr.msk.f32.vlgmr.msra.gmra.mxu0 %vm301_vm1, %v1711_v30  ;;  %v4028_v30 = vld [vmem:[%s6868_s5 + $0x140] sm:$0xff] }
 0x69a   :  { %1870 = vmatpush1.msra.mxu0 %v5474_v62  ;;  %v1713_v63 = vpop.f32.mrf.mxu1  ;;  %1821 = vmatprep.mubr.f32.mxu0 %v4673_v1 }
 0x69b   :  { %1871 = vmatprep.subr.mxu0 %v4673_v1  ;;  %v4043_v63 = vld [vmem:[%s6868_s5 + $0x1b8] sm:$0xff] }
 0x69c   :  { %1872 = vmatpush1.msra.mxu0 %v5482_v26  ;;  %v1716_v50 = vpop.f32.mrf.mxu1 }
 0x69d   :  { %1873 = vmatprep.subr.mxu0 %v4673_v1  ;;  %3987 = vmatmul.mubr.msk.f32.gmra.mxu0 %vm301_vm1, %v1716_v50  ;;  %v4027_v50 = vld [vmem:[%s6868_s5 + $0x138] sm:$0xff] }
 0x69e   :  { %1874 = vmatpush1.msra.mxu0 %v5490_v29  ;;  %v1718_v17 = vpop.f32.mrf.mxu1  ;;  %1827 = vmatprep.mubr.f32.mxu0 %v4673_v1  ;;  %v3991_v29 = vld [vmem:[%s6864_s1 + $0x208] sm:$0xff] }
 0x69f   :  { %1875 = vmatprep.subr.mxu0 %v4673_v1 }
 0x6a0   :  { %1876 = vmatpush1.msra.mxu0 %v5498_v33  ;;  %v1721_v62 = vpop.f32.mrf.mxu1 }
 0x6a1   :  { %1877 = vmatprep.subr.mxu0 %v4673_v1  ;;  %3988 = vmatmul.mubr.msk.f32.gmra.mxu0 %vm301_vm1, %v1721_v62 }
 0x6a2   :  { %1878 = vmatpush1.msra.mxu0 %v5506_v35  ;;  %v1723_v26 = vpop.f32.mrf.mxu1  ;;  %1833 = vmatprep.mubr.f32.mxu0 %v4673_v1  ;;  %v3990_v35 = vld [vmem:[%s6864_s1 + $0x200] sm:$0xff] }
 0x6a3   :  { %1879 = vmatprep.subr.mxu0 %v4673_v1  ;;  %v2074_v26 = vlaneseq }
 0x6a4   :  { %1880 = vmatpush1.msra.mxu0 %v5517_v52  ;;  %v1726_v19 = vpop.f32.mrf.mxu1  ;;  %v3993_v52 = vld [vmem:[%s6864_s1 + $0x218] sm:$0xff] }
 0x6a5   :  { %1881 = vmatprep.subr.mxu0 %v4673_v1  ;;  %3989 = vmatmul.mubr.msk.f32.gmra.mxu0 %vm301_vm1, %v1726_v19 }
 0x6a6   :  { %1882 = vmatpush1.msra.mxu0 %v5525_v55  ;;  %v1728_v33 = vpop.f32.mrf.mxu1  ;;  %3998 = vmatprep.mubr.msk.f32.mxu0 %vm80_vm0, %v3991_v29  ;;  %v3992_v55 = vld [vmem:[%s6864_s1 + $0x210] sm:$0xff] }
 0x6a7   :  { %1883 = vmatprep.subr.mxu0 %v4673_v1  ;;  %v2075_v33 = vshrl.u32 %v2074_v26, 7  ;;  %v2286_v26 = vld [vmem:[%s6868_s5 + $0x98] sm:$0xff] }
 0x6a8   :  { %1884 = vmatpush1.msra.mxu0 %v5533_v58  ;;  %v3995_v58 = vld [vmem:[%s6864_s1 + $0x228] sm:$0xff] }
 0x6a9   :  { %1885 = vmatprep.subr.mxu0 %v4673_v1 }
 0x6aa   :  { %1886 = vmatpush1.msra.mxu0 %v5540_v40  ;;  %v3994_v40 = vld [vmem:[%s6864_s1 + $0x220] sm:$0xff] }
 0x6ab   :  { %1887 = vmatprep.subr.mxu0 %v4673_v1 }
 0x6ac   :  { %1888 = vmatpush1.msra.mxu0 %v5547_v41  ;;  %v3997_v41 = vld [vmem:[%s6864_s1 + $0x238] sm:$0xff] }
 0x6ad   :  { %1889 = vmatprep.subr.mxu0 %v4673_v1 }
 0x6ae   :  { %1890 = vmatpush1.msra.mxu0 %v5554_v61  ;;  %v3996_v61 = vld [vmem:[%s6864_s1 + $0x230] sm:$0xff] }
 0x6af   :  { %1891 = vmatprep.subr.mxu0 %v4673_v1 }
 0x6b0   :  { %1892 = vmatpush1.msra.mxu0 %v5561_v25  ;;  %v4009_v25 = vld [vmem:[%s6865_s2 + $0x238] sm:$0xff] }
 0x6b1   :  { %1893 = vmatprep.subr.mxu0 %v4673_v1  ;;  %1999 = vmatprep.subr.mxu1 %v4009_v25 }
 0x6b2   :  { %1894 = vmatpush1.msra.mxu0 %v5568_v28  ;;  %v4008_v28 = vld [vmem:[%s6865_s2 + $0x230] sm:$0xff] }
 0x6b3   :  { %1895 = vmatprep.subr.mxu0 %v4673_v1  ;;  %2000 = vmatpush1.msra.mxu1 %v4008_v28 }
 0x6b4   :  { %1896 = vmatpush1.msra.mxu0 %v5575_v0  ;;  %v4007_v0 = vld [vmem:[%s6865_s2 + $0x228] sm:$0xff] }
 0x6b5   :  { %1897 = vmatprep.subr.mxu0 %v4673_v1  ;;  %2001 = vmatprep.subr.mxu1 %v4007_v0 }
 0x6b6   :  { %1898 = vmatpush1.msra.mxu0 %v5582_v2  ;;  %v4006_v2 = vld [vmem:[%s6865_s2 + $0x220] sm:$0xff] }
 0x6b7   :  { %1899 = vmatprep.subr.mxu0 %v4673_v1  ;;  %2002 = vmatpush1.msra.mxu1 %v4006_v2 }
 0x6b8   :  { %1900 = vmatpush1.msra.mxu0 %v5589_v3  ;;  %v4005_v3 = vld [vmem:[%s6865_s2 + $0x218] sm:$0xff] }
 0x6b9   :  { %1917 = vmatprep.subr.mxu0 %v4673_v1  ;;  %2003 = vmatprep.subr.mxu1 %v4005_v3 }
 0x6ba   :  { %1918 = vmatpush2.msra.mxu0 %v5596_v31  ;;  %v4004_v31 = vld [vmem:[%s6865_s2 + $0x210] sm:$0xff] }
 0x6bb   :  { %1919 = vmatprep.subr.mxu0 %v4673_v1  ;;  %2004 = vmatpush1.msra.mxu1 %v4004_v31 }
 0x6bc   :  { %1920 = vmatpush2.msra.mxu0 %v5603_v4  ;;  %v4003_v4 = vld [vmem:[%s6865_s2 + $0x208] sm:$0xff] }
 0x6bd   :  { %1921 = vmatprep.subr.mxu0 %v4673_v1  ;;  %2005 = vmatprep.subr.mxu1 %v4003_v4 }
 0x6be   :  { %1922 = vmatpush2.msra.mxu0 %v5610_v5  ;;  %v4002_v5 = vld [vmem:[%s6865_s2 + $0x200] sm:$0xff] }
 0x6bf   :  { %1923 = vmatprep.subr.mxu0 %v4673_v1  ;;  %2006 = vmatpush1.msra.mxu1 %v4002_v5 }
 0x6c0   :  { %1924 = vmatpush2.msra.mxu0 %v5749_v36 }
 0x6c1   :  { %1925 = vmatprep.subr.mxu0 %v4673_v1 }
 0x6c2   :  { %1926 = vmatpush2.msra.mxu0 %v5756_v37 }
 0x6c3   :  { %1927 = vmatprep.subr.mxu0 %v4673_v1 }
 0x6c4   :  { %1928 = vmatpush2.msra.mxu0 %v5763_v38 }
 0x6c5   :  { %1929 = vmatprep.subr.mxu0 %v4673_v1 }
 0x6c6   :  { %1930 = vmatpush2.msra.mxu0 %v5770_v39 }
 0x6c7   :  { %1931 = vmatprep.subr.mxu0 %v4673_v1 }
 0x6c8   :  { %1932 = vmatpush2.msra.mxu0 %v5783_v21 }
 0x6c9   :  { %1934 = vmatmul.mubr.f32.vlgmr.msra.gmra.mxu0 %v3990_v35 }
 0x6ca   :  { %3999 = vmatprep.mubr.msk.f32.mxu0 %vm80_vm0, %v3993_v52 }
 0x6cd   :  { %1939 = vmatmul.mubr.f32.gmra.mxu0 %v3992_v55  ;;  %v2080_v55 = vsub.s32 1, %v2075_v33 }
 0x6ce   :  { %4000 = vmatprep.mubr.msk.f32.mxu0 %vm80_vm0, %v3995_v58  ;;  %v2076_v58 = vsub.s32 0, %v2075_v33  ;;  %v4023_v33 = vld [vmem:[%s6868_s5 + $0x118] sm:$0xff] }
 0x6d1   :  { %1944 = vmatmul.mubr.f32.gmra.mxu0 %v3994_v40 }
 0x6d2   :  { %4001 = vmatprep.mubr.msk.f32.mxu0 %vm80_vm0, %v3997_v41  ;;  %v2072_v41 = vld [vmem:[%s6866_s3] sm:$0x3] }
 0x6d3   :  { %v2081_v28 = vrot.slane %v2072_v41, %v2080_v55  ;;  %v2077_v3 = vrot.slane %v2072_v41, %v2076_v58  ;;  %v2269_v55 = vld [vmem:[%s6868_s5 + $0x10] sm:$0xff]  ;;  %v4037_v41 = vld [vmem:[%s6868_s5 + $0x188] sm:$0xff] }
 0x6d4   :  { %v4022_v58 = vld [vmem:[%s6868_s5 + $0x110] sm:$0xff] }
 0x6d5   :  { %1949 = vmatmul.mubr.f32.gmra.mxu0 %v3996_v61 }
 0x759   :  { %v1817_v36 = vpop.f32.mrf.mxu0 }
 0x75a   :  { %v6093_v37 = vadd.f32 %v1817_v36, %v5963_v54  ;;  %v4051_v54 = vld [vmem:[%s6868_s5 + $0x1f8] sm:$0xff] }
 0x75b   :  { %v1819_v38 = vpop.f32.mrf.mxu0  ;;  %4175 = vmatprep.subr.mxu0 %v4051_v54  ;;  %v2293_v54 = vld [vmem:[%s6868_s5 + $0xd0] sm:$0xff] }
 0x75c   :  { %v6096_v39 = vadd.f32 %v1819_v38, %v5966_v48  ;;  %v4050_v48 = vld [vmem:[%s6868_s5 + $0x1f0] sm:$0xff]  ;;  %4176 = vmatpush3.msra.mxu0 %v4035_v60 }
 0x75d   :  { %v1823_v21 = vpop.f32.mrf.mxu0  ;;  %4177 = vmatprep.subr.mxu0 %v4050_v48  ;;  %v2277_v60 = vld [vmem:[%s6868_s5 + $0x50] sm:$0xff]  ;;  %v2292_v48 = vld [vmem:[%s6868_s5 + $0xc8] sm:$0xff] }
 0x75e   :  { %v6099_v43 = vadd.f32 %v1823_v21, %v5969_v56  ;;  %v4049_v56 = vld [vmem:[%s6868_s5 + $0x1e8] sm:$0xff]  ;;  %4178 = vmatpush3.msra.mxu0 %v4034_v53 }
 0x75f   :  { %v1825_v34 = vpop.f32.mrf.mxu0  ;;  %4179 = vmatprep.subr.mxu0 %v4049_v56  ;;  %v2276_v53 = vld [vmem:[%s6868_s5 + $0x48] sm:$0xff]  ;;  %v2291_v56 = vld [vmem:[%s6868_s5 + $0xc0] sm:$0xff] }
 0x760   :  { %v6102_v6 = vadd.f32 %v1825_v34, %v5972_v27  ;;  %v4048_v27 = vld [vmem:[%s6868_s5 + $0x1e0] sm:$0xff]  ;;  %4180 = vmatpush3.msra.mxu0 %v4033_v59 }
 0x761   :  { %v1829_v20 = vpop.f32.mrf.mxu0  ;;  %4181 = vmatprep.subr.mxu0 %v4048_v27  ;;  %v2275_v59 = vld [vmem:[%s6868_s5 + $0x40] sm:$0xff]  ;;  %v2290_v27 = vld [vmem:[%s6868_s5 + $0xb8] sm:$0xff] }
 0x762   :  { %v6105_v22 = vadd.f32 %v1829_v20, %v5975_v51  ;;  %v4047_v51 = vld [vmem:[%s6868_s5 + $0x1d8] sm:$0xff]  ;;  %4182 = vmatpush3.msra.mxu0 %v4032_v47 }
 0x763   :  { %v1831_v23 = vpop.f32.mrf.mxu0  ;;  %4183 = vmatprep.subr.mxu0 %v4047_v51  ;;  %v2274_v47 = vld [vmem:[%s6868_s5 + $0x38] sm:$0xff]  ;;  %v2289_v51 = vld [vmem:[%s6868_s5 + $0xb0] sm:$0xff] }
 0x764   :  { %v6108_v24 = vadd.f32 %v1831_v23, %v5978_v32  ;;  %v4046_v32 = vld [vmem:[%s6868_s5 + $0x1d0] sm:$0xff]  ;;  %4184 = vmatpush3.msra.mxu0 %v4031_v42 }
 0x765   :  { %v1835_v7 = vpop.f32.mrf.mxu0  ;;  %4185 = vmatprep.subr.mxu0 %v4046_v32  ;;  %v4042_v42 = vld [vmem:[%s6868_s5 + $0x1b0] sm:$0xff] }
 0x766   :  { %v6111_v8 = vadd.f32 %v1835_v7, %v5981_v49  ;;  %v4045_v49 = vld [vmem:[%s6868_s5 + $0x1c8] sm:$0xff]  ;;  %4186 = vmatpush3.msra.mxu0 %v4030_v44  ;;  %v2273_v32 = vld [vmem:[%s6868_s5 + $0x30] sm:$0xff] }
 0x767   :  { %v1837_v9 = vpop.f32.mrf.mxu0  ;;  %4187 = vmatprep.subr.mxu0 %v4045_v49  ;;  %v4026_v44 = vld [vmem:[%s6868_s5 + $0x130] sm:$0xff]  ;;  %v2288_v49 = vld [vmem:[%s6868_s5 + $0xa8] sm:$0xff] }
 0x768   :  { %v6114_v10 = vadd.f32 %v1837_v9, %v5984_v57  ;;  %v4044_v57 = vld [vmem:[%s6868_s5 + $0x1c0] sm:$0xff]  ;;  %4188 = vmatpush3.msra.mxu0 %v4029_v46  ;;  %v2282_v9 = vld [vmem:[%s6868_s5 + $0x78] sm:$0xff]  ;;  %v4041_v46 = vld [vmem:[%s6868_s5 + $0x1a8] sm:$0xff] }
 0x769   :  { %4189 = vmatprep.subr.mxu0 %v4044_v57  ;;  %v2272_v57 = vld [vmem:[%s6868_s5 + $0x28] sm:$0xff] }
 0x76a   :  { %4190 = vmatpush3.msra.mxu0 %v4028_v30  ;;  %v4025_v30 = vld [vmem:[%s6868_s5 + $0x128] sm:$0xff] }
 0x76b   :  { %4191 = vmatprep.subr.mxu0 %v4043_v63  ;;  %v2287_v63 = vld [vmem:[%s6868_s5 + $0xa0] sm:$0xff] }
 0x76c   :  { %4192 = vmatpush3.msra.mxu0 %v4027_v50  ;;  %v4040_v50 = vld [vmem:[%s6868_s5 + $0x1a0] sm:$0xff] }
 0x76d   :  { %4193 = vmatprep.subr.mxu0 %v4042_v42 }
 0x76e   :  { %4194 = vmatpush3.msra.mxu0 %v4026_v44 }
 0x76f   :  { %4195 = vmatprep.subr.mxu0 %v4041_v46  ;;  %v2484_v46 = vld [vmem:[%s6869_s6] sm:$0xff] }
 0x770   :  { %4196 = vmatpush3.msra.mxu0 %v4025_v30  ;;  %v2574_v30 = vld [vmem:[%s6870_s7 + $0x78] sm:$0xff] }
 0x771   :  { %4197 = vmatprep.subr.mxu0 %v4040_v50  ;;  %v2572_v50 = vld [vmem:[%s6870_s7 + $0x68] sm:$0xff] }
 0x789   :  { %v1935_v11 = vpop.f32.mrf.mxu0 }
 0x78a   :  { %4010 = vmatmul.mubr.msk.f32.vlgmr.msra.gmra.mxu1 %vm301_vm1, %v1935_v11  ;;  %v2281_v11 = vld [vmem:[%s6868_s5 + $0x70] sm:$0xff] }
 0x78b   :  { %v1937_v12 = vpop.f32.mrf.mxu0  ;;  %2045 = vmatprep.mubr.f32.mxu1 %v4673_v1 }
 0x78c   :  { %v4017_v12 = vld [vmem:[%s6867_s4 + $0x18] sm:$0xff] }
 0x78d   :  { %v1940_v13 = vpop.f32.mrf.mxu0 }
 0x78e   :  { %4011 = vmatmul.mubr.msk.f32.gmra.mxu1 %vm301_vm1, %v1940_v13  ;;  %v2296_v13 = vld [vmem:[%s6868_s5 + $0xe8] sm:$0xff] }
 0x78f   :  { %v1942_v14 = vpop.f32.mrf.mxu0  ;;  %2051 = vmatprep.mubr.f32.mxu1 %v4673_v1 }
 0x790   :  { %v2280_v14 = vld [vmem:[%s6868_s5 + $0x68] sm:$0xff] }
 0x791   :  { %v1945_v15 = vpop.f32.mrf.mxu0 }
 0x792   :  { %4012 = vmatmul.mubr.msk.f32.gmra.mxu1 %vm301_vm1, %v1945_v15  ;;  %v2295_v15 = vld [vmem:[%s6868_s5 + $0xe0] sm:$0xff] }
 0x793   :  { %v1947_v16 = vpop.f32.mrf.mxu0  ;;  %2057 = vmatprep.mubr.f32.mxu1 %v4673_v1 }
 0x794   :  { %v2279_v16 = vld [vmem:[%s6868_s5 + $0x60] sm:$0xff] }
 0x795   :  { %v1950_v18 = vpop.f32.mrf.mxu0 }
 0x796   :  { %4013 = vmatmul.mubr.msk.f32.gmra.mxu1 %vm301_vm1, %v1950_v18  ;;  %v2294_v18 = vld [vmem:[%s6868_s5 + $0xd8] sm:$0xff] }
 0x797   :  { %v1952_v45 = vpop.f32.mrf.mxu0  ;;  %2164 = vmatprep.mubr.f32.mxu1 %v4673_v1 }
 0x798   :  { %v2278_v45 = vld [vmem:[%s6868_s5 + $0x58] sm:$0xff] }
 0x84a   :  { %v2041_v17 = vpop.f32.mrf.mxu1 }
 0x84b   :  { %v2064_v20 = vadd.f32 %v2041_v17, %v6093_v37  ;;  %v2093_v37 = vld [vmem:[%s6867_s4 + $0x8] sm:$0xff]  ;;  %v2271_v17 = vld [vmem:[%s6868_s5 + $0x20] sm:$0xff] }
 0x84c   :  { %v2043_v62 = vpop.f32.mrf.mxu1 }
 0x84d   :  { %v2065_v21 = vadd.f32 %v2043_v62, %v6096_v39  ;;  %v4016_v39 = vld [vmem:[%s6867_s4 + $0x10] sm:$0xff]  ;;  %v4024_v62 = vld [vmem:[%s6868_s5 + $0x120] sm:$0xff] }
 0x84e   :  { %v2047_v29 = vpop.f32.mrf.mxu1  ;;  %4198 = vmatpush3.msra.mxu0 %v4024_v62  ;;  %v2570_v62 = vld [vmem:[%s6870_s7 + $0x58] sm:$0xff] }
 0x84f   :  { %v2066_v36 = vadd.f32 %v2047_v29, %v6099_v43  ;;  %v2092_v43 = vld [vmem:[%s6867_s4] sm:$0xff]  ;;  %v4039_v29 = vld [vmem:[%s6868_s5 + $0x198] sm:$0xff] }
 0x850   :  { %v2049_v19 = vpop.f32.mrf.mxu1  ;;  %4199 = vmatprep.subr.mxu0 %v4039_v29  ;;  %v2568_v29 = vld [vmem:[%s6870_s7 + $0x48] sm:$0xff] }
 0x851   :  { %v2067_v4 = vadd.f32 %v2049_v19, %v6102_v6  ;;  %v2086_v7 = vadd.f32 %v2077_v3, %v2066_v36  ;;  %v2298_v6 = vld [vmem:[%s6868_s5 + $0xf8] sm:$0xff]  ;;  %4200 = vmatpush3.msra.mxu0 %v4023_v33 }
 0x852   :  { %v2053_v35 = vpop.f32.mrf.mxu1  ;;  %v2270_v19 = vld [vmem:[%s6868_s5 + $0x18] sm:$0xff] }
 0x853   :  { %v2068_v31 = vadd.f32 %v2053_v35, %v6105_v22  ;;  %v2084_v22 = vadd.f32 %v2077_v3, %v2064_v20  ;;  %v2285_v35 = vld [vmem:[%s6868_s5 + $0x90] sm:$0xff]  ;;  %v2566_v33 = vld [vmem:[%s6870_s7 + $0x38] sm:$0xff] }
 0x854   :  { %v2055_v52 = vpop.f32.mrf.mxu1 }
 0x855   :  { %v2069_v0 = vadd.f32 %v2055_v52, %v6108_v24  ;;  %v2088_v23 = vadd.f32 %v2077_v3, %v2068_v31  ;;  %v2087_v24 = vadd.f32 %v2081_v28, %v2067_v4  ;;  %v4038_v52 = vld [vmem:[%s6868_s5 + $0x190] sm:$0xff] }
 0x856   :  { %v2059_v40 = vpop.f32.mrf.mxu1  ;;  %4201 = vmatprep.subr.mxu0 %v4038_v52  ;;  %v2564_v52 = vld [vmem:[%s6870_s7 + $0x28] sm:$0xff] }
 0x857   :  { %v2070_v61 = vadd.f32 %v2059_v40, %v6111_v8  ;;  %v2089_v34 = vadd.f32 %v2081_v28, %v2069_v0  ;;  %v2085_v8 = vadd.f32 %v2081_v28, %v2065_v21  ;;  %4202 = vmatpush3.msra.mxu0 %v4022_v58  ;;  %v2284_v40 = vld [vmem:[%s6868_s5 + $0x88] sm:$0xff]  ;;  %v4036_v0 = vld [vmem:[%s6868_s5 + $0x180] sm:$0xff]  ;;  %v2562_v58 = vld [vmem:[%s6870_s7 + $0x18] sm:$0xff] }
 0x858   :  { %v2061_v25 = vpop.f32.mrf.mxu1  ;;  %4203 = vmatprep.subr.mxu0 %v4037_v41  ;;  %v2560_v41 = vld [vmem:[%s6870_s7 + $0x8] sm:$0xff] }
 0x859   :  { %v2071_v2 = vadd.f32 %v2061_v25, %v6114_v10  ;;  %v2090_v38 = vadd.f32 %v2077_v3, %v2070_v61  ;;  %v2297_v10 = vld [vmem:[%s6868_s5 + $0xf0] sm:$0xff]  ;;  %v2268_v61 = vld [vmem:[%s6868_s5 + $0x8] sm:$0xff]  ;;  %v4020_v3 = vld [vmem:[%s6868_s5 + $0x100] sm:$0xff] }
 0x85a   :  { %v4021_v25 = vld [vmem:[%s6868_s5 + $0x108] sm:$0xff] }
 0x85b   :  { %v2091_v5 = vadd.f32 %v2081_v28, %v2071_v2  ;;  %4204 = vmatpush3.msra.mxu0 %v4021_v25  ;;  %v2283_v28 = vld [vmem:[%s6868_s5 + $0x80] sm:$0xff]  ;;  %v4056_v25 = vld [vmem:[%s6870_s7 + $0x88] sm:$0xff] }
 0x85c   :  { %4205 = vmatprep.subr.mxu0 %v4036_v0  ;;  %v2267_v2 = vld [vmem:[%s6868_s5] sm:$0xff] }
 0x85d   :  { %2124 = vmatprep.subr.mxu1 %v2091_v5  ;;  %4206 = vmatpush3.msra.mxu0 %v4020_v3 }
 0x85e   :  { %2125 = vmatpush1.msra.mxu1 %v2090_v38  ;;  %4358 = vmatprep.subr.mxu0 %v4673_v1 }
 0x85f   :  { %2126 = vmatprep.subr.mxu1 %v2089_v34 }
 0x860   :  { %2127 = vmatpush1.msra.mxu1 %v2088_v23 }
 0x861   :  { %2128 = vmatprep.subr.mxu1 %v2087_v24 }
 0x862   :  { %2129 = vmatpush1.msra.mxu1 %v2086_v7 }
 0x863   :  { %2130 = vmatprep.subr.mxu1 %v2085_v8 }
 0x864   :  { %2131 = vmatpush1.msra.mxu1 %v2084_v22 }
 0x865   :  { %4014 = vmatmul.mubr.msk.f32.vlgmr.msra.gmra.mxu1 %vm301_vm1, %v2092_v43  ;;  %2210 = vmatprep.subr.mxu1 %v2091_v5  ;;  %v4069_v43 = vld [vmem:[%s6870_s7 + $0xf0] sm:$0xff] }
 0x866   :  { %2211 = vmatpush1.msra.mxu1 %v2090_v38  ;;  %2170 = vmatprep.mubr.f32.mxu1 %v4673_v1 }
 0x867   :  { %2212 = vmatprep.subr.mxu1 %v2089_v34 }
 0x868   :  { %2213 = vmatpush1.msra.mxu1 %v2088_v23 }
 0x869   :  { %4015 = vmatmul.mubr.msk.f32.gmra.mxu1 %vm301_vm1, %v2093_v37  ;;  %2214 = vmatprep.subr.mxu1 %v2087_v24  ;;  %v4068_v37 = vld [vmem:[%s6870_s7 + $0xe8] sm:$0xff] }
 0x86a   :  { %2215 = vmatpush1.msra.mxu1 %v2086_v7  ;;  %2250 = vmatprep.mubr.f32.mxu1 %v4673_v1 }
 0x86b   :  { %2216 = vmatprep.subr.mxu1 %v2085_v8 }
 0x86c   :  { %2217 = vmatpush1.msra.mxu1 %v2084_v22  ;;  %v4070_v22 = vld [vmem:[%s6870_s7 + $0xf8] sm:$0xff] }
 0x86d   :  { %4018 = vmatmul.mubr.msk.f32.vlgmr.msra.gmra.mxu1 %vm301_vm1, %v4016_v39  ;;  %4137 = vmatprep.subr.mxu1 %v2298_v6  ;;  %v4067_v39 = vld [vmem:[%s6870_s7 + $0xe0] sm:$0xff]  ;;  %v4066_v6 = vld [vmem:[%s6870_s7 + $0xd8] sm:$0xff] }
 0x86e   :  { %2256 = vmatprep.mubr.f32.mxu1 %v4673_v1  ;;  %4138 = vmatpush3.msra.mxu1 %v2282_v9  ;;  %v4065_v9 = vld [vmem:[%s6870_s7 + $0xd0] sm:$0xff] }
 0x86f   :  { %4139 = vmatprep.subr.mxu1 %v2297_v10  ;;  %v4064_v10 = vld [vmem:[%s6870_s7 + $0xc8] sm:$0xff] }
 0x870   :  { %4140 = vmatpush3.msra.mxu1 %v2281_v11  ;;  %v4063_v11 = vld [vmem:[%s6870_s7 + $0xc0] sm:$0xff] }
 0x871   :  { %4019 = vmatmul.mubr.msk.f32.gmra.mxu1 %vm301_vm1, %v4017_v12  ;;  %4141 = vmatprep.subr.mxu1 %v2296_v13  ;;  %v4062_v12 = vld [vmem:[%s6870_s7 + $0xb8] sm:$0xff]  ;;  %v4061_v13 = vld [vmem:[%s6870_s7 + $0xb0] sm:$0xff] }
 0x872   :  { %4142 = vmatpush3.msra.mxu1 %v2280_v14  ;;  %v4060_v14 = vld [vmem:[%s6870_s7 + $0xa8] sm:$0xff] }
 0x873   :  { %4143 = vmatprep.subr.mxu1 %v2295_v15  ;;  %v4059_v15 = vld [vmem:[%s6870_s7 + $0xa0] sm:$0xff] }
 0x874   :  { %4144 = vmatpush3.msra.mxu1 %v2279_v16  ;;  %v4058_v16 = vld [vmem:[%s6870_s7 + $0x98] sm:$0xff] }
 0x875   :  { %4145 = vmatprep.subr.mxu1 %v2294_v18  ;;  %v4057_v18 = vld [vmem:[%s6870_s7 + $0x90] sm:$0xff] }
 0x876   :  { %4146 = vmatpush3.msra.mxu1 %v2278_v45 }
 0x877   :  { %4147 = vmatprep.subr.mxu1 %v2293_v54 }
 0x878   :  { %4148 = vmatpush3.msra.mxu1 %v2277_v60 }
 0x879   :  { %4149 = vmatprep.subr.mxu1 %v2292_v48 }
 0x87a   :  { %4150 = vmatpush3.msra.mxu1 %v2276_v53 }
 0x87b   :  { %4151 = vmatprep.subr.mxu1 %v2291_v56 }
 0x87c   :  { %4152 = vmatpush3.msra.mxu1 %v2275_v59 }
 0x87d   :  { %4153 = vmatprep.subr.mxu1 %v2290_v27 }
 0x87e   :  { %4154 = vmatpush3.msra.mxu1 %v2274_v47 }
 0x87f   :  { %4155 = vmatprep.subr.mxu1 %v2289_v51 }
 0x880   :  { %4156 = vmatpush3.msra.mxu1 %v2273_v32 }
 0x881   :  { %4157 = vmatprep.subr.mxu1 %v2288_v49 }
 0x882   :  { %4158 = vmatpush3.msra.mxu1 %v2272_v57  ;;  %v4053_v57 = vld [vmem:[%s6869_s6 + $0x8] sm:$0xff] }
 0x883   :  { %4159 = vmatprep.subr.mxu1 %v2287_v63  ;;  %v2573_v63 = vld [vmem:[%s6870_s7 + $0x70] sm:$0xff] }
 0x884   :  { %4160 = vmatpush3.msra.mxu1 %v2271_v17  ;;  %v2571_v17 = vld [vmem:[%s6870_s7 + $0x60] sm:$0xff] }
 0x885   :  { %4161 = vmatprep.subr.mxu1 %v2286_v26  ;;  %v2569_v26 = vld [vmem:[%s6870_s7 + $0x50] sm:$0xff] }
 0x886   :  { %4162 = vmatpush3.msra.mxu1 %v2270_v19  ;;  %v2567_v19 = vld [vmem:[%s6870_s7 + $0x40] sm:$0xff] }
 0x887   :  { %4163 = vmatprep.subr.mxu1 %v2285_v35  ;;  %v2565_v35 = vld [vmem:[%s6870_s7 + $0x30] sm:$0xff] }
 0x888   :  { %4164 = vmatpush3.msra.mxu1 %v2269_v55  ;;  %v2563_v55 = vld [vmem:[%s6870_s7 + $0x20] sm:$0xff] }
 0x889   :  { %4165 = vmatprep.subr.mxu1 %v2284_v40  ;;  %v2561_v40 = vld [vmem:[%s6870_s7 + $0x10] sm:$0xff] }
 0x88a   :  { %4166 = vmatpush3.msra.mxu1 %v2268_v61  ;;  %v2559_v61 = vld [vmem:[%s6870_s7] sm:$0xff] }
 0x88b   :  { %4167 = vmatprep.subr.mxu1 %v2283_v28  ;;  %v4055_v28 = vld [vmem:[%s6870_s7 + $0x80] sm:$0xff] }
 0x88c   :  { %4168 = vmatpush3.msra.mxu1 %v2267_v2 }
 0x88d   :  { %4344 = vmatprep.subr.mxu1 %v4673_v1 }
 0x925   :  { %v2166_v31 = vpop.f32.mrf.mxu1 }
 0x927   :  { %v2168_v4 = vpop.f32.mrf.mxu1 }
 0x929   :  { %v2172_v5 = vpop.f32.mrf.mxu1 }
 0x92b   :  { %v2174_v36 = vpop.f32.mrf.mxu1 }
 0x92d   :  { %v2252_v38 = vpop.f32.mrf.mxu1 }
 0x92e   :  { %v2263_v20 = vmax.f32 %v2166_v31, %v2252_v38  ;;  %v4071_v31 = vld [vmem:[%s6869_s6 + $0x10] sm:$0xff]  ;;  %v4086_v38 = vld [vmem:[%s6870_s7 + $0x168] sm:$0xff] }
 0x92f   :  { %v2254_v21 = vpop.f32.mrf.mxu1 }
 0x930   :  { %v2264_v34 = vmax.f32 %v2168_v4, %v2254_v21  ;;  %v4085_v21 = vld [vmem:[%s6870_s7 + $0x160] sm:$0xff] }
 0x931   :  { %v2258_v23 = vpop.f32.mrf.mxu1 }
 0x932   :  { %2363 = vmatprep.mubr.f32.mxu1 %v2264_v34  ;;  %2471 = vmatprep.mubr.f32.mxu0 %v2264_v34  ;;  %v2265_v8 = vmax.f32 %v2172_v5, %v2258_v23  ;;  %v4088_v5 = vld [vmem:[%s6870_s7 + $0x178] sm:$0xff]  ;;  %v4082_v23 = vld [vmem:[%s6870_s7 + $0x148] sm:$0xff] }
 0x933   :  { %v2260_v24 = vpop.f32.mrf.mxu1  ;;  %2364 = vmatmul.mubr.f32.vlgmr.msra.gmra.mxu1 %v2263_v20  ;;  %2472 = vmatmul.mubr.f32.vlgmr.msra.gmra.mxu0 %v2263_v20  ;;  %v4084_v34 = vld [vmem:[%s6870_s7 + $0x158] sm:$0xff]  ;;  %v4083_v20 = vld [vmem:[%s6870_s7 + $0x150] sm:$0xff] }
 0x934   :  { %v2266_v7 = vmax.f32 %v2174_v36, %v2260_v24  ;;  %4359 = vmatpush3.msra.mxu0 %v4070_v22  ;;  %v4087_v36 = vld [vmem:[%s6870_s7 + $0x170] sm:$0xff]  ;;  %v4081_v24 = vld [vmem:[%s6870_s7 + $0x140] sm:$0xff]  ;;  %v4078_v22 = vld [vmem:[%s6870_s7 + $0x128] sm:$0xff] }
 0x935   :  { %4360 = vmatprep.subr.mxu0 %v4673_v1 }
 0x936   :  { %2368 = vmatprep.mubr.f32.mxu1 %v2266_v7  ;;  %2476 = vmatprep.mubr.f32.mxu0 %v2266_v7  ;;  %v4080_v7 = vld [vmem:[%s6870_s7 + $0x138] sm:$0xff] }
 0x937   :  { %2369 = vmatmul.mubr.f32.gmra.mxu1 %v2265_v8  ;;  %2477 = vmatmul.mubr.f32.gmra.mxu0 %v2265_v8  ;;  %v4079_v8 = vld [vmem:[%s6870_s7 + $0x130] sm:$0xff] }
 0x938   :  { %4348 = vmatprep.mubr.msk.f32.mxu1 %vm4674_vm2, %v4673_v1  ;;  %4390 = vmatprep.mubr.msk.f32.mxu0 %vm4674_vm2, %v4673_v1 }
 0x939   :  { %4361 = vmatpush3.msra.mxu0 %v4069_v43  ;;  %v4077_v43 = vld [vmem:[%s6870_s7 + $0x120] sm:$0xff] }
 0x93a   :  { %4362 = vmatprep.subr.mxu0 %v4673_v1 }
 0x93b   :  { %4363 = vmatpush3.msra.mxu0 %v4068_v37  ;;  %v4076_v37 = vld [vmem:[%s6870_s7 + $0x118] sm:$0xff] }
 0x93c   :  { %4364 = vmatprep.subr.mxu0 %v4673_v1 }
 0x93d   :  { %4365 = vmatpush3.msra.mxu0 %v4067_v39  ;;  %v4075_v39 = vld [vmem:[%s6870_s7 + $0x110] sm:$0xff] }
 0x93e   :  { %4366 = vmatprep.subr.mxu0 %v4673_v1 }
 0x93f   :  { %4367 = vmatpush3.msra.mxu0 %v4066_v6  ;;  %v4074_v6 = vld [vmem:[%s6870_s7 + $0x108] sm:$0xff] }
 0x940   :  { %4368 = vmatprep.subr.mxu0 %v4673_v1 }
 0x941   :  { %4369 = vmatpush3.msra.mxu0 %v4065_v9  ;;  %v4073_v9 = vld [vmem:[%s6870_s7 + $0x100] sm:$0xff] }
 0x942   :  { %4370 = vmatprep.subr.mxu0 %v4673_v1 }
 0x943   :  { %4371 = vmatpush3.msra.mxu0 %v4064_v10 }
 0x944   :  { %4372 = vmatprep.subr.mxu0 %v4673_v1 }
 0x945   :  { %4373 = vmatpush3.msra.mxu0 %v4063_v11 }
 0x946   :  { %4374 = vmatprep.subr.mxu0 %v4673_v1 }
 0x947   :  { %4375 = vmatpush3.msra.mxu0 %v4062_v12 }
 0x948   :  { %4376 = vmatprep.subr.mxu0 %v4673_v1 }
 0x949   :  { %4377 = vmatpush3.msra.mxu0 %v4061_v13 }
 0x94a   :  { %4378 = vmatprep.subr.mxu0 %v4673_v1 }
 0x94b   :  { %4379 = vmatpush3.msra.mxu0 %v4060_v14 }
 0x94c   :  { %4380 = vmatprep.subr.mxu0 %v4673_v1 }
 0x94d   :  { %4381 = vmatpush3.msra.mxu0 %v4059_v15 }
 0x94e   :  { %4382 = vmatprep.subr.mxu0 %v4673_v1 }
 0x94f   :  { %4383 = vmatpush3.msra.mxu0 %v4058_v16 }
 0x950   :  { %4384 = vmatprep.subr.mxu0 %v4673_v1 }
 0x951   :  { %4385 = vmatpush3.msra.mxu0 %v4057_v18  ;;  %v4108_v18 = vld [vmem:[%s6873_s10 + $0xf8] sm:$0xff] }
 0x952   :  { %4386 = vmatprep.subr.mxu0 %v4673_v1 }
 0x953   :  { %4387 = vmatpush3.msra.mxu0 %v4056_v25  ;;  %v3131_v25 = vld [vmem:[%s6873_s10 + $0x10] sm:$0xff] }
 0x954   :  { %4388 = vmatprep.subr.mxu0 %v4673_v1 }
 0x955   :  { %4389 = vmatpush3.msra.mxu0 %v4055_v28  ;;  %v4095_v28 = vld [vmem:[%s6873_s10 + $0x90] sm:$0xff] }
 0x956   :  { %4428 = vmatprep.subr.mxu0 %v4673_v1 }
 0x9f3   :  { %v4169_v45 = vpop.f32.mrf.mxu1  ;;  %v4207_v54 = vpop.f32.mrf.mxu0 }
 0x9f5   :  { %v4170_v60 = vpop.f32.mrf.mxu1  ;;  %v4208_v48 = vpop.f32.mrf.mxu0 }
 0x9f6   :  { %v4171_v47 = vadd.f32 %v4170_v60, %v4169_v45  ;;  %v4209_v51 = vadd.f32 %v4208_v48, %v4207_v54  ;;  %v4107_v45 = vld [vmem:[%s6873_s10 + $0xf0] sm:$0xff]  ;;  %v4106_v54 = vld [vmem:[%s6873_s10 + $0xe8] sm:$0xff]  ;;  %v4105_v60 = vld [vmem:[%s6873_s10 + $0xe0] sm:$0xff] }
 0x9f7   :  { %v4172_v53 = vpop.f32.mrf.mxu1  ;;  %v4210_v56 = vpop.f32.mrf.mxu0  ;;  %v4104_v48 = vld [vmem:[%s6873_s10 + $0xd8] sm:$0xff] }
 0x9f8   :  { %v6410_v49 = vmax.f32 %v4171_v47, %v4209_v51  ;;  %v4099_v47 = vld [vmem:[%s6873_s10 + $0xb0] sm:$0xff]  ;;  %v4098_v51 = vld [vmem:[%s6873_s10 + $0xa8] sm:$0xff] }
 0x9f9   :  { %v4173_v59 = vpop.f32.mrf.mxu1  ;;  %v4211_v27 = vpop.f32.mrf.mxu0 }
 0x9fa   :  { %v4174_v42 = vadd.f32 %v4173_v59, %v4172_v53  ;;  %v4212_v32 = vadd.f32 %v4211_v27, %v4210_v56  ;;  %v4103_v53 = vld [vmem:[%s6873_s10 + $0xd0] sm:$0xff]  ;;  %v4102_v56 = vld [vmem:[%s6873_s10 + $0xc8] sm:$0xff]  ;;  %v4101_v59 = vld [vmem:[%s6873_s10 + $0xc0] sm:$0xff] }
 0x9fb   :  { %v4100_v27 = vld [vmem:[%s6873_s10 + $0xb8] sm:$0xff] }
 0x9fc   :  { %v6408_v44 = vmax.f32 %v4174_v42, %v4212_v32  ;;  %v4097_v42 = vld [vmem:[%s6873_s10 + $0xa0] sm:$0xff] }
 0x9fe   :  { %4345 = vmatpush3.msra.mxu1 %v6408_v44 }
 0x9ff   :  { %4346 = vmatprep.subr.mxu1 %v4673_v1 }
 0xa00   :  { %4347 = vmatpush3.msra.mxu1 %v6410_v49 }
 0xa01   :  { %4349 = vmatmul.mubr.msk.f32.vlgmr.msra.gmra.mxu1 %vm2485_vm3, %v2484_v46  ;;  %4351 = vmatprep.subr.mxu1 %v4673_v1 }
 0xa02   :  { %4352 = vmatpush3.msra.mxu1 %v6408_v44  ;;  %4355 = vmatprep.mubr.msk.f32.mxu1 %vm4674_vm2, %v4673_v1 }
 0xa03   :  { %4353 = vmatprep.subr.mxu1 %v4673_v1 }
 0xa04   :  { %4354 = vmatpush3.msra.mxu1 %v6410_v49 }
 0xa05   :  { %4356 = vmatmul.mubr.msk.f32.vlgmr.msra.gmra.mxu1 %vm2485_vm3, %v4053_v57  ;;  %4393 = vmatprep.subr.mxu1 %v4673_v1 }
 0xa06   :  { %4394 = vmatpush3.msra.mxu1 %v2574_v30  ;;  %4425 = vmatprep.mubr.msk.f32.mxu1 %vm4674_vm2, %v4673_v1  ;;  %v2978_v30 = vld [vmem:[%s6872_s9] sm:$0xf] }
 0xa07   :  { %4395 = vmatprep.subr.mxu1 %v4673_v1 }
 0xa08   :  { %4396 = vmatpush3.msra.mxu1 %v2573_v63  ;;  %v4091_v63 = vld [vmem:[%s6872_s9 + $0x4] sm:$0xf] }
 0xa09   :  { %4397 = vmatprep.subr.mxu1 %v4673_v1 }
 0xa0a   :  { %4398 = vmatpush3.msra.mxu1 %v2572_v50  ;;  %v3144_v50 = vld [vmem:[%s6873_s10 + $0x78] sm:$0xff] }
 0xa0b   :  { %4399 = vmatprep.subr.mxu1 %v4673_v1 }
 0xa0c   :  { %4400 = vmatpush3.msra.mxu1 %v2571_v17  ;;  %v3143_v17 = vld [vmem:[%s6873_s10 + $0x70] sm:$0xff] }
 0xa0d   :  { %4401 = vmatprep.subr.mxu1 %v4673_v1 }
 0xa0e   :  { %4402 = vmatpush3.msra.mxu1 %v2570_v62  ;;  %v3142_v62 = vld [vmem:[%s6873_s10 + $0x68] sm:$0xff] }
 0xa0f   :  { %4403 = vmatprep.subr.mxu1 %v4673_v1 }
 0xa10   :  { %4404 = vmatpush3.msra.mxu1 %v2569_v26  ;;  %v3141_v26 = vld [vmem:[%s6873_s10 + $0x60] sm:$0xff] }
 0xa11   :  { %4405 = vmatprep.subr.mxu1 %v4673_v1 }
 0xa12   :  { %4406 = vmatpush3.msra.mxu1 %v2568_v29  ;;  %v3140_v29 = vld [vmem:[%s6873_s10 + $0x58] sm:$0xff] }
 0xa13   :  { %4407 = vmatprep.subr.mxu1 %v4673_v1 }
 0xa14   :  { %4408 = vmatpush3.msra.mxu1 %v2567_v19  ;;  %v3139_v19 = vld [vmem:[%s6873_s10 + $0x50] sm:$0xff] }
 0xa15   :  { %4409 = vmatprep.subr.mxu1 %v4673_v1 }
 0xa16   :  { %4410 = vmatpush3.msra.mxu1 %v2566_v33  ;;  %v3138_v33 = vld [vmem:[%s6873_s10 + $0x48] sm:$0xff] }
 0xa17   :  { %4411 = vmatprep.subr.mxu1 %v4673_v1 }
 0xa18   :  { %4412 = vmatpush3.msra.mxu1 %v2565_v35  ;;  %v3137_v35 = vld [vmem:[%s6873_s10 + $0x40] sm:$0xff] }
 0xa19   :  { %4413 = vmatprep.subr.mxu1 %v4673_v1 }
 0xa1a   :  { %4414 = vmatpush3.msra.mxu1 %v2564_v52  ;;  %v3136_v52 = vld [vmem:[%s6873_s10 + $0x38] sm:$0xff] }
 0xa1b   :  { %4415 = vmatprep.subr.mxu1 %v4673_v1 }
 0xa1c   :  { %4416 = vmatpush3.msra.mxu1 %v2563_v55  ;;  %v3135_v55 = vld [vmem:[%s6873_s10 + $0x30] sm:$0xff] }
 0xa1d   :  { %4417 = vmatprep.subr.mxu1 %v4673_v1 }
 0xa1e   :  { %4418 = vmatpush3.msra.mxu1 %v2562_v58  ;;  %v3134_v58 = vld [vmem:[%s6873_s10 + $0x28] sm:$0xff] }
 0xa1f   :  { %4419 = vmatprep.subr.mxu1 %v4673_v1 }
 0xa20   :  { %4420 = vmatpush3.msra.mxu1 %v2561_v40  ;;  %v3133_v40 = vld [vmem:[%s6873_s10 + $0x20] sm:$0xff] }
 0xa21   :  { %4421 = vmatprep.subr.mxu1 %v4673_v1 }
 0xa22   :  { %4422 = vmatpush3.msra.mxu1 %v2560_v41  ;;  %v3132_v41 = vld [vmem:[%s6873_s10 + $0x18] sm:$0xff] }
 0xa23   :  { %4423 = vmatprep.subr.mxu1 %v4673_v1 }
 0xa24   :  { %4424 = vmatpush3.msra.mxu1 %v2559_v61  ;;  %v4096_v61 = vld [vmem:[%s6873_s10 + $0x98] sm:$0xff] }
 0xa25   :  { %4470 = vmatprep.subr.mxu1 %v4673_v1 }
 0xac1   :  { %v2555_v0 = vpop.f32.mrf.mxu1 }
 0xac2   :  { %4426 = vmatmul.mubr.f32.vlgmr.msra.gmra.mxu1 %v2555_v0  ;;  %v3130_v0 = vld [vmem:[%s6873_s10 + $0x8] sm:$0xff] }
 0xac3   :  { %v4350_v2 = vpop.f32.mrf.mxu1  ;;  %4472 = vmatprep.mubr.msk.f32.mxu1 %vm4674_vm2, %v4673_v1 }
 0xac4   :  { %v4094_v2 = vld [vmem:[%s6873_s10 + $0x88] sm:$0xff] }
 0xac5   :  { %v2646_v3 = vpop.f32.mrf.mxu1 }
 0xac6   :  { %4391 = vmatmul.mubr.f32.vlgmr.msra.gmra.mxu0 %v2646_v3  ;;  %v3129_v3 = vld [vmem:[%s6873_s10] sm:$0xff] }
 0xac7   :  { %4429 = vmatpush3.msra.mxu0 %v6408_v44  ;;  %4432 = vmatprep.mubr.msk.f32.mxu0 %vm4674_vm2, %v4673_v1  ;;  %v4357_v4 = vpop.f32.mrf.mxu1  ;;  %v4089_v44 = vld [vmem:[%s6871_s8] ss:$0 sm:$0xff] }
 0xac8   :  { %4430 = vmatprep.subr.mxu0 %v4673_v1 }
 0xac9   :  { %4431 = vmatpush3.msra.mxu0 %v6410_v49 }
 0xaca   :  { %4433 = vmatmul.mubr.msk.f32.vlgmr.msra.gmra.mxu0 %vm2485_vm3, %v4071_v31  ;;  %4435 = vmatprep.subr.mxu0 %v4673_v1  ;;  %v4093_v31 = vld [vmem:[%s6873_s10 + $0x80] sm:$0xff] }
 0xacb   :  { %4436 = vmatpush3.msra.mxu0 %v4088_v5  ;;  %4467 = vmatprep.mubr.msk.f32.mxu0 %vm4674_vm2, %v4673_v1 }
 0xacc   :  { %4437 = vmatprep.subr.mxu0 %v4673_v1 }
 0xacd   :  { %4438 = vmatpush3.msra.mxu0 %v4087_v36 }
 0xace   :  { %4439 = vmatprep.subr.mxu0 %v4673_v1 }
 0xacf   :  { %4440 = vmatpush3.msra.mxu0 %v4086_v38 }
 0xad0   :  { %4441 = vmatprep.subr.mxu0 %v4673_v1 }
 0xad1   :  { %4442 = vmatpush3.msra.mxu0 %v4085_v21 }
 0xad2   :  { %4443 = vmatprep.subr.mxu0 %v4673_v1 }
 0xad3   :  { %4444 = vmatpush3.msra.mxu0 %v4084_v34  ;;  %v3389_v34 = vld [vmem:[%s6875_s12 + $0x38] sm:$0xff] }
 0xad4   :  { %4445 = vmatprep.subr.mxu0 %v4673_v1 }
 0xad5   :  { %4446 = vmatpush3.msra.mxu0 %v4083_v20  ;;  %v3388_v20 = vld [vmem:[%s6875_s12 + $0x30] sm:$0xff] }
 0xad6   :  { %4447 = vmatprep.subr.mxu0 %v4673_v1 }
 0xad7   :  { %4448 = vmatpush3.msra.mxu0 %v4082_v23  ;;  %v3387_v23 = vld [vmem:[%s6875_s12 + $0x28] sm:$0xff] }
 0xad8   :  { %4449 = vmatprep.subr.mxu0 %v4673_v1 }
 0xad9   :  { %4450 = vmatpush3.msra.mxu0 %v4081_v24  ;;  %v3386_v24 = vld [vmem:[%s6875_s12 + $0x20] sm:$0xff] }
 0xada   :  { %4451 = vmatprep.subr.mxu0 %v4673_v1 }
 0xadb   :  { %4452 = vmatpush3.msra.mxu0 %v4080_v7 }
 0xadc   :  { %4453 = vmatprep.subr.mxu0 %v4673_v1 }
 0xadd   :  { %4454 = vmatpush3.msra.mxu0 %v4079_v8 }
 0xade   :  { %4455 = vmatprep.subr.mxu0 %v4673_v1 }
 0xadf   :  { %4456 = vmatpush3.msra.mxu0 %v4078_v22 }
 0xae0   :  { %4457 = vmatprep.subr.mxu0 %v4673_v1 }
 0xae1   :  { %4458 = vmatpush3.msra.mxu0 %v4077_v43  ;;  %v3303_v43 = vld [vmem:[%s6874_s11] sm:$0x3] }
 0xae2   :  { %4459 = vmatprep.subr.mxu0 %v4673_v1 }
 0xae3   :  { %4460 = vmatpush3.msra.mxu0 %v4076_v37 }
 0xae4   :  { %4461 = vmatprep.subr.mxu0 %v4673_v1 }
 0xae5   :  { %4462 = vmatpush3.msra.mxu0 %v4075_v39 }
 0xae6   :  { %4463 = vmatprep.subr.mxu0 %v4673_v1 }
 0xae7   :  { %4464 = vmatpush3.msra.mxu0 %v4074_v6  ;;  %v4111_v6 = vld [vmem:[%s6874_s11 + $0x2] sm:$0x3] }
 0xae8   :  { %4465 = vmatprep.subr.mxu0 %v4673_v1 }
 0xae9   :  { %4466 = vmatpush3.msra.mxu0 %v4073_v9  ;;  %v4121_v9 = vld [vmem:[%s6875_s12 + $0x78] sm:$0xff] }
 0xaea   :  { %4515 = vmatprep.subr.mxu0 %v4673_v1 }
 0xb82   :  { %v2803_v10 = vpop.f32.mrf.mxu1 }
 0xb84   :  { %v4427_v11 = vpop.f32.mrf.mxu1 }
 0xb85   :  { %v4119_v11 = vld [vmem:[%s6875_s12 + $0x68] sm:$0xff] }
 0xb86   :  { %v2733_v12 = vpop.f32.mrf.mxu0 }
 0xb87   :  { %v2804_v13 = vadd.f32 %v2803_v10, %v2733_v12  ;;  %v4120_v10 = vld [vmem:[%s6875_s12 + $0x70] sm:$0xff]  ;;  %v4118_v12 = vld [vmem:[%s6875_s12 + $0x60] sm:$0xff] }
 0xb88   :  { %v4392_v14 = vpop.f32.mrf.mxu0 }
 0xb89   :  { %v4116_v14 = vld [vmem:[%s6875_s12 + $0x50] sm:$0xff] }
 0xb8a   :  { %v2878_v15 = vpop.f32.mrf.mxu0 }
 0xb8b   :  { %4468 = vmatmul.mubr.f32.vlgmr.msra.gmra.mxu0 %v2878_v15  ;;  %v3385_v15 = vld [vmem:[%s6875_s12 + $0x18] sm:$0xff] }
 0xb8c   :  { %v4434_v16 = vpop.f32.mrf.mxu0  ;;  %4547 = vmatprep.mubr.msk.f32.mxu0 %vm4674_vm2, %v4673_v1  ;;  %4516 = vmatpush3.msra.mxu0 %v4108_v18  ;;  %v3383_v18 = vld [vmem:[%s6875_s12 + $0x8] sm:$0xff] }
 0xb8d   :  { %4517 = vmatprep.subr.mxu0 %v4673_v1  ;;  %v3384_v16 = vld [vmem:[%s6875_s12 + $0x10] sm:$0xff] }
 0xb8e   :  { %4518 = vmatpush3.msra.mxu0 %v4107_v45  ;;  %v4115_v45 = vld [vmem:[%s6875_s12 + $0x48] sm:$0xff] }
 0xb8f   :  { %4519 = vmatprep.subr.mxu0 %v4673_v1 }
 0xb90   :  { %4520 = vmatpush3.msra.mxu0 %v4106_v54  ;;  %v3382_v54 = vld [vmem:[%s6875_s12] sm:$0xff] }
 0xb91   :  { %4521 = vmatprep.subr.mxu0 %v4673_v1 }
 0xb92   :  { %4522 = vmatpush3.msra.mxu0 %v4105_v60  ;;  %v4114_v60 = vld [vmem:[%s6875_s12 + $0x40] sm:$0xff] }
 0xb93   :  { %4523 = vmatprep.subr.mxu0 %v4673_v1 }
 0xb94   :  { %4524 = vmatpush3.msra.mxu0 %v4104_v48 }
 0xb95   :  { %4525 = vmatprep.subr.mxu0 %v4673_v1 }
 0xb96   :  { %4526 = vmatpush3.msra.mxu0 %v4103_v53 }
 0xb97   :  { %4527 = vmatprep.subr.mxu0 %v4673_v1 }
 0xb98   :  { %4528 = vmatpush3.msra.mxu0 %v4102_v56 }
 0xb99   :  { %4529 = vmatprep.subr.mxu0 %v4673_v1 }
 0xb9a   :  { %4530 = vmatpush3.msra.mxu0 %v4101_v59  ;;  %v4124_v59 = vld [vmem:[%s6874_s11 + $0x4] sm:$0x3] }
 0xb9b   :  { %4531 = vmatprep.subr.mxu0 %v4673_v1 }
 0xb9c   :  { %4532 = vmatpush3.msra.mxu0 %v4100_v27 }
 0xb9d   :  { %4533 = vmatprep.subr.mxu0 %v4673_v1 }
 0xb9e   :  { %4534 = vmatpush3.msra.mxu0 %v4099_v47  ;;  %v4134_v47 = vld [vmem:[%s6875_s12 + $0xb8] sm:$0xff] }
 0xb9f   :  { %4535 = vmatprep.subr.mxu0 %v4673_v1 }
 0xba0   :  { %4536 = vmatpush3.msra.mxu0 %v4098_v51  ;;  %v4133_v51 = vld [vmem:[%s6875_s12 + $0xb0] sm:$0xff] }
 0xba1   :  { %4537 = vmatprep.subr.mxu0 %v4673_v1 }
 0xba2   :  { %4538 = vmatpush3.msra.mxu0 %v4097_v42  ;;  %v4132_v42 = vld [vmem:[%s6875_s12 + $0xa8] sm:$0xff] }
 0xba3   :  { %4539 = vmatprep.subr.mxu0 %v4673_v1 }
 0xba4   :  { %4540 = vmatpush3.msra.mxu0 %v4096_v61 }
 0xba5   :  { %4541 = vmatprep.subr.mxu0 %v4673_v1 }
 0xba6   :  { %4542 = vmatpush3.msra.mxu0 %v4095_v28 }
 0xba7   :  { %4543 = vmatprep.subr.mxu0 %v4673_v1 }
 0xba8   :  { %4544 = vmatpush3.msra.mxu0 %v4094_v2 }
 0xba9   :  { %4545 = vmatprep.subr.mxu0 %v4673_v1 }
 0xbaa   :  { %4546 = vmatpush3.msra.mxu0 %v4093_v31 }
 0xbab   :  { %4579 = vmatprep.subr.mxu0 %v4673_v1 }
 0xc4b   :  { %v2965_v32 = vpop.f32.mrf.mxu0 }
 0xc4c   :  { %v2969_v49 = vadd.f32 %v2965_v32, %v2804_v13  ;;  %v4117_v13 = vld [vmem:[%s6875_s12 + $0x58] sm:$0xff]  ;;  %v4131_v32 = vld [vmem:[%s6875_s12 + $0xa0] sm:$0xff] }
 0xc4d   :  { %v4469_v46 = vpop.f32.mrf.mxu0 }
 0xc4e   :  { %v2977_v57 = vadd.f32 %v4089_v44, %v2969_v49  ;;  %v4130_v44 = vld [vmem:[%s6875_s12 + $0x98] sm:$0xff]  ;;  %v4129_v49 = vld [vmem:[%s6875_s12 + $0x90] sm:$0xff]  ;;  %v4128_v46 = vld [vmem:[%s6875_s12 + $0x88] sm:$0xff] }
 0xc50   :  { %4471 = vmatpush3.msra.mxu1 %v2977_v57 }
 0xc51   :  { %4473 = vmatmul.mubr.msk.f32.vlgmr.msra.gmra.mxu1 %vm2979_vm4, %v2978_v30  ;;  %4475 = vmatprep.subr.mxu1 %v4673_v1 }
 0xc52   :  { %4476 = vmatpush3.msra.mxu1 %v2977_v57  ;;  %4477 = vmatprep.mubr.msk.f32.mxu1 %vm4674_vm2, %v4673_v1  ;;  %v4127_v57 = vld [vmem:[%s6875_s12 + $0x80] sm:$0xff]  ;;  %s4675_s12 = smov [#allocation2]  }
 0xc53   :  { %4480 = vmatprep.subr.mxu1 %v4673_v1  ;;  %s3806_s23 = sshll.u32 %s4675_s12, 4  ;;  %s3807_s23 = int_to_ptr.vmem [resolvable:$true] %s3806_s23 }
 0xc54   :  { %p4656_p1 = scmp.lt.s32.totalorder %s3807_s23, %s3807_s23 }
 0xc55   :  { %4478 = vmatmul.mubr.msk.f32.vlgmr.msra.gmra.mxu1 %vm2979_vm4, %v4091_v63 }
 0xc56   :  { %4481 = vmatpush3.msra.mxu1 %v3144_v50  ;;  %4512 = vmatprep.mubr.msk.f32.mxu1 %vm4674_vm2, %v4673_v1 }
 0xc57   :  { %4482 = vmatprep.subr.mxu1 %v4673_v1 }
 0xc58   :  { %4483 = vmatpush3.msra.mxu1 %v3143_v17 }
 0xc59   :  { %4484 = vmatprep.subr.mxu1 %v4673_v1 }
 0xc5a   :  { %4485 = vmatpush3.msra.mxu1 %v3142_v62 }
 0xc5b   :  { %4486 = vmatprep.subr.mxu1 %v4673_v1 }
 0xc5c   :  { %4487 = vmatpush3.msra.mxu1 %v3141_v26 }
 0xc5d   :  { %4488 = vmatprep.subr.mxu1 %v4673_v1 }
 0xc5e   :  { %4489 = vmatpush3.msra.mxu1 %v3140_v29 }
 0xc5f   :  { %4490 = vmatprep.subr.mxu1 %v4673_v1 }
 0xc60   :  { %4491 = vmatpush3.msra.mxu1 %v3139_v19 }
 0xc61   :  { %4492 = vmatprep.subr.mxu1 %v4673_v1 }
 0xc62   :  { %4493 = vmatpush3.msra.mxu1 %v3138_v33  ;;  %v4136_v33 = vld [vmem:[%s6876_s13] ss:$0 sm:$0xff]  ;;  %s4651_s13 = scalar_lea.vmem %s3807_s23, 32 }
 0xc63   :  { %4494 = vmatprep.subr.mxu1 %v4673_v1  ;;  %p4652_p0 = scmp.ne.s32.totalorder %s3807_s23, %s4651_s13  ;;  %p4657_p2 = scmp.lt.s32.totalorder %s4651_s13, %s4651_s13 }
 0xc64   :  { %4495 = vmatpush3.msra.mxu1 %v3137_v35 }
 0xc65   :  { %4496 = vmatprep.subr.mxu1 %v4673_v1  ;;  %p4658_p3 = por %p4657_p2, %p4656_p1 }
 0xc66   :  { %4497 = vmatpush3.msra.mxu1 %v3136_v52 }
 0xc67   :  { %4498 = vmatprep.subr.mxu1 %v4673_v1  ;;  %p4659_p4 = pnand %p4658_p3, %p4652_p0 }
 0xc68   :  { %4499 = vmatpush3.msra.mxu1 %v3135_v55 }
 0xc69   :  { %4500 = vmatprep.subr.mxu1 %v4673_v1 }
 0xc6a   :  { %4501 = vmatpush3.msra.mxu1 %v3134_v58 }
 0xc6b   :  { %4502 = vmatprep.subr.mxu1 %v4673_v1 }
 0xc6c   :  { %4503 = vmatpush3.msra.mxu1 %v3133_v40 }
 0xc6d   :  { %4504 = vmatprep.subr.mxu1 %v4673_v1 }
 0xc6e   :  { %4505 = vmatpush3.msra.mxu1 %v3132_v41 }
 0xc6f   :  { %4506 = vmatprep.subr.mxu1 %v4673_v1 }
 0xc70   :  { %4507 = vmatpush3.msra.mxu1 %v3131_v25 }
 0xc71   :  { %4508 = vmatprep.subr.mxu1 %v4673_v1 }
 0xc72   :  { %4509 = vmatpush3.msra.mxu1 %v3130_v0 }
 0xc73   :  { %4510 = vmatprep.subr.mxu1 %v4673_v1 }
 0xc74   :  { %4511 = vmatpush3.msra.mxu1 %v3129_v3 }
 0xc75   :  { %4550 = vmatprep.subr.mxu1 %v4673_v1 }
 0xd11   :  { %v3049_v4 = vpop.f32.mrf.mxu1 }
 0xd13   :  { %v4474_v5 = vpop.f32.mrf.mxu1 }
 0xd15   :  { %v3124_v36 = vpop.f32.mrf.mxu1 }
 0xd16   :  { %v3128_v38 = vmax.f32 %v3049_v4, %v3124_v36 }
 0xd17   :  { %v4479_v21 = vpop.f32.mrf.mxu1 }
 0xd18   :  { %4513 = vmatmul.mubr.f32.vlgmr.msra.gmra.mxu1 %v3128_v38  ;;  %4548 = vmatmul.mubr.f32.vlgmr.msra.gmra.mxu0 %v3128_v38 }
 0xd19   :  { %4552 = vmatprep.mubr.msk.f32.mxu1 %vm4674_vm2, %v4673_v1  ;;  %4595 = vmatprep.mubr.msk.f32.mxu0 %vm4674_vm2, %v4673_v1 }
 0xd1a   :  { %4580 = vmatpush3.msra.mxu0 %v3389_v34 }
 0xd1b   :  { %4581 = vmatprep.subr.mxu0 %v4673_v1 }
 0xd1c   :  { %4582 = vmatpush3.msra.mxu0 %v3388_v20 }
 0xd1d   :  { %4583 = vmatprep.subr.mxu0 %v4673_v1 }
 0xd1e   :  { %4584 = vmatpush3.msra.mxu0 %v3387_v23 }
 0xd1f   :  { %4585 = vmatprep.subr.mxu0 %v4673_v1 }
 0xd20   :  { %4586 = vmatpush3.msra.mxu0 %v3386_v24 }
 0xd21   :  { %4587 = vmatprep.subr.mxu0 %v4673_v1 }
 0xd22   :  { %4588 = vmatpush3.msra.mxu0 %v3385_v15 }
 0xd23   :  { %4589 = vmatprep.subr.mxu0 %v4673_v1 }
 0xd24   :  { %4590 = vmatpush3.msra.mxu0 %v3384_v16 }
 0xd25   :  { %4591 = vmatprep.subr.mxu0 %v4673_v1 }
 0xd26   :  { %4592 = vmatpush3.msra.mxu0 %v3383_v18 }
 0xd27   :  { %4593 = vmatprep.subr.mxu0 %v4673_v1 }
 0xd28   :  { %4594 = vmatpush3.msra.mxu0 %v3382_v54 }
 0xdd8   :  { %v3211_v7 = vpop.f32.mrf.mxu1  ;;  %v3298_v8 = vpop.f32.mrf.mxu0 }
 0xdd9   :  { %v3302_v22 = vmax.f32 %v3211_v7, %v3298_v8 }
 0xdda   :  { %v4514_v37 = vpop.f32.mrf.mxu1  ;;  %v4549_v39 = vpop.f32.mrf.mxu0 }
 0xddb   :  { %4551 = vmatpush3.msk.msra.mxu1 %vm3308_vm5, %v3302_v22 }
 0xddc   :  { %4553 = vmatmul.mubr.msk.f32.vlgmr.msra.gmra.mxu1 %vm3304_vm6, %v3303_v43  ;;  %4555 = vmatprep.subr.mxu1 %v4673_v1 }
 0xddd   :  { %4556 = vmatpush3.msk.msra.mxu1 %vm3308_vm5, %v3302_v22  ;;  %4557 = vmatprep.mubr.msk.f32.mxu1 %vm4674_vm2, %v4673_v1 }
 0xdde   :  { %4560 = vmatprep.subr.mxu1 %v4673_v1 }
 0xde0   :  { %4558 = vmatmul.mubr.msk.f32.vlgmr.msra.gmra.mxu1 %vm3304_vm6, %v4111_v6 }
 0xde1   :  { %4561 = vmatpush3.msra.mxu1 %v4121_v9  ;;  %4576 = vmatprep.mubr.msk.f32.mxu1 %vm4674_vm2, %v4673_v1 }
 0xde2   :  { %4562 = vmatprep.subr.mxu1 %v4673_v1 }
 0xde3   :  { %4563 = vmatpush3.msra.mxu1 %v4120_v10 }
 0xde4   :  { %4564 = vmatprep.subr.mxu1 %v4673_v1 }
 0xde5   :  { %4565 = vmatpush3.msra.mxu1 %v4119_v11 }
 0xde6   :  { %4566 = vmatprep.subr.mxu1 %v4673_v1 }
 0xde7   :  { %4567 = vmatpush3.msra.mxu1 %v4118_v12 }
 0xde8   :  { %4568 = vmatprep.subr.mxu1 %v4673_v1 }
 0xde9   :  { %4569 = vmatpush3.msra.mxu1 %v4117_v13 }
 0xdea   :  { %4570 = vmatprep.subr.mxu1 %v4673_v1 }
 0xdeb   :  { %4571 = vmatpush3.msra.mxu1 %v4116_v14 }
 0xdec   :  { %4572 = vmatprep.subr.mxu1 %v4673_v1 }
 0xded   :  { %4573 = vmatpush3.msra.mxu1 %v4115_v45 }
 0xdee   :  { %4574 = vmatprep.subr.mxu1 %v4673_v1 }
 0xdef   :  { %4575 = vmatpush3.msra.mxu1 %v4114_v60 }
 0xdf0   :  { %4598 = vmatprep.subr.mxu1 %v4673_v1 }
 0xe9c   :  { %v3378_v48 = vpop.f32.mrf.mxu1 }
 0xe9d   :  { %4596 = vmatmul.mubr.msk.f32.vlgmr.msra.gmra.mxu0 %vm80_vm0, %v3378_v48 }
 0xe9e   :  { %v4554_v53 = vpop.f32.mrf.mxu1 }
 0xea0   :  { %v3461_v56 = vpop.f32.mrf.mxu1 }
 0xea1   :  { %4577 = vmatmul.mubr.msk.f32.vlgmr.msra.gmra.mxu1 %vm80_vm0, %v3461_v56 }
 0xea2   :  { %4599 = vmatpush3.msk.msra.mxu1 %vm3308_vm5, %v3302_v22  ;;  %4600 = vmatprep.mubr.msk.f32.mxu1 %vm4674_vm2, %v4673_v1  ;;  %v4559_v27 = vpop.f32.mrf.mxu1 }
 0xea3   :  { %4603 = vmatprep.subr.mxu1 %v4673_v1 }
 0xea5   :  { %4601 = vmatmul.mubr.msk.f32.vlgmr.msra.gmra.mxu1 %vm3304_vm6, %v4124_v59 }
 0xea6   :  { %4604 = vmatpush3.msra.mxu1 %v4134_v47  ;;  %4619 = vmatprep.mubr.msk.f32.mxu1 %vm4674_vm2, %v4673_v1 }
 0xea7   :  { %4605 = vmatprep.subr.mxu1 %v4673_v1 }
 0xea8   :  { %4606 = vmatpush3.msra.mxu1 %v4133_v51 }
 0xea9   :  { %4607 = vmatprep.subr.mxu1 %v4673_v1 }
 0xeaa   :  { %4608 = vmatpush3.msra.mxu1 %v4132_v42 }
 0xeab   :  { %4609 = vmatprep.subr.mxu1 %v4673_v1 }
 0xeac   :  { %4610 = vmatpush3.msra.mxu1 %v4131_v32 }
 0xead   :  { %4611 = vmatprep.subr.mxu1 %v4673_v1 }
 0xeae   :  { %4612 = vmatpush3.msra.mxu1 %v4130_v44 }
 0xeaf   :  { %4613 = vmatprep.subr.mxu1 %v4673_v1 }
 0xeb0   :  { %4614 = vmatpush3.msra.mxu1 %v4129_v49 }
 0xeb1   :  { %4615 = vmatprep.subr.mxu1 %v4673_v1 }
 0xeb2   :  { %4616 = vmatpush3.msra.mxu1 %v4128_v46 }
 0xeb3   :  { %4617 = vmatprep.subr.mxu1 %v4673_v1 }
 0xeb4   :  { %4618 = vmatpush3.msra.mxu1 %v4127_v57 }
 0xf5d   :  { %v3616_v30 = vpop.f32.mrf.mxu0 }
 0xf5f   :  { %v4597_v63 = vpop.f32.mrf.mxu0 }
 0xf61   :  { %v3543_v50 = vpop.f32.mrf.mxu1 }
 0xf62   :  { %v3617_v17 = vadd.f32 %v3616_v30, %v3543_v50 }
 0xf63   :  { %v4578_v62 = vpop.f32.mrf.mxu1 }
 0xf65   :  { %v3691_v26 = vpop.f32.mrf.mxu1 }
 0xf66   :  { %4620 = vmatmul.mubr.msk.f32.vlgmr.msra.gmra.mxu1 %vm80_vm0, %v3691_v26 }
 0xf67   :  { %v4602_v29 = vpop.f32.mrf.mxu1 }
0x1026   :  { %v3773_v19 = vpop.f32.mrf.mxu1 }
0x1027   :  { %v3777_v1 = vadd.f32 %v3773_v19, %v3617_v17 }
0x1028   :  { %v4621_v35 = vpop.f32.mrf.mxu1 }
0x1029   :  { %v3785_v52 = vadd.f32 %v4136_v33, %v3777_v1 }
0x102b   :  { %v3787_v55 = vsel %vm3786_vm7, %v3785_v52, 0.0 }
0x102c   :  { %3788 = vadd.xlane.f32.xlu0 %v3787_v55 }
0x10b5   :  { %v3789_v58 = vpop.xlane.xlu0 %3788 }
0x10b6   :  { %v3790_v40 = vmul.f32 0.015625, %v3789_v58 }
0x10b8   :  { %v3791_v41 = vsub.f32 %v3785_v52, %v3790_v40 }
0x10ba   :  { %v3792_v61 = vmul.f32 %v3791_v41, %v3791_v41 }
0x10bc   :  { %v3793_v25 = vsel %vm3786_vm7, %v3792_v61, 0.0 }
0x10bd   :  { %3794 = vadd.xlane.f32.xlu0 %v3793_v25 }
0x1146   :  { %v3795_v28 = vpop.xlane.xlu0 %3794 }
0x1147   :  { %v3796_v0 = vmul.f32 0.015873017, %v3795_v28 }
0x1149   :  { %4625 = vrsqrt.f32 %v3796_v0 }
0x1156   :  { %v4626_v2 = vpop.eup %4625 }
0x1157   :  { %v3798_v3 = vmul.f32 %v4626_v2, %v3791_v41 }
0x1159   :  { %3799 = vst.msk [vmem:[#allocation2] sm:$0x3] %vm3786_vm7, %v3798_v3 }
0x115a   :  { %4662 = shalt.err (!%p4659_p4)
}
0x115b   :  { %3809 = dma.vmem_to_hbm [thread:$0]  %s3807_s23, 32, %s6877_s14, [#allocation3]  }
0x115c   :  { %4671 = dma.done.wait [#allocation3], 32  }
0x115d   :  { %4672 = vsyncadd [#allocation3], 4294967264 }
0x115e   :  { %3813 = vsyncpa [#allocation3], 1 }

</bundles_post_ra>
